<compile_context>
chip_gen: v7x
topology: tpu7x:2x2x1
jax: 0.10.0
libtpu: 0.0.40
codegen_flags: <defaults>
</compile_context>

<pallas_src>
import functools
import math

import jax
import jax.numpy as jnp
from jax.experimental import pallas as pl
from jax.experimental.pallas import tpu as pltpu  # noqa: F401  (TPU backend)

# ---- small synthetic "bert-base"-style config (scaled down) ----
VOCAB = 50
VOCAB_PAD = 64            # embedding table padded to a sublane multiple (one-hot matmul)
HIDDEN = 64
N_LAYERS = 2
N_HEADS = 4
HEAD_DIM = HIDDEN // N_HEADS
INTERMEDIATE = 128
MAX_POS = 16
NUM_CLASSES = 16          # len(mbti2label): 16 MBTI types
OUT_PAD = 128             # logits padded to 128 lanes -> lane-dense final store
LN_EPS = 1e-12            # BERT LayerNorm eps
BATCH = 2
SEQ = 8

N_PER_LAYER = 12          # weights/biases per encoder layer passed to the kernel


# ----------------------------- in-kernel helpers ----------------------------
def _ln(x, g, b):
    """LayerNorm over last axis, f32 math.  x: (M, H); g/b: (1, H)."""
    mu = jnp.mean(x, axis=-1, keepdims=True)
    var = jnp.mean((x - mu) * (x - mu), axis=-1, keepdims=True)
    return (x - mu) * jax.lax.rsqrt(var + LN_EPS) * g + b


def _mm(x_f32, w_bf16_ref, b_f32_ref):
    """bf16 MXU matmul with f32 accumulation + f32 bias."""
    y = jnp.dot(x_f32.astype(jnp.bfloat16), w_bf16_ref[...],
                preferred_element_type=jnp.float32)
    return y + b_f32_ref[...]


# ------------------------------ fused kernel --------------------------------
def _bert_fwd_kernel(*refs, batch, seq, n_heads, head_dim, n_layers):
    H = n_heads * head_dim
    M = batch * seq
    assert len(refs) == 6 + n_layers * N_PER_LAYER + 8 + 1

    (ids_ref, mask_ref, word_ref, posty_ref, embg_ref, embb_ref) = refs[:6]
    layer_refs = refs[6:6 + n_layers * N_PER_LAYER]
    (pw_ref, pb_ref, w1_ref, b1_ref,
     w2_ref, b2_ref, w3_ref, b3_ref) = refs[6 + n_layers * N_PER_LAYER:
                                            6 + n_layers * N_PER_LAYER + 8]
    o_ref = refs[-1]

    # --- embeddings: word gather fused in-kernel via one-hot matmul (exact) ---
    ids = ids_ref[...]                                          # (M, 1) int32
    iota = jax.lax.broadcasted_iota(jnp.int32, (M, VOCAB_PAD), 1)
    onehot = (iota == ids).astype(jnp.float32)                  # (M, VOCAB_PAD)
    x = jnp.dot(onehot, word_ref[...], preferred_element_type=jnp.float32)  # (M, H)
    x = x.reshape(batch, seq, H) + posty_ref[...][None]         # + pos + token-type(0)
    x = _ln(x.reshape(M, H), embg_ref[...], embb_ref[...])

    # --- additive key mask, broadcast ONCE for all layers/heads ---
    amask = (1 - mask_ref[...]).astype(jnp.float32) * -10000.0  # (B, S)
    amask = jnp.broadcast_to(amask[None, :, None, :],
                             (n_heads, batch, 1, seq)).reshape(n_heads * batch, 1, seq)
    amask = jnp.broadcast_to(amask, (n_heads * batch, seq, seq))

    # --- encoder layers (static unroll over n_layers) ---
    for l in range(n_layers):
        (qkv_w, qkv_b, ao_w, ao_b, ln1_g, ln1_b,
         ff1_w, ff1_b, ff2_w, ff2_b, ln2_g, ln2_b) = \
            layer_refs[l * N_PER_LAYER:(l + 1) * N_PER_LAYER]

        # fused Q|K|V projection (1/sqrt(dH) pre-folded into the Q columns/bias)
        qkv = _mm(x, qkv_w, qkv_b).reshape(batch, seq, 3 * H)   # (B, S, 3H) f32

        # stack all heads along the leading (einsum batch) axis: (nH*B, S, dH)
        qs, ks, vs = [], [], []
        for h in range(n_heads):
            qs.append(qkv[:, :, h * head_dim:(h + 1) * head_dim])
            ks.append(qkv[:, :, H + h * head_dim:H + (h + 1) * head_dim])
            vs.append(qkv[:, :, 2 * H + h * head_dim:2 * H + (h + 1) * head_dim])
        q_all = jnp.concatenate(qs, axis=0).astype(jnp.bfloat16)
        k_all = jnp.concatenate(ks, axis=0).astype(jnp.bfloat16)
        v_all = jnp.concatenate(vs, axis=0).astype(jnp.bfloat16)

        # ONE batched score matmul / softmax / ctx matmul over all (head, batch)
        s = jnp.einsum('bqd,bkd->bqk', q_all, k_all,
                       preferred_element_type=jnp.float32)      # (nH*B, S, S) f32
        s = s + amask
        # no max-subtraction: scores are bounded at these scales; -1e4 mask -> exp==0
        p = jnp.exp(s)
        p = p * pl.reciprocal(jnp.sum(p, axis=-1, keepdims=True), approx=True)
        ctx = jnp.einsum('bqk,bkd->bqd', p.astype(jnp.bfloat16), v_all,
                         preferred_element_type=jnp.float32)    # (nH*B, S, dH) f32

        # re-assemble heads into lanes and do ONE attn-output projection
        ctx = jnp.concatenate(
            [ctx[h * batch:(h + 1) * batch].reshape(M, head_dim)
             for h in range(n_heads)], axis=-1)                 # (M, H) f32
        attn_out = jnp.dot(ctx.astype(jnp.bfloat16), ao_w[...],
                           preferred_element_type=jnp.float32) + ao_b[...]
        # TODO(synk): attention/hidden dropouts are identity at inference (eval mode).

        x = _ln(x + attn_out, ln1_g[...], ln1_b[...])

        # feed-forward
        ff = _mm(x, ff1_w, ff1_b)                               # (M, INTERMEDIATE)
        # TODO(synk): HF BERT uses exact (erf) GELU; tanh approximation used for
        # robust TPU in-kernel lowering (EUP tanh).
        ff = jax.nn.gelu(ff, approximate=True)
        ff = _mm(ff, ff2_w, ff2_b)                              # (M, H)
        x = _ln(x + ff, ln2_g[...], ln2_b[...])

    # --- [CLS] pooler + classifier head (fused) ---
    cls = x.reshape(batch, seq, H)[:, 0:1, :].reshape(batch, H)  # (B, H)
    pooled = jnp.tanh(_mm(cls, pw_ref, pb_ref))                  # BERT pooler
    # TODO(synk): nn.Dropout(0.2) layers are identity at inference (eval mode).
    h1 = jnp.maximum(_mm(pooled, w1_ref, b1_ref), 0.0)           # Linear(H,512)+ReLU
    h2 = jnp.maximum(_mm(h1, w2_ref, b2_ref), 0.0)               # Linear(512,256)+ReLU
    logits = _mm(h2, w3_ref, b3_ref)                             # Linear(256,OUT_PAD)
    o_ref[...] = logits.astype(o_ref.dtype)                      # lane-dense (B,128) store


# ------------------------------ model (glue) ---------------------------------
@jax.jit
def bert_classifier_forward(params, input_ids, attention_mask):
    B, S = input_ids.shape
    ids = input_ids.reshape(B * S, 1).astype(jnp.int32)
    posty = params["pos_type_emb"][:S]                           # (S, H) static slice

    flat_layers = []
    for p in params["layers"]:
        flat_layers += [p["qkv_w"], p["qkv_b"], p["ao_w"], p["ao_b"],
                        p["ln1_g"], p["ln1_b"], p["ff1_w"], p["ff1_b"],
                        p["ff2_w"], p["ff2_b"], p["ln2_g"], p["ln2_b"]]

    kern = functools.partial(_bert_fwd_kernel, batch=B, seq=S,
                             n_heads=N_HEADS, head_dim=HEAD_DIM, n_layers=N_LAYERS)
    logits_pad = pl.pallas_call(
        kern,
        out_shape=jax.ShapeDtypeStruct((B, OUT_PAD), jnp.float32),
    )(ids, attention_mask.astype(jnp.int32),
      params["word_emb"], posty, params["emb_ln_g"], params["emb_ln_b"],
      *flat_layers,
      params["pooler_w"], params["pooler_b"],
      params["cls1_w"], params["cls1_b"],
      params["cls2_w"], params["cls2_b"],
      params["cls3_w"], params["cls3_b"])
    return logits_pad[:, :NUM_CLASSES]


# ------------------------------ parameter init -------------------------------
def init_params(key):
    keys = iter(jax.random.split(key, 64))

    def w(din, dout):
        return jax.random.normal(next(keys), (din, dout), jnp.float32) * 0.02

    def bias(n):
        return jnp.zeros((1, n), jnp.float32)          # pre-reshaped to (1, N)

    scale = 1.0 / math.sqrt(HEAD_DIM)

    word = jax.random.normal(next(keys), (VOCAB, HIDDEN), jnp.float32) * 0.02
    word_pad = jnp.zeros((VOCAB_PAD, HIDDEN), jnp.float32).at[:VOCAB].set(word)
    pos = jax.random.normal(next(keys), (MAX_POS, HIDDEN), jnp.float32) * 0.02
    ttype = jax.random.normal(next(keys), (2, HIDDEN), jnp.float32) * 0.02

    w3 = w(256, NUM_CLASSES)                            # classifier output, lane-padded
    w3_pad = jnp.zeros((256, OUT_PAD), jnp.float32).at[:, :NUM_CLASSES].set(w3)

    params = {
        "word_emb": word_pad,                           # f32, padded rows are zero
        "pos_type_emb": pos + ttype[0:1],               # pos + token_type(0) pre-summed
        "emb_ln_g": jnp.ones((1, HIDDEN), jnp.float32),
        "emb_ln_b": jnp.zeros((1, HIDDEN), jnp.float32),
        "layers": [],
        # pooler + classifier head (weights bf16 for MXU, biases f32)
        "pooler_w": w(HIDDEN, HIDDEN).astype(jnp.bfloat16),
        "pooler_b": bias(HIDDEN),
        "cls1_w": w(HIDDEN, 512).astype(jnp.bfloat16),
        "cls1_b": bias(512),
        "cls2_w": w(512, 256).astype(jnp.bfloat16),
        "cls2_b": bias(256),
        "cls3_w": w3_pad.astype(jnp.bfloat16),
        "cls3_b": jnp.zeros((1, OUT_PAD), jnp.float32),
    }

    for _ in range(N_LAYERS):
        wq = w(HIDDEN, HIDDEN) * scale          # fold 1/sqrt(dH) into Q weights
        wk = w(HIDDEN, HIDDEN)
        wv = w(HIDDEN, HIDDEN)
        qkv_w = jnp.concatenate([wq, wk, wv], axis=1).astype(jnp.bfloat16)
        bq = jnp.zeros((HIDDEN,), jnp.float32) * scale  # fold scale into Q bias too
        qkv_b = jnp.concatenate([bq, jnp.zeros((2 * HIDDEN,), jnp.float32)])[None, :]
        params["layers"].append({
            "qkv_w": qkv_w, "qkv_b": qkv_b,
            "ao_w": w(HIDDEN, HIDDEN).astype(jnp.bfloat16),
            "ao_b": bias(HIDDEN),
            "ln1_g": jnp.ones((1, HIDDEN), jnp.float32),
            "ln1_b": jnp.zeros((1, HIDDEN), jnp.float32),
            "ff1_w": w(HIDDEN, INTERMEDIATE).astype(jnp.bfloat16),
            "ff1_b": bias(INTERMEDIATE),
            "ff2_w": w(INTERMEDIATE, HIDDEN).astype(jnp.bfloat16),
            "ff2_b": bias(HIDDEN),
            "ln2_g": jnp.ones((1, HIDDEN), jnp.float32),
            "ln2_b": jnp.zeros((1, HIDDEN), jnp.float32),
        })
    return params


if __name__ == "__main__":
    root = jax.random.PRNGKey(0)
    k_params, k_ids = jax.random.split(root)
    params = init_params(k_params)

    input_ids = jax.random.randint(k_ids, (BATCH, SEQ), 0, VOCAB, dtype=jnp.int32)
    attention_mask = jnp.ones((BATCH, SEQ), dtype=jnp.int32)

    logits = bert_classifier_forward(params, input_ids, attention_mask)
    jax.block_until_ready(logits)
    assert logits.shape == (BATCH, NUM_CLASSES), logits.shape
    assert bool(jnp.all(jnp.isfinite(logits)))
    print("KERNEL_OK")
</pallas_src>

<mosaic_0001>
module attributes {stable_mosaic.version = 11 : i64} {
  func.func @_bert_fwd_kernel(%arg0: memref<16x1xi32, #tpu.memory_space<vmem>>, %arg1: memref<2x8xi32, #tpu.memory_space<vmem>>, %arg2: memref<64x64xf32, #tpu.memory_space<vmem>>, %arg3: memref<8x64xf32, #tpu.memory_space<vmem>>, %arg4: memref<1x64xf32, #tpu.memory_space<vmem>>, %arg5: memref<1x64xf32, #tpu.memory_space<vmem>>, %arg6: memref<64x192xbf16, #tpu.memory_space<vmem>>, %arg7: memref<1x192xf32, #tpu.memory_space<vmem>>, %arg8: memref<64x64xbf16, #tpu.memory_space<vmem>>, %arg9: memref<1x64xf32, #tpu.memory_space<vmem>>, %arg10: memref<1x64xf32, #tpu.memory_space<vmem>>, %arg11: memref<1x64xf32, #tpu.memory_space<vmem>>, %arg12: memref<64x128xbf16, #tpu.memory_space<vmem>>, %arg13: memref<1x128xf32, #tpu.memory_space<vmem>>, %arg14: memref<128x64xbf16, #tpu.memory_space<vmem>>, %arg15: memref<1x64xf32, #tpu.memory_space<vmem>>, %arg16: memref<1x64xf32, #tpu.memory_space<vmem>>, %arg17: memref<1x64xf32, #tpu.memory_space<vmem>>, %arg18: memref<64x192xbf16, #tpu.memory_space<vmem>>, %arg19: memref<1x192xf32, #tpu.memory_space<vmem>>, %arg20: memref<64x64xbf16, #tpu.memory_space<vmem>>, %arg21: memref<1x64xf32, #tpu.memory_space<vmem>>, %arg22: memref<1x64xf32, #tpu.memory_space<vmem>>, %arg23: memref<1x64xf32, #tpu.memory_space<vmem>>, %arg24: memref<64x128xbf16, #tpu.memory_space<vmem>>, %arg25: memref<1x128xf32, #tpu.memory_space<vmem>>, %arg26: memref<128x64xbf16, #tpu.memory_space<vmem>>, %arg27: memref<1x64xf32, #tpu.memory_space<vmem>>, %arg28: memref<1x64xf32, #tpu.memory_space<vmem>>, %arg29: memref<1x64xf32, #tpu.memory_space<vmem>>, %arg30: memref<64x64xbf16, #tpu.memory_space<vmem>>, %arg31: memref<1x64xf32, #tpu.memory_space<vmem>>, %arg32: memref<64x512xbf16, #tpu.memory_space<vmem>>, %arg33: memref<1x512xf32, #tpu.memory_space<vmem>>, %arg34: memref<512x256xbf16, #tpu.memory_space<vmem>>, %arg35: memref<1x256xf32, #tpu.memory_space<vmem>>, %arg36: memref<256x128xbf16, #tpu.memory_space<vmem>>, %arg37: memref<1x128xf32, #tpu.memory_space<vmem>>, %arg38: memref<2x128xf32, #tpu.memory_space<vmem>>) attributes {dimension_semantics = [], scalar_prefetch = 0 : i64, scratch_operands = 0 : i64, tpu.core_type = #tpu.core_type<tc>} {
    %c0 = arith.constant 0 : index
    %c0_0 = arith.constant 0 : index
    %0 = vector.load %arg0[%c0, %c0_0] : memref<16x1xi32, #tpu.memory_space<vmem>>, vector<16x1xi32>
    %1 = tpu.iota {dimensions = array<i32: 1>} : vector<16x64xi32>
    %2 = vector.broadcast %0 : vector<16x1xi32> to vector<16x64xi32>
    %3 = arith.cmpi eq, %1, %2 : vector<16x64xi32>
    %4 = arith.extui %3 : vector<16x64xi1> to vector<16x64xi32>
    %5 = arith.sitofp %4 : vector<16x64xi32> to vector<16x64xf32>
    %c0_1 = arith.constant 0 : index
    %c0_2 = arith.constant 0 : index
    %6 = vector.load %arg2[%c0_1, %c0_2] : memref<64x64xf32, #tpu.memory_space<vmem>>, vector<64x64xf32>
    %cst = arith.constant dense<0.000000e+00> : vector<16x64xf32>
    %7 = tpu.matmul %5, %6, %cst {dimension_numbers = #tpu.dot_dimension_numbers<[1], [0], [0], [1], [0, 0, 1, 1], [], []>} : vector<16x64xf32>, vector<64x64xf32>, vector<16x64xf32> -> vector<16x64xf32>
    %8 = vector.shape_cast %7 : vector<16x64xf32> to vector<2x8x64xf32>
    %c0_3 = arith.constant 0 : index
    %c0_4 = arith.constant 0 : index
    %9 = vector.load %arg3[%c0_3, %c0_4] : memref<8x64xf32, #tpu.memory_space<vmem>>, vector<8x64xf32>
    %10 = vector.shape_cast %9 : vector<8x64xf32> to vector<1x8x64xf32>
    %11 = vector.broadcast %10 : vector<1x8x64xf32> to vector<2x8x64xf32>
    %12 = arith.addf %8, %11 : vector<2x8x64xf32>
    %13 = vector.shape_cast %12 : vector<2x8x64xf32> to vector<16x64xf32>
    %c0_5 = arith.constant 0 : index
    %c0_6 = arith.constant 0 : index
    %14 = vector.load %arg4[%c0_5, %c0_6] : memref<1x64xf32, #tpu.memory_space<vmem>>, vector<1x64xf32>
    %c0_7 = arith.constant 0 : index
    %c0_8 = arith.constant 0 : index
    %15 = vector.load %arg5[%c0_7, %c0_8] : memref<1x64xf32, #tpu.memory_space<vmem>>, vector<1x64xf32>
    %cst_9 = arith.constant dense<0.000000e+00> : vector<16xf32>
    %16 = vector.multi_reduction <add>, %13, %cst_9 [1] : vector<16x64xf32> to vector<16xf32>
    %17 = vector.shape_cast %16 : vector<16xf32> to vector<16x1xf32>
    %cst_10 = arith.constant 6.400000e+01 : f32
    %18 = vector.broadcast %cst_10 : f32 to vector<16x1xf32>
    %19 = arith.divf %17, %18 : vector<16x1xf32>
    %20 = vector.broadcast %19 : vector<16x1xf32> to vector<16x64xf32>
    %21 = arith.subf %13, %20 : vector<16x64xf32>
    %22 = vector.broadcast %19 : vector<16x1xf32> to vector<16x64xf32>
    %23 = arith.subf %13, %22 : vector<16x64xf32>
    %24 = arith.mulf %21, %23 : vector<16x64xf32>
    %cst_11 = arith.constant dense<0.000000e+00> : vector<16xf32>
    %25 = vector.multi_reduction <add>, %24, %cst_11 [1] : vector<16x64xf32> to vector<16xf32>
    %26 = vector.shape_cast %25 : vector<16xf32> to vector<16x1xf32>
    %cst_12 = arith.constant 6.400000e+01 : f32
    %27 = vector.broadcast %cst_12 : f32 to vector<16x1xf32>
    %28 = arith.divf %26, %27 : vector<16x1xf32>
    %29 = vector.broadcast %19 : vector<16x1xf32> to vector<16x64xf32>
    %30 = arith.subf %13, %29 : vector<16x64xf32>
    %cst_13 = arith.constant 9.99999996E-13 : f32
    %31 = vector.broadcast %cst_13 : f32 to vector<16x1xf32>
    %32 = arith.addf %28, %31 : vector<16x1xf32>
    %33 = math.rsqrt %32 : vector<16x1xf32>
    %34 = vector.broadcast %33 : vector<16x1xf32> to vector<16x64xf32>
    %35 = arith.mulf %30, %34 : vector<16x64xf32>
    %36 = vector.broadcast %14 : vector<1x64xf32> to vector<16x64xf32>
    %37 = arith.mulf %35, %36 : vector<16x64xf32>
    %38 = vector.broadcast %15 : vector<1x64xf32> to vector<16x64xf32>
    %39 = arith.addf %37, %38 : vector<16x64xf32>
    %c0_14 = arith.constant 0 : index
    %c0_15 = arith.constant 0 : index
    %40 = vector.load %arg1[%c0_14, %c0_15] : memref<2x8xi32, #tpu.memory_space<vmem>>, vector<2x8xi32>
    %c1_i32 = arith.constant 1 : i32
    %41 = vector.broadcast %c1_i32 : i32 to vector<2x8xi32>
    %42 = arith.subi %41, %40 : vector<2x8xi32>
    %43 = arith.sitofp %42 : vector<2x8xi32> to vector<2x8xf32>
    %cst_16 = arith.constant -1.000000e+04 : f32
    %44 = vector.broadcast %cst_16 : f32 to vector<2x8xf32>
    %45 = arith.mulf %43, %44 : vector<2x8xf32>
    %46 = vector.shape_cast %45 : vector<2x8xf32> to vector<1x2x1x8xf32>
    %47 = vector.shape_cast %46 : vector<1x2x1x8xf32> to vector<1x2x1x8xf32>
    %48 = vector.broadcast %47 : vector<1x2x1x8xf32> to vector<4x2x1x8xf32>
    %49 = vector.shape_cast %48 : vector<4x2x1x8xf32> to vector<8x1x8xf32>
    %50 = vector.shape_cast %49 : vector<8x1x8xf32> to vector<8x1x8xf32>
    %51 = vector.broadcast %50 : vector<8x1x8xf32> to vector<8x8x8xf32>
    %52 = arith.truncf %39 : vector<16x64xf32> to vector<16x64xbf16>
    %c0_17 = arith.constant 0 : index
    %c0_18 = arith.constant 0 : index
    %53 = vector.load %arg6[%c0_17, %c0_18] : memref<64x192xbf16, #tpu.memory_space<vmem>>, vector<64x192xbf16>
    %cst_19 = arith.constant dense<0.000000e+00> : vector<16x192xf32>
    %54 = tpu.matmul %52, %53, %cst_19 {dimension_numbers = #tpu.dot_dimension_numbers<[1], [0], [0], [1], [0, 0, 1, 1], [], []>} : vector<16x64xbf16>, vector<64x192xbf16>, vector<16x192xf32> -> vector<16x192xf32>
    %c0_20 = arith.constant 0 : index
    %c0_21 = arith.constant 0 : index
    %55 = vector.load %arg7[%c0_20, %c0_21] : memref<1x192xf32, #tpu.memory_space<vmem>>, vector<1x192xf32>
    %56 = vector.broadcast %55 : vector<1x192xf32> to vector<16x192xf32>
    %57 = arith.addf %54, %56 : vector<16x192xf32>
    %58 = vector.shape_cast %57 : vector<16x192xf32> to vector<2x8x192xf32>
    %59 = vector.extract_strided_slice %58 {offsets = [0, 0, 0], sizes = [2, 8, 16], strides = [1, 1, 1]} : vector<2x8x192xf32> to vector<2x8x16xf32>
    %60 = vector.extract_strided_slice %58 {offsets = [0, 0, 64], sizes = [2, 8, 16], strides = [1, 1, 1]} : vector<2x8x192xf32> to vector<2x8x16xf32>
    %61 = vector.extract_strided_slice %58 {offsets = [0, 0, 128], sizes = [2, 8, 16], strides = [1, 1, 1]} : vector<2x8x192xf32> to vector<2x8x16xf32>
    %62 = vector.extract_strided_slice %58 {offsets = [0, 0, 16], sizes = [2, 8, 16], strides = [1, 1, 1]} : vector<2x8x192xf32> to vector<2x8x16xf32>
    %63 = vector.extract_strided_slice %58 {offsets = [0, 0, 80], sizes = [2, 8, 16], strides = [1, 1, 1]} : vector<2x8x192xf32> to vector<2x8x16xf32>
    %64 = vector.extract_strided_slice %58 {offsets = [0, 0, 144], sizes = [2, 8, 16], strides = [1, 1, 1]} : vector<2x8x192xf32> to vector<2x8x16xf32>
    %65 = vector.extract_strided_slice %58 {offsets = [0, 0, 32], sizes = [2, 8, 16], strides = [1, 1, 1]} : vector<2x8x192xf32> to vector<2x8x16xf32>
    %66 = vector.extract_strided_slice %58 {offsets = [0, 0, 96], sizes = [2, 8, 16], strides = [1, 1, 1]} : vector<2x8x192xf32> to vector<2x8x16xf32>
    %67 = vector.extract_strided_slice %58 {offsets = [0, 0, 160], sizes = [2, 8, 16], strides = [1, 1, 1]} : vector<2x8x192xf32> to vector<2x8x16xf32>
    %68 = vector.extract_strided_slice %58 {offsets = [0, 0, 48], sizes = [2, 8, 16], strides = [1, 1, 1]} : vector<2x8x192xf32> to vector<2x8x16xf32>
    %69 = vector.extract_strided_slice %58 {offsets = [0, 0, 112], sizes = [2, 8, 16], strides = [1, 1, 1]} : vector<2x8x192xf32> to vector<2x8x16xf32>
    %70 = vector.extract_strided_slice %58 {offsets = [0, 0, 176], sizes = [2, 8, 16], strides = [1, 1, 1]} : vector<2x8x192xf32> to vector<2x8x16xf32>
    %71 = tpu.concatenate %59, %62, %65, %68 in 0 : vector<2x8x16xf32>, vector<2x8x16xf32>, vector<2x8x16xf32>, vector<2x8x16xf32> -> vector<8x8x16xf32>
    %72 = arith.truncf %71 : vector<8x8x16xf32> to vector<8x8x16xbf16>
    %73 = tpu.concatenate %60, %63, %66, %69 in 0 : vector<2x8x16xf32>, vector<2x8x16xf32>, vector<2x8x16xf32>, vector<2x8x16xf32> -> vector<8x8x16xf32>
    %74 = arith.truncf %73 : vector<8x8x16xf32> to vector<8x8x16xbf16>
    %75 = tpu.concatenate %61, %64, %67, %70 in 0 : vector<2x8x16xf32>, vector<2x8x16xf32>, vector<2x8x16xf32>, vector<2x8x16xf32> -> vector<8x8x16xf32>
    %76 = arith.truncf %75 : vector<8x8x16xf32> to vector<8x8x16xbf16>
    "tpu.trace_start"() <{level = 10 : i32, message = "bqd,bkd->bqk"}> : () -> ()
    %cst_22 = arith.constant dense<0.000000e+00> : vector<8x8x8xf32>
    %77 = tpu.matmul %72, %74, %cst_22 {dimension_numbers = #tpu.dot_dimension_numbers<[2], [2], [1], [1], [0, 0, 0, 1, 1, 1], [0], [0]>} : vector<8x8x16xbf16>, vector<8x8x16xbf16>, vector<8x8x8xf32> -> vector<8x8x8xf32>
    "tpu.trace_stop"() : () -> ()
    %78 = arith.addf %77, %51 : vector<8x8x8xf32>
    %79 = math.exp %78 : vector<8x8x8xf32>
    %cst_23 = arith.constant dense<0.000000e+00> : vector<8x8xf32>
    %80 = vector.multi_reduction <add>, %79, %cst_23 [2] : vector<8x8x8xf32> to vector<8x8xf32>
    %81 = vector.shape_cast %80 : vector<8x8xf32> to vector<8x8x1xf32>
    %82 = tpu.reciprocal %81 {approx = true} : vector<8x8x1xf32> -> vector<8x8x1xf32>
    %83 = vector.broadcast %82 : vector<8x8x1xf32> to vector<8x8x8xf32>
    %84 = arith.mulf %79, %83 : vector<8x8x8xf32>
    %85 = arith.truncf %84 : vector<8x8x8xf32> to vector<8x8x8xbf16>
    "tpu.trace_start"() <{level = 10 : i32, message = "bqk,bkd->bqd"}> : () -> ()
    %cst_24 = arith.constant dense<0.000000e+00> : vector<8x8x16xf32>
    %86 = tpu.matmul %85, %76, %cst_24 {dimension_numbers = #tpu.dot_dimension_numbers<[2], [1], [1], [2], [0, 0, 0, 1, 1, 2], [0], [0]>} : vector<8x8x8xbf16>, vector<8x8x16xbf16>, vector<8x8x16xf32> -> vector<8x8x16xf32>
    "tpu.trace_stop"() : () -> ()
    %87 = vector.extract_strided_slice %86 {offsets = [0, 0, 0], sizes = [2, 8, 16], strides = [1, 1, 1]} : vector<8x8x16xf32> to vector<2x8x16xf32>
    %88 = vector.shape_cast %87 : vector<2x8x16xf32> to vector<16x16xf32>
    %89 = vector.extract_strided_slice %86 {offsets = [2, 0, 0], sizes = [2, 8, 16], strides = [1, 1, 1]} : vector<8x8x16xf32> to vector<2x8x16xf32>
    %90 = vector.shape_cast %89 : vector<2x8x16xf32> to vector<16x16xf32>
    %91 = vector.extract_strided_slice %86 {offsets = [4, 0, 0], sizes = [2, 8, 16], strides = [1, 1, 1]} : vector<8x8x16xf32> to vector<2x8x16xf32>
    %92 = vector.shape_cast %91 : vector<2x8x16xf32> to vector<16x16xf32>
    %93 = vector.extract_strided_slice %86 {offsets = [6, 0, 0], sizes = [2, 8, 16], strides = [1, 1, 1]} : vector<8x8x16xf32> to vector<2x8x16xf32>
    %94 = vector.shape_cast %93 : vector<2x8x16xf32> to vector<16x16xf32>
    %95 = tpu.concatenate %88, %90, %92, %94 in 1 : vector<16x16xf32>, vector<16x16xf32>, vector<16x16xf32>, vector<16x16xf32> -> vector<16x64xf32>
    %96 = arith.truncf %95 : vector<16x64xf32> to vector<16x64xbf16>
    %c0_25 = arith.constant 0 : index
    %c0_26 = arith.constant 0 : index
    %97 = vector.load %arg8[%c0_25, %c0_26] : memref<64x64xbf16, #tpu.memory_space<vmem>>, vector<64x64xbf16>
    %cst_27 = arith.constant dense<0.000000e+00> : vector<16x64xf32>
    %98 = tpu.matmul %96, %97, %cst_27 {dimension_numbers = #tpu.dot_dimension_numbers<[1], [0], [0], [1], [0, 0, 1, 1], [], []>} : vector<16x64xbf16>, vector<64x64xbf16>, vector<16x64xf32> -> vector<16x64xf32>
    %c0_28 = arith.constant 0 : index
    %c0_29 = arith.constant 0 : index
    %99 = vector.load %arg9[%c0_28, %c0_29] : memref<1x64xf32, #tpu.memory_space<vmem>>, vector<1x64xf32>
    %100 = vector.broadcast %99 : vector<1x64xf32> to vector<16x64xf32>
    %101 = arith.addf %98, %100 : vector<16x64xf32>
    %102 = arith.addf %39, %101 : vector<16x64xf32>
    %c0_30 = arith.constant 0 : index
    %c0_31 = arith.constant 0 : index
    %103 = vector.load %arg10[%c0_30, %c0_31] : memref<1x64xf32, #tpu.memory_space<vmem>>, vector<1x64xf32>
    %c0_32 = arith.constant 0 : index
    %c0_33 = arith.constant 0 : index
    %104 = vector.load %arg11[%c0_32, %c0_33] : memref<1x64xf32, #tpu.memory_space<vmem>>, vector<1x64xf32>
    %cst_34 = arith.constant dense<0.000000e+00> : vector<16xf32>
    %105 = vector.multi_reduction <add>, %102, %cst_34 [1] : vector<16x64xf32> to vector<16xf32>
    %106 = vector.shape_cast %105 : vector<16xf32> to vector<16x1xf32>
    %cst_35 = arith.constant 6.400000e+01 : f32
    %107 = vector.broadcast %cst_35 : f32 to vector<16x1xf32>
    %108 = arith.divf %106, %107 : vector<16x1xf32>
    %109 = vector.broadcast %108 : vector<16x1xf32> to vector<16x64xf32>
    %110 = arith.subf %102, %109 : vector<16x64xf32>
    %111 = vector.broadcast %108 : vector<16x1xf32> to vector<16x64xf32>
    %112 = arith.subf %102, %111 : vector<16x64xf32>
    %113 = arith.mulf %110, %112 : vector<16x64xf32>
    %cst_36 = arith.constant dense<0.000000e+00> : vector<16xf32>
    %114 = vector.multi_reduction <add>, %113, %cst_36 [1] : vector<16x64xf32> to vector<16xf32>
    %115 = vector.shape_cast %114 : vector<16xf32> to vector<16x1xf32>
    %cst_37 = arith.constant 6.400000e+01 : f32
    %116 = vector.broadcast %cst_37 : f32 to vector<16x1xf32>
    %117 = arith.divf %115, %116 : vector<16x1xf32>
    %118 = vector.broadcast %108 : vector<16x1xf32> to vector<16x64xf32>
    %119 = arith.subf %102, %118 : vector<16x64xf32>
    %cst_38 = arith.constant 9.99999996E-13 : f32
    %120 = vector.broadcast %cst_38 : f32 to vector<16x1xf32>
    %121 = arith.addf %117, %120 : vector<16x1xf32>
    %122 = math.rsqrt %121 : vector<16x1xf32>
    %123 = vector.broadcast %122 : vector<16x1xf32> to vector<16x64xf32>
    %124 = arith.mulf %119, %123 : vector<16x64xf32>
    %125 = vector.broadcast %103 : vector<1x64xf32> to vector<16x64xf32>
    %126 = arith.mulf %124, %125 : vector<16x64xf32>
    %127 = vector.broadcast %104 : vector<1x64xf32> to vector<16x64xf32>
    %128 = arith.addf %126, %127 : vector<16x64xf32>
    %129 = arith.truncf %128 : vector<16x64xf32> to vector<16x64xbf16>
    %c0_39 = arith.constant 0 : index
    %c0_40 = arith.constant 0 : index
    %130 = vector.load %arg12[%c0_39, %c0_40] : memref<64x128xbf16, #tpu.memory_space<vmem>>, vector<64x128xbf16>
    %cst_41 = arith.constant dense<0.000000e+00> : vector<16x128xf32>
    %131 = tpu.matmul %129, %130, %cst_41 {dimension_numbers = #tpu.dot_dimension_numbers<[1], [0], [0], [1], [0, 0, 1, 1], [], []>} : vector<16x64xbf16>, vector<64x128xbf16>, vector<16x128xf32> -> vector<16x128xf32>
    %c0_42 = arith.constant 0 : index
    %c0_43 = arith.constant 0 : index
    %132 = vector.load %arg13[%c0_42, %c0_43] : memref<1x128xf32, #tpu.memory_space<vmem>>, vector<1x128xf32>
    %133 = vector.broadcast %132 : vector<1x128xf32> to vector<16x128xf32>
    %134 = arith.addf %131, %133 : vector<16x128xf32>
    %135 = arith.mulf %134, %134 : vector<16x128xf32>
    %136 = arith.mulf %134, %135 : vector<16x128xf32>
    %cst_44 = arith.constant 4.471500e-02 : f32
    %137 = vector.broadcast %cst_44 : f32 to vector<16x128xf32>
    %138 = arith.mulf %137, %136 : vector<16x128xf32>
    %139 = arith.addf %134, %138 : vector<16x128xf32>
    %cst_45 = arith.constant 0.797884583 : f32
    %140 = vector.broadcast %cst_45 : f32 to vector<16x128xf32>
    %141 = arith.mulf %140, %139 : vector<16x128xf32>
    %142 = math.tanh %141 : vector<16x128xf32>
    %cst_46 = arith.constant 1.000000e+00 : f32
    %143 = vector.broadcast %cst_46 : f32 to vector<16x128xf32>
    %144 = arith.addf %143, %142 : vector<16x128xf32>
    %cst_47 = arith.constant 5.000000e-01 : f32
    %145 = vector.broadcast %cst_47 : f32 to vector<16x128xf32>
    %146 = arith.mulf %145, %144 : vector<16x128xf32>
    %147 = arith.mulf %134, %146 : vector<16x128xf32>
    %148 = arith.truncf %147 : vector<16x128xf32> to vector<16x128xbf16>
    %c0_48 = arith.constant 0 : index
    %c0_49 = arith.constant 0 : index
    %149 = vector.load %arg14[%c0_48, %c0_49] : memref<128x64xbf16, #tpu.memory_space<vmem>>, vector<128x64xbf16>
    %cst_50 = arith.constant dense<0.000000e+00> : vector<16x64xf32>
    %150 = tpu.matmul %148, %149, %cst_50 {dimension_numbers = #tpu.dot_dimension_numbers<[1], [0], [0], [1], [0, 0, 1, 1], [], []>} : vector<16x128xbf16>, vector<128x64xbf16>, vector<16x64xf32> -> vector<16x64xf32>
    %c0_51 = arith.constant 0 : index
    %c0_52 = arith.constant 0 : index
    %151 = vector.load %arg15[%c0_51, %c0_52] : memref<1x64xf32, #tpu.memory_space<vmem>>, vector<1x64xf32>
    %152 = vector.broadcast %151 : vector<1x64xf32> to vector<16x64xf32>
    %153 = arith.addf %150, %152 : vector<16x64xf32>
    %154 = arith.addf %128, %153 : vector<16x64xf32>
    %c0_53 = arith.constant 0 : index
    %c0_54 = arith.constant 0 : index
    %155 = vector.load %arg16[%c0_53, %c0_54] : memref<1x64xf32, #tpu.memory_space<vmem>>, vector<1x64xf32>
    %c0_55 = arith.constant 0 : index
    %c0_56 = arith.constant 0 : index
    %156 = vector.load %arg17[%c0_55, %c0_56] : memref<1x64xf32, #tpu.memory_space<vmem>>, vector<1x64xf32>
    %cst_57 = arith.constant dense<0.000000e+00> : vector<16xf32>
    %157 = vector.multi_reduction <add>, %154, %cst_57 [1] : vector<16x64xf32> to vector<16xf32>
    %158 = vector.shape_cast %157 : vector<16xf32> to vector<16x1xf32>
    %cst_58 = arith.constant 6.400000e+01 : f32
    %159 = vector.broadcast %cst_58 : f32 to vector<16x1xf32>
    %160 = arith.divf %158, %159 : vector<16x1xf32>
    %161 = vector.broadcast %160 : vector<16x1xf32> to vector<16x64xf32>
    %162 = arith.subf %154, %161 : vector<16x64xf32>
    %163 = vector.broadcast %160 : vector<16x1xf32> to vector<16x64xf32>
    %164 = arith.subf %154, %163 : vector<16x64xf32>
    %165 = arith.mulf %162, %164 : vector<16x64xf32>
    %cst_59 = arith.constant dense<0.000000e+00> : vector<16xf32>
    %166 = vector.multi_reduction <add>, %165, %cst_59 [1] : vector<16x64xf32> to vector<16xf32>
    %167 = vector.shape_cast %166 : vector<16xf32> to vector<16x1xf32>
    %cst_60 = arith.constant 6.400000e+01 : f32
    %168 = vector.broadcast %cst_60 : f32 to vector<16x1xf32>
    %169 = arith.divf %167, %168 : vector<16x1xf32>
    %170 = vector.broadcast %160 : vector<16x1xf32> to vector<16x64xf32>
    %171 = arith.subf %154, %170 : vector<16x64xf32>
    %cst_61 = arith.constant 9.99999996E-13 : f32
    %172 = vector.broadcast %cst_61 : f32 to vector<16x1xf32>
    %173 = arith.addf %169, %172 : vector<16x1xf32>
    %174 = math.rsqrt %173 : vector<16x1xf32>
    %175 = vector.broadcast %174 : vector<16x1xf32> to vector<16x64xf32>
    %176 = arith.mulf %171, %175 : vector<16x64xf32>
    %177 = vector.broadcast %155 : vector<1x64xf32> to vector<16x64xf32>
    %178 = arith.mulf %176, %177 : vector<16x64xf32>
    %179 = vector.broadcast %156 : vector<1x64xf32> to vector<16x64xf32>
    %180 = arith.addf %178, %179 : vector<16x64xf32>
    %181 = arith.truncf %180 : vector<16x64xf32> to vector<16x64xbf16>
    %c0_62 = arith.constant 0 : index
    %c0_63 = arith.constant 0 : index
    %182 = vector.load %arg18[%c0_62, %c0_63] : memref<64x192xbf16, #tpu.memory_space<vmem>>, vector<64x192xbf16>
    %cst_64 = arith.constant dense<0.000000e+00> : vector<16x192xf32>
    %183 = tpu.matmul %181, %182, %cst_64 {dimension_numbers = #tpu.dot_dimension_numbers<[1], [0], [0], [1], [0, 0, 1, 1], [], []>} : vector<16x64xbf16>, vector<64x192xbf16>, vector<16x192xf32> -> vector<16x192xf32>
    %c0_65 = arith.constant 0 : index
    %c0_66 = arith.constant 0 : index
    %184 = vector.load %arg19[%c0_65, %c0_66] : memref<1x192xf32, #tpu.memory_space<vmem>>, vector<1x192xf32>
    %185 = vector.broadcast %184 : vector<1x192xf32> to vector<16x192xf32>
    %186 = arith.addf %183, %185 : vector<16x192xf32>
    %187 = vector.shape_cast %186 : vector<16x192xf32> to vector<2x8x192xf32>
    %188 = vector.extract_strided_slice %187 {offsets = [0, 0, 0], sizes = [2, 8, 16], strides = [1, 1, 1]} : vector<2x8x192xf32> to vector<2x8x16xf32>
    %189 = vector.extract_strided_slice %187 {offsets = [0, 0, 64], sizes = [2, 8, 16], strides = [1, 1, 1]} : vector<2x8x192xf32> to vector<2x8x16xf32>
    %190 = vector.extract_strided_slice %187 {offsets = [0, 0, 128], sizes = [2, 8, 16], strides = [1, 1, 1]} : vector<2x8x192xf32> to vector<2x8x16xf32>
    %191 = vector.extract_strided_slice %187 {offsets = [0, 0, 16], sizes = [2, 8, 16], strides = [1, 1, 1]} : vector<2x8x192xf32> to vector<2x8x16xf32>
    %192 = vector.extract_strided_slice %187 {offsets = [0, 0, 80], sizes = [2, 8, 16], strides = [1, 1, 1]} : vector<2x8x192xf32> to vector<2x8x16xf32>
    %193 = vector.extract_strided_slice %187 {offsets = [0, 0, 144], sizes = [2, 8, 16], strides = [1, 1, 1]} : vector<2x8x192xf32> to vector<2x8x16xf32>
    %194 = vector.extract_strided_slice %187 {offsets = [0, 0, 32], sizes = [2, 8, 16], strides = [1, 1, 1]} : vector<2x8x192xf32> to vector<2x8x16xf32>
    %195 = vector.extract_strided_slice %187 {offsets = [0, 0, 96], sizes = [2, 8, 16], strides = [1, 1, 1]} : vector<2x8x192xf32> to vector<2x8x16xf32>
    %196 = vector.extract_strided_slice %187 {offsets = [0, 0, 160], sizes = [2, 8, 16], strides = [1, 1, 1]} : vector<2x8x192xf32> to vector<2x8x16xf32>
    %197 = vector.extract_strided_slice %187 {offsets = [0, 0, 48], sizes = [2, 8, 16], strides = [1, 1, 1]} : vector<2x8x192xf32> to vector<2x8x16xf32>
    %198 = vector.extract_strided_slice %187 {offsets = [0, 0, 112], sizes = [2, 8, 16], strides = [1, 1, 1]} : vector<2x8x192xf32> to vector<2x8x16xf32>
    %199 = vector.extract_strided_slice %187 {offsets = [0, 0, 176], sizes = [2, 8, 16], strides = [1, 1, 1]} : vector<2x8x192xf32> to vector<2x8x16xf32>
    %200 = tpu.concatenate %188, %191, %194, %197 in 0 : vector<2x8x16xf32>, vector<2x8x16xf32>, vector<2x8x16xf32>, vector<2x8x16xf32> -> vector<8x8x16xf32>
    %201 = arith.truncf %200 : vector<8x8x16xf32> to vector<8x8x16xbf16>
    %202 = tpu.concatenate %189, %192, %195, %198 in 0 : vector<2x8x16xf32>, vector<2x8x16xf32>, vector<2x8x16xf32>, vector<2x8x16xf32> -> vector<8x8x16xf32>
    %203 = arith.truncf %202 : vector<8x8x16xf32> to vector<8x8x16xbf16>
    %204 = tpu.concatenate %190, %193, %196, %199 in 0 : vector<2x8x16xf32>, vector<2x8x16xf32>, vector<2x8x16xf32>, vector<2x8x16xf32> -> vector<8x8x16xf32>
    %205 = arith.truncf %204 : vector<8x8x16xf32> to vector<8x8x16xbf16>
    "tpu.trace_start"() <{level = 10 : i32, message = "bqd,bkd->bqk"}> : () -> ()
    %cst_67 = arith.constant dense<0.000000e+00> : vector<8x8x8xf32>
    %206 = tpu.matmul %201, %203, %cst_67 {dimension_numbers = #tpu.dot_dimension_numbers<[2], [2], [1], [1], [0, 0, 0, 1, 1, 1], [0], [0]>} : vector<8x8x16xbf16>, vector<8x8x16xbf16>, vector<8x8x8xf32> -> vector<8x8x8xf32>
    "tpu.trace_stop"() : () -> ()
    %207 = arith.addf %206, %51 : vector<8x8x8xf32>
    %208 = math.exp %207 : vector<8x8x8xf32>
    %cst_68 = arith.constant dense<0.000000e+00> : vector<8x8xf32>
    %209 = vector.multi_reduction <add>, %208, %cst_68 [2] : vector<8x8x8xf32> to vector<8x8xf32>
    %210 = vector.shape_cast %209 : vector<8x8xf32> to vector<8x8x1xf32>
    %211 = tpu.reciprocal %210 {approx = true} : vector<8x8x1xf32> -> vector<8x8x1xf32>
    %212 = vector.broadcast %211 : vector<8x8x1xf32> to vector<8x8x8xf32>
    %213 = arith.mulf %208, %212 : vector<8x8x8xf32>
    %214 = arith.truncf %213 : vector<8x8x8xf32> to vector<8x8x8xbf16>
    "tpu.trace_start"() <{level = 10 : i32, message = "bqk,bkd->bqd"}> : () -> ()
    %cst_69 = arith.constant dense<0.000000e+00> : vector<8x8x16xf32>
    %215 = tpu.matmul %214, %205, %cst_69 {dimension_numbers = #tpu.dot_dimension_numbers<[2], [1], [1], [2], [0, 0, 0, 1, 1, 2], [0], [0]>} : vector<8x8x8xbf16>, vector<8x8x16xbf16>, vector<8x8x16xf32> -> vector<8x8x16xf32>
    "tpu.trace_stop"() : () -> ()
    %216 = vector.extract_strided_slice %215 {offsets = [0, 0, 0], sizes = [2, 8, 16], strides = [1, 1, 1]} : vector<8x8x16xf32> to vector<2x8x16xf32>
    %217 = vector.shape_cast %216 : vector<2x8x16xf32> to vector<16x16xf32>
    %218 = vector.extract_strided_slice %215 {offsets = [2, 0, 0], sizes = [2, 8, 16], strides = [1, 1, 1]} : vector<8x8x16xf32> to vector<2x8x16xf32>
    %219 = vector.shape_cast %218 : vector<2x8x16xf32> to vector<16x16xf32>
    %220 = vector.extract_strided_slice %215 {offsets = [4, 0, 0], sizes = [2, 8, 16], strides = [1, 1, 1]} : vector<8x8x16xf32> to vector<2x8x16xf32>
    %221 = vector.shape_cast %220 : vector<2x8x16xf32> to vector<16x16xf32>
    %222 = vector.extract_strided_slice %215 {offsets = [6, 0, 0], sizes = [2, 8, 16], strides = [1, 1, 1]} : vector<8x8x16xf32> to vector<2x8x16xf32>
    %223 = vector.shape_cast %222 : vector<2x8x16xf32> to vector<16x16xf32>
    %224 = tpu.concatenate %217, %219, %221, %223 in 1 : vector<16x16xf32>, vector<16x16xf32>, vector<16x16xf32>, vector<16x16xf32> -> vector<16x64xf32>
    %225 = arith.truncf %224 : vector<16x64xf32> to vector<16x64xbf16>
    %c0_70 = arith.constant 0 : index
    %c0_71 = arith.constant 0 : index
    %226 = vector.load %arg20[%c0_70, %c0_71] : memref<64x64xbf16, #tpu.memory_space<vmem>>, vector<64x64xbf16>
    %cst_72 = arith.constant dense<0.000000e+00> : vector<16x64xf32>
    %227 = tpu.matmul %225, %226, %cst_72 {dimension_numbers = #tpu.dot_dimension_numbers<[1], [0], [0], [1], [0, 0, 1, 1], [], []>} : vector<16x64xbf16>, vector<64x64xbf16>, vector<16x64xf32> -> vector<16x64xf32>
    %c0_73 = arith.constant 0 : index
    %c0_74 = arith.constant 0 : index
    %228 = vector.load %arg21[%c0_73, %c0_74] : memref<1x64xf32, #tpu.memory_space<vmem>>, vector<1x64xf32>
    %229 = vector.broadcast %228 : vector<1x64xf32> to vector<16x64xf32>
    %230 = arith.addf %227, %229 : vector<16x64xf32>
    %231 = arith.addf %180, %230 : vector<16x64xf32>
    %c0_75 = arith.constant 0 : index
    %c0_76 = arith.constant 0 : index
    %232 = vector.load %arg22[%c0_75, %c0_76] : memref<1x64xf32, #tpu.memory_space<vmem>>, vector<1x64xf32>
    %c0_77 = arith.constant 0 : index
    %c0_78 = arith.constant 0 : index
    %233 = vector.load %arg23[%c0_77, %c0_78] : memref<1x64xf32, #tpu.memory_space<vmem>>, vector<1x64xf32>
    %cst_79 = arith.constant dense<0.000000e+00> : vector<16xf32>
    %234 = vector.multi_reduction <add>, %231, %cst_79 [1] : vector<16x64xf32> to vector<16xf32>
    %235 = vector.shape_cast %234 : vector<16xf32> to vector<16x1xf32>
    %cst_80 = arith.constant 6.400000e+01 : f32
    %236 = vector.broadcast %cst_80 : f32 to vector<16x1xf32>
    %237 = arith.divf %235, %236 : vector<16x1xf32>
    %238 = vector.broadcast %237 : vector<16x1xf32> to vector<16x64xf32>
    %239 = arith.subf %231, %238 : vector<16x64xf32>
    %240 = vector.broadcast %237 : vector<16x1xf32> to vector<16x64xf32>
    %241 = arith.subf %231, %240 : vector<16x64xf32>
    %242 = arith.mulf %239, %241 : vector<16x64xf32>
    %cst_81 = arith.constant dense<0.000000e+00> : vector<16xf32>
    %243 = vector.multi_reduction <add>, %242, %cst_81 [1] : vector<16x64xf32> to vector<16xf32>
    %244 = vector.shape_cast %243 : vector<16xf32> to vector<16x1xf32>
    %cst_82 = arith.constant 6.400000e+01 : f32
    %245 = vector.broadcast %cst_82 : f32 to vector<16x1xf32>
    %246 = arith.divf %244, %245 : vector<16x1xf32>
    %247 = vector.broadcast %237 : vector<16x1xf32> to vector<16x64xf32>
    %248 = arith.subf %231, %247 : vector<16x64xf32>
    %cst_83 = arith.constant 9.99999996E-13 : f32
    %249 = vector.broadcast %cst_83 : f32 to vector<16x1xf32>
    %250 = arith.addf %246, %249 : vector<16x1xf32>
    %251 = math.rsqrt %250 : vector<16x1xf32>
    %252 = vector.broadcast %251 : vector<16x1xf32> to vector<16x64xf32>
    %253 = arith.mulf %248, %252 : vector<16x64xf32>
    %254 = vector.broadcast %232 : vector<1x64xf32> to vector<16x64xf32>
    %255 = arith.mulf %253, %254 : vector<16x64xf32>
    %256 = vector.broadcast %233 : vector<1x64xf32> to vector<16x64xf32>
    %257 = arith.addf %255, %256 : vector<16x64xf32>
    %258 = arith.truncf %257 : vector<16x64xf32> to vector<16x64xbf16>
    %c0_84 = arith.constant 0 : index
    %c0_85 = arith.constant 0 : index
    %259 = vector.load %arg24[%c0_84, %c0_85] : memref<64x128xbf16, #tpu.memory_space<vmem>>, vector<64x128xbf16>
    %cst_86 = arith.constant dense<0.000000e+00> : vector<16x128xf32>
    %260 = tpu.matmul %258, %259, %cst_86 {dimension_numbers = #tpu.dot_dimension_numbers<[1], [0], [0], [1], [0, 0, 1, 1], [], []>} : vector<16x64xbf16>, vector<64x128xbf16>, vector<16x128xf32> -> vector<16x128xf32>
    %c0_87 = arith.constant 0 : index
    %c0_88 = arith.constant 0 : index
    %261 = vector.load %arg25[%c0_87, %c0_88] : memref<1x128xf32, #tpu.memory_space<vmem>>, vector<1x128xf32>
    %262 = vector.broadcast %261 : vector<1x128xf32> to vector<16x128xf32>
    %263 = arith.addf %260, %262 : vector<16x128xf32>
    %264 = arith.mulf %263, %263 : vector<16x128xf32>
    %265 = arith.mulf %263, %264 : vector<16x128xf32>
    %cst_89 = arith.constant 4.471500e-02 : f32
    %266 = vector.broadcast %cst_89 : f32 to vector<16x128xf32>
    %267 = arith.mulf %266, %265 : vector<16x128xf32>
    %268 = arith.addf %263, %267 : vector<16x128xf32>
    %cst_90 = arith.constant 0.797884583 : f32
    %269 = vector.broadcast %cst_90 : f32 to vector<16x128xf32>
    %270 = arith.mulf %269, %268 : vector<16x128xf32>
    %271 = math.tanh %270 : vector<16x128xf32>
    %cst_91 = arith.constant 1.000000e+00 : f32
    %272 = vector.broadcast %cst_91 : f32 to vector<16x128xf32>
    %273 = arith.addf %272, %271 : vector<16x128xf32>
    %cst_92 = arith.constant 5.000000e-01 : f32
    %274 = vector.broadcast %cst_92 : f32 to vector<16x128xf32>
    %275 = arith.mulf %274, %273 : vector<16x128xf32>
    %276 = arith.mulf %263, %275 : vector<16x128xf32>
    %277 = arith.truncf %276 : vector<16x128xf32> to vector<16x128xbf16>
    %c0_93 = arith.constant 0 : index
    %c0_94 = arith.constant 0 : index
    %278 = vector.load %arg26[%c0_93, %c0_94] : memref<128x64xbf16, #tpu.memory_space<vmem>>, vector<128x64xbf16>
    %cst_95 = arith.constant dense<0.000000e+00> : vector<16x64xf32>
    %279 = tpu.matmul %277, %278, %cst_95 {dimension_numbers = #tpu.dot_dimension_numbers<[1], [0], [0], [1], [0, 0, 1, 1], [], []>} : vector<16x128xbf16>, vector<128x64xbf16>, vector<16x64xf32> -> vector<16x64xf32>
    %c0_96 = arith.constant 0 : index
    %c0_97 = arith.constant 0 : index
    %280 = vector.load %arg27[%c0_96, %c0_97] : memref<1x64xf32, #tpu.memory_space<vmem>>, vector<1x64xf32>
    %281 = vector.broadcast %280 : vector<1x64xf32> to vector<16x64xf32>
    %282 = arith.addf %279, %281 : vector<16x64xf32>
    %283 = arith.addf %257, %282 : vector<16x64xf32>
    %c0_98 = arith.constant 0 : index
    %c0_99 = arith.constant 0 : index
    %284 = vector.load %arg28[%c0_98, %c0_99] : memref<1x64xf32, #tpu.memory_space<vmem>>, vector<1x64xf32>
    %c0_100 = arith.constant 0 : index
    %c0_101 = arith.constant 0 : index
    %285 = vector.load %arg29[%c0_100, %c0_101] : memref<1x64xf32, #tpu.memory_space<vmem>>, vector<1x64xf32>
    %cst_102 = arith.constant dense<0.000000e+00> : vector<16xf32>
    %286 = vector.multi_reduction <add>, %283, %cst_102 [1] : vector<16x64xf32> to vector<16xf32>
    %287 = vector.shape_cast %286 : vector<16xf32> to vector<16x1xf32>
    %cst_103 = arith.constant 6.400000e+01 : f32
    %288 = vector.broadcast %cst_103 : f32 to vector<16x1xf32>
    %289 = arith.divf %287, %288 : vector<16x1xf32>
    %290 = vector.broadcast %289 : vector<16x1xf32> to vector<16x64xf32>
    %291 = arith.subf %283, %290 : vector<16x64xf32>
    %292 = vector.broadcast %289 : vector<16x1xf32> to vector<16x64xf32>
    %293 = arith.subf %283, %292 : vector<16x64xf32>
    %294 = arith.mulf %291, %293 : vector<16x64xf32>
    %cst_104 = arith.constant dense<0.000000e+00> : vector<16xf32>
    %295 = vector.multi_reduction <add>, %294, %cst_104 [1] : vector<16x64xf32> to vector<16xf32>
    %296 = vector.shape_cast %295 : vector<16xf32> to vector<16x1xf32>
    %cst_105 = arith.constant 6.400000e+01 : f32
    %297 = vector.broadcast %cst_105 : f32 to vector<16x1xf32>
    %298 = arith.divf %296, %297 : vector<16x1xf32>
    %299 = vector.broadcast %289 : vector<16x1xf32> to vector<16x64xf32>
    %300 = arith.subf %283, %299 : vector<16x64xf32>
    %cst_106 = arith.constant 9.99999996E-13 : f32
    %301 = vector.broadcast %cst_106 : f32 to vector<16x1xf32>
    %302 = arith.addf %298, %301 : vector<16x1xf32>
    %303 = math.rsqrt %302 : vector<16x1xf32>
    %304 = vector.broadcast %303 : vector<16x1xf32> to vector<16x64xf32>
    %305 = arith.mulf %300, %304 : vector<16x64xf32>
    %306 = vector.broadcast %284 : vector<1x64xf32> to vector<16x64xf32>
    %307 = arith.mulf %305, %306 : vector<16x64xf32>
    %308 = vector.broadcast %285 : vector<1x64xf32> to vector<16x64xf32>
    %309 = arith.addf %307, %308 : vector<16x64xf32>
    %310 = vector.shape_cast %309 : vector<16x64xf32> to vector<2x8x64xf32>
    %311 = vector.extract_strided_slice %310 {offsets = [0, 0, 0], sizes = [2, 1, 64], strides = [1, 1, 1]} : vector<2x8x64xf32> to vector<2x1x64xf32>
    %312 = vector.shape_cast %311 : vector<2x1x64xf32> to vector<2x64xf32>
    %313 = arith.truncf %312 : vector<2x64xf32> to vector<2x64xbf16>
    %c0_107 = arith.constant 0 : index
    %c0_108 = arith.constant 0 : index
    %314 = vector.load %arg30[%c0_107, %c0_108] : memref<64x64xbf16, #tpu.memory_space<vmem>>, vector<64x64xbf16>
    %cst_109 = arith.constant dense<0.000000e+00> : vector<2x64xf32>
    %315 = tpu.matmul %313, %314, %cst_109 {dimension_numbers = #tpu.dot_dimension_numbers<[1], [0], [0], [1], [0, 0, 1, 1], [], []>} : vector<2x64xbf16>, vector<64x64xbf16>, vector<2x64xf32> -> vector<2x64xf32>
    %c0_110 = arith.constant 0 : index
    %c0_111 = arith.constant 0 : index
    %316 = vector.load %arg31[%c0_110, %c0_111] : memref<1x64xf32, #tpu.memory_space<vmem>>, vector<1x64xf32>
    %317 = vector.broadcast %316 : vector<1x64xf32> to vector<2x64xf32>
    %318 = arith.addf %315, %317 : vector<2x64xf32>
    %319 = math.tanh %318 : vector<2x64xf32>
    %320 = arith.truncf %319 : vector<2x64xf32> to vector<2x64xbf16>
    %c0_112 = arith.constant 0 : index
    %c0_113 = arith.constant 0 : index
    %321 = vector.load %arg32[%c0_112, %c0_113] : memref<64x512xbf16, #tpu.memory_space<vmem>>, vector<64x512xbf16>
    %cst_114 = arith.constant dense<0.000000e+00> : vector<2x512xf32>
    %322 = tpu.matmul %320, %321, %cst_114 {dimension_numbers = #tpu.dot_dimension_numbers<[1], [0], [0], [1], [0, 0, 1, 1], [], []>} : vector<2x64xbf16>, vector<64x512xbf16>, vector<2x512xf32> -> vector<2x512xf32>
    %c0_115 = arith.constant 0 : index
    %c0_116 = arith.constant 0 : index
    %323 = vector.load %arg33[%c0_115, %c0_116] : memref<1x512xf32, #tpu.memory_space<vmem>>, vector<1x512xf32>
    %324 = vector.broadcast %323 : vector<1x512xf32> to vector<2x512xf32>
    %325 = arith.addf %322, %324 : vector<2x512xf32>
    %cst_117 = arith.constant 0.000000e+00 : f32
    %326 = vector.broadcast %cst_117 : f32 to vector<2x512xf32>
    %327 = arith.maximumf %325, %326 : vector<2x512xf32>
    %328 = arith.truncf %327 : vector<2x512xf32> to vector<2x512xbf16>
    %c0_118 = arith.constant 0 : index
    %c0_119 = arith.constant 0 : index
    %329 = vector.load %arg34[%c0_118, %c0_119] : memref<512x256xbf16, #tpu.memory_space<vmem>>, vector<512x256xbf16>
    %cst_120 = arith.constant dense<0.000000e+00> : vector<2x256xf32>
    %330 = tpu.matmul %328, %329, %cst_120 {dimension_numbers = #tpu.dot_dimension_numbers<[1], [0], [0], [1], [0, 0, 1, 1], [], []>} : vector<2x512xbf16>, vector<512x256xbf16>, vector<2x256xf32> -> vector<2x256xf32>
    %c0_121 = arith.constant 0 : index
    %c0_122 = arith.constant 0 : index
    %331 = vector.load %arg35[%c0_121, %c0_122] : memref<1x256xf32, #tpu.memory_space<vmem>>, vector<1x256xf32>
    %332 = vector.broadcast %331 : vector<1x256xf32> to vector<2x256xf32>
    %333 = arith.addf %330, %332 : vector<2x256xf32>
    %cst_123 = arith.constant 0.000000e+00 : f32
    %334 = vector.broadcast %cst_123 : f32 to vector<2x256xf32>
    %335 = arith.maximumf %333, %334 : vector<2x256xf32>
    %336 = arith.truncf %335 : vector<2x256xf32> to vector<2x256xbf16>
    %c0_124 = arith.constant 0 : index
    %c0_125 = arith.constant 0 : index
    %337 = vector.load %arg36[%c0_124, %c0_125] : memref<256x128xbf16, #tpu.memory_space<vmem>>, vector<256x128xbf16>
    %cst_126 = arith.constant dense<0.000000e+00> : vector<2x128xf32>
    %338 = tpu.matmul %336, %337, %cst_126 {dimension_numbers = #tpu.dot_dimension_numbers<[1], [0], [0], [1], [0, 0, 1, 1], [], []>} : vector<2x256xbf16>, vector<256x128xbf16>, vector<2x128xf32> -> vector<2x128xf32>
    %c0_127 = arith.constant 0 : index
    %c0_128 = arith.constant 0 : index
    %339 = vector.load %arg37[%c0_127, %c0_128] : memref<1x128xf32, #tpu.memory_space<vmem>>, vector<1x128xf32>
    %340 = vector.broadcast %339 : vector<1x128xf32> to vector<2x128xf32>
    %341 = arith.addf %338, %340 : vector<2x128xf32>
    %c0_129 = arith.constant 0 : index
    %c0_130 = arith.constant 0 : index
    %342 = vector.load %arg38[%c0_129, %c0_130] : memref<2x128xf32, #tpu.memory_space<vmem>>, vector<2x128xf32>
    tpu.vector_store %arg38[%c0_129, %c0_130], %341 {strides = array<i32>} : memref<2x128xf32, #tpu.memory_space<vmem>>, vector<2x128xf32>,
    return
  }
}

</mosaic_0001>

<bundles_post_ra>
// kernel: bert_classifier_forward.1
= control target key start
LH: loop header
LB: loop body
LE: loop exit
PB: predicated region body
PF: predicated region fallthrough
CT: control target
= control target key end

     0   :  { %s6282_s6 = smov 1   ;;  %s6283_s10 = smov 2   ;;  %s7258_s0 = inlined_call_operand.smem [shape: u32[39], index: -1, kind: input, shape index: {}] }
   0x1   :  { %s6369_s5 = sld [smem:[%s7258_s0]]   ;;  %s6284_s14 = smov 3  }
   0x2   :  { %s6374_s9 = sld [smem:[%s7258_s0 + %s6282_s6]]   ;;  %s6285_s18 = smov 4  }
   0x3   :  { %s6379_s13 = sld [smem:[%s7258_s0 + %s6283_s10]]   ;;  %s6286_s22 = smov 5  }
   0x4   :  { %s6384_s17 = sld [smem:[%s7258_s0 + %s6284_s14]]   ;;  %s6287_s26 = smov 6  }
   0x5   :  { %s6389_s21 = sld [smem:[%s7258_s0 + %s6285_s18]]   ;;  %s6288_s30 = smov 7  }
   0x6   :  { %s6394_s25 = sld [smem:[%s7258_s0 + %s6286_s22]]   ;;  %s6289_s4 = smov 8  }
   0x7   :  { %7275 = sst [smem:[#allocation59_spill]] %s6369_s5  ;;  %s6290_s10 = smov 9  }
   0x8   :  { %7276 = sst [smem:[#allocation60_spill]] %s6374_s9  ;;  %s6291_s15 = smov 10  }
   0x9   :  { %7277 = sst [smem:[#allocation61_spill]] %s6379_s13  ;;  %s6292_s20 = smov 11  }
   0xa   :  { %7278 = sst [smem:[#allocation62_spill]] %s6384_s17  ;;  %s6294_s1 = smov 13  }
   0xb   :  { %s6399_s29 = sld [smem:[%s7258_s0 + %s6287_s26]]   ;;  %s6293_s26 = smov 12  }
   0xc   :  { %s6404_s3 = sld [smem:[%s7258_s0 + %s6288_s30]]   ;;  %s6295_s7 = smov 14  }
   0xd   :  { %s6409_s8 = sld [smem:[%s7258_s0 + %s6289_s4]]   ;;  %s6297_s22 = smov 16  }
   0xe   :  { %s6414_s14 = sld [smem:[%s7258_s0 + %s6290_s10]]   ;;  %s6298_s28 = smov 17  }
   0xf   :  { %s6419_s19 = sld [smem:[%s7258_s0 + %s6291_s15]]   ;;  %s6296_s15 = smov 15  }
  0x10   :  { %s6424_s24 = sld [smem:[%s7258_s0 + %s6292_s20]]  }
  0x11   :  { %7279 = sst [smem:[#allocation63_spill]] %s6399_s29 }
  0x12   :  { %s6429_s30 = sld [smem:[%s7258_s0 + %s6293_s26]]  }
  0x13   :  { %s6434_s6 = sld [smem:[%s7258_s0 + %s6294_s1]]  }
  0x14   :  { %s6439_s12 = sld [smem:[%s7258_s0 + %s6295_s7]]   ;;  %s6299_s7 = smov 18  }
  0x15   :  { %s6444_s20 = sld [smem:[%s7258_s0 + %s6296_s15]]   ;;  %s6300_s15 = smov 19  }
  0x16   :  { %7280 = sst [smem:[#allocation64_spill]] %s6424_s24 }
  0x17   :  { %s6449_s27 = sld [smem:[%s7258_s0 + %s6297_s22]]   ;;  %s6301_s22 = smov 20  }
  0x18   :  { %s6454_s4 = sld [smem:[%s7258_s0 + %s6298_s28]]   ;;  %s6302_s28 = smov 21  }
  0x19   :  { %7281 = sst [smem:[#allocation65_spill]] %s6434_s6 }
  0x1a   :  { %7282 = sst [smem:[#allocation66_spill]] %s6439_s12 }
  0x1b   :  { %s6459_s12 = sld [smem:[%s7258_s0 + %s6299_s7]]   ;;  %s6303_s7 = smov 22  }
  0x1c   :  { %s6464_s9 = sld [smem:[%s7258_s0 + %s6300_s15]]   ;;  %s6304_s15 = smov 23  }
  0x1d   :  { %7283 = sst [smem:[#allocation67_spill]] %s6449_s27 }
  0x1e   :  { %s6469_s29 = sld [smem:[%s7258_s0 + %s6301_s22]]   ;;  %s6305_s22 = smov 24  }
  0x1f   :  { %s6474_s17 = sld [smem:[%s7258_s0 + %s6302_s28]]   ;;  %s6306_s28 = smov 25  }
  0x20   :  { %s6489_s13 = sld [smem:[%s7258_s0 + %s6305_s22]]   ;;  %s6309_s22 = smov 28  }
  0x21   :  { %7284 = sst [smem:[#allocation68_spill]] %s6459_s12 }
  0x22   :  { %7285 = sst [smem:[#allocation69_spill]] %s6464_s9 }
  0x23   :  { %s6479_s12 = sld [smem:[%s7258_s0 + %s6303_s7]]   ;;  %s6307_s7 = smov 26  }
  0x24   :  { %7286 = sst [smem:[#allocation70_spill]] %s6469_s29 }
  0x25   :  { %s6484_s9 = sld [smem:[%s7258_s0 + %s6304_s15]]   ;;  %s6308_s15 = smov 27  }
  0x26   :  { %7288 = sst [smem:[#allocation72_spill]] %s6489_s13 }
  0x27   :  { %s6494_s5 = sld [smem:[%s7258_s0 + %s6306_s28]]   ;;  %s6310_s28 = smov 29  }
  0x28   :  { %s6504_s29 = sld [smem:[%s7258_s0 + %s6308_s15]]   ;;  %s6312_s15 = smov 31  }
  0x29   :  { %7287 = sst [smem:[#allocation71_spill]] %s6479_s12 }
  0x2a   :  { %s6499_s12 = sld [smem:[%s7258_s0 + %s6307_s7]]   ;;  %s6311_s7 = smov 30  }
  0x2b   :  { %s6509_s13 = sld [smem:[%s7258_s0 + %s6309_s22]]   ;;  %s6313_s22 = smov 32  }
  0x2c   :  { %s6514_s27 = sld [smem:[%s7258_s0 + %s6310_s28]]   ;;  %s6314_s28 = smov 33  }
  0x2d   :  { %s6534_s6 = sld [smem:[%s7258_s0 + %s6314_s28]]   ;;  %s6318_s28 = smov 37  }
  0x2e   :  { %7290 = sst [smem:[#allocation74_spill]] %s6504_s29 }
  0x2f   :  { %s6524_s29 = sld [smem:[%s7258_s0 + %s6312_s15]]   ;;  %s6316_s15 = smov 35  }
  0x30   :  { %7289 = sst [smem:[#allocation73_spill]] %s6499_s12 }
  0x31   :  { %7291 = sst [smem:[#allocation75_spill]] %s6509_s13 }
  0x32   :  { %s6519_s12 = sld [smem:[%s7258_s0 + %s6311_s7]]   ;;  %s6315_s7 = smov 34  }
  0x33   :  { %s6529_s13 = sld [smem:[%s7258_s0 + %s6313_s22]]   ;;  %s6317_s22 = smov 36  }
  0x34   :  { %s6554_s24 = sld [smem:[%s7258_s0 + %s6318_s28]]  }
  0x35   :  { %7293 = sst [smem:[#allocation77_spill]] %s6524_s29 }
  0x36   :  { %s6544_s29 = sld [smem:[%s7258_s0 + %s6316_s15]]  }
  0x38   :  { %7292 = sst [smem:[#allocation76_spill]] %s6519_s12 }
  0x39   :  { %7294 = sst [smem:[#allocation78_spill]] %s6529_s13 }
  0x3a   :  { %s6539_s12 = sld [smem:[%s7258_s0 + %s6315_s7]]   ;;  %s6319_s7 = smov 38  }
  0x3b   :  { %s6549_s13 = sld [smem:[%s7258_s0 + %s6317_s22]]  }
  0x40   :  { %7295 = sst [smem:[#allocation79_spill]] %s6539_s12 }
  0x41   :  { %s6559_s12 = sld [smem:[%s7258_s0 + %s6319_s7]]  }
  0x42   :  { %82 = vsyncpa [#allocation3], 0 }
  0x43   :  { %83 = vsyncpa [#allocation6], 0 }
  0x44   :  { %84 = vsyncpa [#allocation9], 0 }
  0x45   :  { %85 = vsyncpa [#allocation12], 0 }
  0x46   :  { %86 = vsyncpa [#allocation15], 0 }
  0x47   :  { %87 = vsyncpa [#allocation18], 0 }
  0x48   :  { %88 = vsyncpa [#allocation21], 0 }
  0x49   :  { %89 = vsyncpa [#allocation24], 0 }
  0x4a   :  { %90 = vsyncpa [#allocation27], 0 }
  0x4b   :  { %91 = vsyncpa [#allocation30], 0 }
  0x4c   :  { %92 = vsyncpa [#allocation33], 0 }
  0x4d   :  { %93 = vsyncpa [#allocation36], 0 }
  0x4e   :  { %94 = vsyncpa [#allocation39], 0 }
  0x4f   :  { %95 = vsyncpa [#allocation42], 0 }
  0x50   :  { %96 = vsyncpa [#allocation4], 0  ;;  %s6320_s0 = smov [#allocation5]   ;;  %s6321_s16 = smov [#allocation8]  }
  0x51   :  { %s121_s15 = sshll.u32 %s6320_s0, 4  ;;  %s142_s18 = sshll.u32 %s6321_s16, 4  ;;  %s122_s15 = int_to_ptr.vmem [resolvable:$true] %s121_s15  ;;  %s6561_s18 = int_to_ptr.vmem [resolvable:$true] %s142_s18 }
  0x52   :  { %s5658_s22 = scalar_lea.hbm %s6394_s25, 16 }
  0x53   :  { %p5659_p0 = scmp.ne.s32.totalorder %s6394_s25, %s5658_s22  ;;  %p5662_p1 = scmp.lt.u32.totalorder %s5658_s22, %s6394_s25 }
  0x55   :  { %p5664_p2 = pnand %p5662_p1, %p5659_p0 }
  0x57   :  { %5667 = shalt.err (!%p5664_p2)
}
  0x58   :  { %s5668_s23 = scalar_lea.vmem %s122_s15, 16  ;;  %s5672_s26 = scalar_lea.vmem %s122_s15, 32 }
  0x59   :  { %p5669_p3 = scmp.ne.s32.totalorder %s122_s15, %s5668_s23  ;;  %p5673_p4 = scmp.lt.s32.totalorder %s122_s15, %s122_s15 }
  0x5a   :  { %p5674_p5 = scmp.lt.s32.totalorder %s5672_s26, %s5668_s23 }
  0x5c   :  { %p5675_p6 = por %p5674_p5, %p5673_p4 }
  0x5e   :  { %p5676_p7 = pnand %p5675_p6, %p5669_p3 }
  0x60   :  { %5679 = shalt.err (!%p5676_p7)
}
  0x61   :  { %124 = dma.hbm_to_vmem [thread:$0]  %s6394_s25, 16, %s122_s15, [#allocation6]  }
  0x62   :  { %s5680_s28 = scalar_lea.hbm %s6409_s8, 512 }
  0x63   :  { %p5681_p8 = scmp.ne.s32.totalorder %s6409_s8, %s5680_s28  ;;  %p5684_p9 = scmp.lt.u32.totalorder %s5680_s28, %s6409_s8 }
  0x65   :  { %p5686_p10 = pnand %p5684_p9, %p5681_p8 }
  0x67   :  { %5689 = shalt.err (!%p5686_p10)
}
  0x68   :  { %s5690_s1 = scalar_lea.vmem %s6561_s18, 512  ;;  %p5695_p12 = scmp.lt.s32.totalorder %s6561_s18, %s6561_s18 }
  0x69   :  { %p5691_p11 = scmp.ne.s32.totalorder %s6561_s18, %s5690_s1  ;;  %p5696_p13 = scmp.lt.s32.totalorder %s5690_s1, %s5690_s1 }
  0x6b   :  { %p5697_p0 = por %p5696_p13, %p5695_p12 }
  0x6d   :  { %p5698_p1 = pnand %p5697_p0, %p5691_p11 }
  0x6f   :  { %5701 = shalt.err (!%p5698_p1)
}
  0x70   :  { %s6322_s2 = smov 64   ;;  %s6323_s25 = smov 4  }
  0x71   :  { %148 = dma.hbm_to_vmem [thread:$0]  %s6409_s8, 512, %s6561_s18, [#allocation9], %s6322_s2, %s6322_s2, %s6323_s25  }
  0x72   :  { %s6324_s7 = smov [#allocation11]   ;;  %s6325_s11 = smov [#allocation14]  }
  0x73   :  { %s165_s10 = sshll.u32 %s6324_s7, 4  ;;  %s184_s0 = sshll.u32 %s6325_s11, 4  ;;  %s166_s10 = int_to_ptr.vmem [resolvable:$true] %s165_s10  ;;  %s6579_s0 = int_to_ptr.vmem [resolvable:$true] %s184_s0 }
  0x74   :  { %s5702_s15 = scalar_lea.hbm %s6419_s19, 16 }
  0x75   :  { %p5703_p2 = scmp.ne.s32.totalorder %s6419_s19, %s5702_s15  ;;  %p5706_p3 = scmp.lt.u32.totalorder %s5702_s15, %s6419_s19 }
  0x77   :  { %p5708_p4 = pnand %p5706_p3, %p5703_p2 }
  0x79   :  { %5711 = shalt.err (!%p5708_p4)
}
  0x7a   :  { %s5712_s16 = scalar_lea.vmem %s166_s10, 16  ;;  %s5716_s22 = scalar_lea.vmem %s166_s10, 32 }
  0x7b   :  { %p5713_p5 = scmp.ne.s32.totalorder %s166_s10, %s5712_s16  ;;  %p5717_p6 = scmp.lt.s32.totalorder %s166_s10, %s166_s10 }
  0x7c   :  { %p5718_p7 = scmp.lt.s32.totalorder %s5716_s22, %s5712_s16 }
  0x7e   :  { %p5719_p8 = por %p5718_p7, %p5717_p6 }
  0x80   :  { %p5720_p9 = pnand %p5719_p8, %p5713_p5 }
  0x82   :  { %5723 = shalt.err (!%p5720_p9)
}
  0x83   :  { %168 = dma.hbm_to_vmem [thread:$0]  %s6419_s19, 16, %s166_s10, [#allocation12]  }
  0x84   :  { %s5724_s8 = scalar_lea.hbm %s6429_s30, 512 }
  0x85   :  { %p5725_p10 = scmp.ne.s32.totalorder %s6429_s30, %s5724_s8  ;;  %p5728_p11 = scmp.lt.u32.totalorder %s5724_s8, %s6429_s30 }
  0x87   :  { %p5730_p12 = pnand %p5728_p11, %p5725_p10 }
  0x89   :  { %5733 = shalt.err (!%p5730_p12)
}
  0x8a   :  { %s5734_s18 = scalar_lea.vmem %s6579_s0, 512  ;;  %p5739_p0 = scmp.lt.s32.totalorder %s6579_s0, %s6579_s0 }
  0x8b   :  { %p5735_p13 = scmp.ne.s32.totalorder %s6579_s0, %s5734_s18  ;;  %p5740_p1 = scmp.lt.s32.totalorder %s5734_s18, %s5734_s18 }
  0x8d   :  { %p5741_p2 = por %p5740_p1, %p5739_p0 }
  0x8f   :  { %p5742_p3 = pnand %p5741_p2, %p5735_p13 }
  0x91   :  { %5745 = shalt.err (!%p5742_p3)
}
  0x92   :  { %190 = dma.hbm_to_vmem [thread:$0]  %s6429_s30, 512, %s6579_s0, [#allocation15], %s6322_s2, %s6322_s2, %s6323_s25  }
  0x93   :  { %s6326_s19 = smov [#allocation17]   ;;  %s6327_s26 = smov [#allocation20]  }
  0x94   :  { %s209_s23 = sshll.u32 %s6326_s19, 4  ;;  %s229_s28 = sshll.u32 %s6327_s26, 4  ;;  %s210_s23 = int_to_ptr.vmem [resolvable:$true] %s209_s23  ;;  %s230_s28 = int_to_ptr.vmem [resolvable:$true] %s229_s28 }
  0x95   :  { %s5746_s1 = scalar_lea.hbm %s6444_s20, 16 }
  0x96   :  { %p5747_p4 = scmp.ne.s32.totalorder %s6444_s20, %s5746_s1  ;;  %p5750_p5 = scmp.lt.u32.totalorder %s5746_s1, %s6444_s20 }
  0x98   :  { %p5752_p6 = pnand %p5750_p5, %p5747_p4 }
  0x9a   :  { %5755 = shalt.err (!%p5752_p6)
}
  0x9b   :  { %s5756_s7 = scalar_lea.vmem %s210_s23, 16  ;;  %s5760_s10 = scalar_lea.vmem %s210_s23, 32 }
  0x9c   :  { %p5757_p7 = scmp.ne.s32.totalorder %s210_s23, %s5756_s7  ;;  %p5761_p8 = scmp.lt.s32.totalorder %s210_s23, %s210_s23 }
  0x9d   :  { %p5762_p9 = scmp.lt.s32.totalorder %s5760_s10, %s5756_s7 }
  0x9f   :  { %p5763_p10 = por %p5762_p9, %p5761_p8 }
  0xa1   :  { %p5764_p11 = pnand %p5763_p10, %p5757_p7 }
  0xa3   :  { %5767 = shalt.err (!%p5764_p11)
}
  0xa4   :  { %212 = dma.hbm_to_vmem [thread:$0]  %s6444_s20, 16, %s210_s23, [#allocation18]  }
  0xa5   :  { %s5768_s30 = scalar_lea.hbm %s6454_s4, 16 }
  0xa6   :  { %p5769_p12 = scmp.ne.s32.totalorder %s6454_s4, %s5768_s30  ;;  %p5772_p13 = scmp.lt.u32.totalorder %s5768_s30, %s6454_s4 }
  0xa8   :  { %p5774_p0 = pnand %p5772_p13, %p5769_p12 }
  0xaa   :  { %5777 = shalt.err (!%p5774_p0)
}
  0xab   :  { %s5778_s11 = scalar_lea.vmem %s230_s28, 16  ;;  %s5782_s0 = scalar_lea.vmem %s230_s28, 32 }
  0xac   :  { %p5779_p1 = scmp.ne.s32.totalorder %s230_s28, %s5778_s11  ;;  %p5783_p2 = scmp.lt.s32.totalorder %s230_s28, %s230_s28 }
  0xad   :  { %p5784_p3 = scmp.lt.s32.totalorder %s5782_s0, %s5778_s11 }
  0xaf   :  { %p5785_p4 = por %p5784_p3, %p5783_p2 }
  0xb1   :  { %p5786_p5 = pnand %p5785_p4, %p5779_p1 }
  0xb3   :  { %5789 = shalt.err (!%p5786_p5)
}
  0xb4   :  { %232 = dma.hbm_to_vmem [thread:$0]  %s6454_s4, 16, %s230_s28, [#allocation21]  }
  0xb5   :  { %s6328_s15 = smov [#allocation23]   ;;  %s6329_s16 = smov [#allocation26]  }
  0xb6   :  { %s255_s20 = sshll.u32 %s6328_s15, 4  ;;  %s275_s22 = sshll.u32 %s6329_s16, 4  ;;  %s256_s20 = int_to_ptr.vmem [resolvable:$true] %s255_s20  ;;  %s276_s22 = int_to_ptr.vmem [resolvable:$true] %s275_s22 }
  0xb7   :  { %s5790_s8 = scalar_lea.hbm %s6474_s17, 16 }
  0xb8   :  { %p5791_p6 = scmp.ne.s32.totalorder %s6474_s17, %s5790_s8  ;;  %p5794_p7 = scmp.lt.u32.totalorder %s5790_s8, %s6474_s17 }
  0xba   :  { %p5796_p8 = pnand %p5794_p7, %p5791_p6 }
  0xbc   :  { %5799 = shalt.err (!%p5796_p8)
}
  0xbd   :  { %s5800_s18 = scalar_lea.vmem %s256_s20, 16  ;;  %s5804_s19 = scalar_lea.vmem %s256_s20, 32 }
  0xbe   :  { %p5801_p9 = scmp.ne.s32.totalorder %s256_s20, %s5800_s18  ;;  %p5805_p10 = scmp.lt.s32.totalorder %s256_s20, %s256_s20 }
  0xbf   :  { %p5806_p11 = scmp.lt.s32.totalorder %s5804_s19, %s5800_s18 }
  0xc1   :  { %p5807_p12 = por %p5806_p11, %p5805_p10 }
  0xc3   :  { %p5808_p13 = pnand %p5807_p12, %p5801_p9 }
  0xc5   :  { %5811 = shalt.err (!%p5808_p13)
}
  0xc6   :  { %258 = dma.hbm_to_vmem [thread:$0]  %s6474_s17, 16, %s256_s20, [#allocation24]  }
  0xc7   :  { %s5812_s4 = scalar_lea.hbm %s6484_s9, 16 }
  0xc8   :  { %p5813_p0 = scmp.ne.s32.totalorder %s6484_s9, %s5812_s4  ;;  %p5816_p1 = scmp.lt.u32.totalorder %s5812_s4, %s6484_s9 }
  0xca   :  { %p5818_p2 = pnand %p5816_p1, %p5813_p0 }
  0xcc   :  { %5821 = shalt.err (!%p5818_p2)
}
  0xcd   :  { %s5822_s23 = scalar_lea.vmem %s276_s22, 16  ;;  %s5826_s26 = scalar_lea.vmem %s276_s22, 32 }
  0xce   :  { %p5823_p3 = scmp.ne.s32.totalorder %s276_s22, %s5822_s23  ;;  %p5827_p4 = scmp.lt.s32.totalorder %s276_s22, %s276_s22 }
  0xcf   :  { %p5828_p5 = scmp.lt.s32.totalorder %s5826_s26, %s5822_s23 }
  0xd1   :  { %p5829_p6 = por %p5828_p5, %p5827_p4 }
  0xd3   :  { %p5830_p7 = pnand %p5829_p6, %p5823_p3 }
  0xd5   :  { %5833 = shalt.err (!%p5830_p7)
}
  0xd6   :  { %278 = dma.hbm_to_vmem [thread:$0]  %s6484_s9, 16, %s276_s22, [#allocation27]  }
  0xd7   :  { %s6330_s28 = smov [#allocation29]   ;;  %s6331_s1 = smov [#allocation32]  }
  0xd8   :  { %s297_s17 = sshll.u32 %s6330_s28, 4  ;;  %s321_s7 = sshll.u32 %s6331_s1, 4  ;;  %s298_s17 = int_to_ptr.vmem [resolvable:$true] %s297_s17  ;;  %s322_s7 = int_to_ptr.vmem [resolvable:$true] %s321_s7 }
  0xd9   :  { %s5834_s10 = scalar_lea.hbm %s6494_s5, 16 }
  0xda   :  { %p5835_p8 = scmp.ne.s32.totalorder %s6494_s5, %s5834_s10  ;;  %p5838_p9 = scmp.lt.u32.totalorder %s5834_s10, %s6494_s5 }
  0xdc   :  { %p5840_p10 = pnand %p5838_p9, %p5835_p8 }
  0xde   :  { %5843 = shalt.err (!%p5840_p10)
}
  0xdf   :  { %s5844_s30 = scalar_lea.vmem %s298_s17, 16  ;;  %s5848_s11 = scalar_lea.vmem %s298_s17, 32 }
  0xe0   :  { %p5845_p11 = scmp.ne.s32.totalorder %s298_s17, %s5844_s30  ;;  %p5849_p12 = scmp.lt.s32.totalorder %s298_s17, %s298_s17 }
  0xe1   :  { %p5850_p13 = scmp.lt.s32.totalorder %s5848_s11, %s5844_s30 }
  0xe3   :  { %p5851_p0 = por %p5850_p13, %p5849_p12 }
  0xe5   :  { %p5852_p1 = pnand %p5851_p0, %p5845_p11 }
  0xe7   :  { %5855 = shalt.err (!%p5852_p1)
}
  0xe8   :  { %300 = dma.hbm_to_vmem [thread:$0]  %s6494_s5, 16, %s298_s17, [#allocation30]  }
  0xe9   :  { %s5856_s9 = scalar_lea.hbm %s6514_s27, 16 }
  0xea   :  { %p5857_p2 = scmp.ne.s32.totalorder %s6514_s27, %s5856_s9  ;;  %p5860_p3 = scmp.lt.u32.totalorder %s5856_s9, %s6514_s27 }
  0xec   :  { %p5862_p4 = pnand %p5860_p3, %p5857_p2 }
  0xee   :  { %5865 = shalt.err (!%p5862_p4)
}
  0xef   :  { %s5866_s0 = scalar_lea.vmem %s322_s7, 16  ;;  %s5870_s15 = scalar_lea.vmem %s322_s7, 32 }
  0xf0   :  { %p5867_p5 = scmp.ne.s32.totalorder %s322_s7, %s5866_s0  ;;  %p5871_p6 = scmp.lt.s32.totalorder %s322_s7, %s322_s7 }
  0xf1   :  { %p5872_p7 = scmp.lt.s32.totalorder %s5870_s15, %s5866_s0 }
  0xf3   :  { %p5873_p8 = por %p5872_p7, %p5871_p6 }
  0xf5   :  { %p5874_p9 = pnand %p5873_p8, %p5867_p5 }
  0xf7   :  { %5877 = shalt.err (!%p5874_p9)
}
  0xf8   :  { %324 = dma.hbm_to_vmem [thread:$0]  %s6514_s27, 16, %s322_s7, [#allocation33]  }
  0xf9   :  { %s6332_s20 = smov [#allocation35]   ;;  %s6333_s16 = smov [#allocation38]  }
  0xfa   :  { %s347_s5 = sshll.u32 %s6332_s20, 4  ;;  %s369_s22 = sshll.u32 %s6333_s16, 4  ;;  %s348_s5 = int_to_ptr.vmem [resolvable:$true] %s347_s5  ;;  %s370_s22 = int_to_ptr.vmem [resolvable:$true] %s369_s22 }
  0xfb   :  { %s5878_s8 = scalar_lea.hbm %s6534_s6, 64 }
  0xfc   :  { %p5879_p10 = scmp.ne.s32.totalorder %s6534_s6, %s5878_s8  ;;  %p5882_p11 = scmp.lt.u32.totalorder %s5878_s8, %s6534_s6 }
  0xfe   :  { %p5884_p12 = pnand %p5882_p11, %p5879_p10 }
 0x100   :  { %5887 = shalt.err (!%p5884_p12)
}
 0x101   :  { %s5888_s18 = scalar_lea.vmem %s348_s5, 64  ;;  %p5893_p0 = scmp.lt.s32.totalorder %s348_s5, %s348_s5 }
 0x102   :  { %p5889_p13 = scmp.ne.s32.totalorder %s348_s5, %s5888_s18  ;;  %p5894_p1 = scmp.lt.s32.totalorder %s5888_s18, %s5888_s18 }
 0x104   :  { %p5895_p2 = por %p5894_p1, %p5893_p0 }
 0x106   :  { %p5896_p3 = pnand %p5895_p2, %p5889_p13 }
 0x108   :  { %5899 = shalt.err (!%p5896_p3)
}
 0x109   :  { %350 = dma.hbm_to_vmem [thread:$0]  %s6534_s6, 64, %s348_s5, [#allocation36]  }
 0x10a   :  { %s5900_s27 = scalar_lea.hbm %s6544_s29, 32 }
 0x10b   :  { %p5901_p4 = scmp.ne.s32.totalorder %s6544_s29, %s5900_s27  ;;  %p5904_p5 = scmp.lt.u32.totalorder %s5900_s27, %s6544_s29 }
 0x10d   :  { %p5906_p6 = pnand %p5904_p5, %p5901_p4 }
 0x10f   :  { %5909 = shalt.err (!%p5906_p6)
}
 0x110   :  { %s5910_s19 = scalar_lea.vmem %s370_s22, 32  ;;  %p5915_p8 = scmp.lt.s32.totalorder %s370_s22, %s370_s22 }
 0x111   :  { %p5911_p7 = scmp.ne.s32.totalorder %s370_s22, %s5910_s19  ;;  %p5916_p9 = scmp.lt.s32.totalorder %s5910_s19, %s5910_s19 }
 0x113   :  { %p5917_p10 = por %p5916_p9, %p5915_p8 }
 0x115   :  { %p5918_p11 = pnand %p5917_p10, %p5911_p7 }
 0x117   :  { %5921 = shalt.err (!%p5918_p11)
}
 0x118   :  { %372 = dma.hbm_to_vmem [thread:$0]  %s6544_s29, 32, %s370_s22, [#allocation39]  }
 0x119   :  { %s6334_s4 = smov [#allocation2]   ;;  %s6335_s6 = smov [#allocation7]  }
 0x11a   :  { %s111_s23 = sshll.u32 %s6334_s4, 4  ;;  %s133_s26 = sshll.u32 %s6335_s6, 4  ;;  %s112_s23 = int_to_ptr.vmem [resolvable:$true] %s111_s23  ;;  %s134_s26 = int_to_ptr.vmem [resolvable:$true] %s133_s26 }
 0x11b   :  { %s5922_s28 = scalar_lea.hbm %s6389_s21, 16 }
 0x11c   :  { %p5923_p12 = scmp.ne.s32.totalorder %s6389_s21, %s5922_s28  ;;  %p5926_p13 = scmp.lt.u32.totalorder %s5922_s28, %s6389_s21 }
 0x11e   :  { %p5928_p0 = pnand %p5926_p13, %p5923_p12 }
 0x120   :  { %5931 = shalt.err (!%p5928_p0)
}
 0x121   :  { %s5932_s17 = scalar_lea.vmem %s112_s23, 16  ;;  %s5936_s1 = scalar_lea.vmem %s112_s23, 32 }
 0x122   :  { %p5933_p1 = scmp.ne.s32.totalorder %s112_s23, %s5932_s17  ;;  %p5937_p2 = scmp.lt.s32.totalorder %s112_s23, %s112_s23 }
 0x123   :  { %p5938_p3 = scmp.lt.s32.totalorder %s5936_s1, %s5932_s17 }
 0x125   :  { %p5939_p4 = por %p5938_p3, %p5937_p2 }
 0x127   :  { %p5940_p5 = pnand %p5939_p4, %p5933_p1 }
 0x129   :  { %5943 = shalt.err (!%p5940_p5)
}
 0x12a   :  { %114 = dma.hbm_to_vmem [thread:$0]  %s6389_s21, 16, %s112_s23, [#allocation3]  }
 0x12b   :  { %s5944_s29 = scalar_lea.hbm %s6404_s3, 32 }
 0x12c   :  { %p5945_p6 = scmp.ne.s32.totalorder %s6404_s3, %s5944_s29  ;;  %p5948_p7 = scmp.lt.u32.totalorder %s5944_s29, %s6404_s3 }
 0x12e   :  { %p5950_p8 = pnand %p5948_p7, %p5945_p6 }
 0x130   :  { %5953 = shalt.err (!%p5950_p8)
}
 0x131   :  { %s5954_s7 = scalar_lea.vmem %s134_s26, 32  ;;  %p5959_p10 = scmp.lt.s32.totalorder %s134_s26, %s134_s26 }
 0x132   :  { %p5955_p9 = scmp.ne.s32.totalorder %s134_s26, %s5954_s7  ;;  %p5960_p11 = scmp.lt.s32.totalorder %s5954_s7, %s5954_s7 }
 0x134   :  { %p5961_p12 = por %p5960_p11, %p5959_p10 }
 0x136   :  { %p5962_p13 = pnand %p5961_p12, %p5955_p9 }
 0x138   :  { %5965 = shalt.err (!%p5962_p13)
}
 0x139   :  { %136 = dma.hbm_to_vmem [thread:$0]  %s6404_s3, 32, %s134_s26, [#allocation6]  }
 0x13a   :  { %s6336_s10 = smov [#allocation10]   ;;  %s6337_s21 = smov [#allocation13]  }
 0x13b   :  { %s155_s30 = sshll.u32 %s6336_s10, 4  ;;  %s175_s11 = sshll.u32 %s6337_s21, 4  ;;  %s156_s30 = int_to_ptr.vmem [resolvable:$true] %s155_s30  ;;  %s176_s11 = int_to_ptr.vmem [resolvable:$true] %s175_s11 }
 0x13c   :  { %s5966_s9 = scalar_lea.hbm %s6414_s14, 16 }
 0x13d   :  { %p5967_p0 = scmp.ne.s32.totalorder %s6414_s14, %s5966_s9  ;;  %p5970_p1 = scmp.lt.u32.totalorder %s5966_s9, %s6414_s14 }
 0x13f   :  { %p5972_p2 = pnand %p5970_p1, %p5967_p0 }
 0x141   :  { %5975 = shalt.err (!%p5972_p2)
}
 0x142   :  { %s5976_s0 = scalar_lea.vmem %s156_s30, 16  ;;  %s5980_s15 = scalar_lea.vmem %s156_s30, 32 }
 0x143   :  { %p5977_p3 = scmp.ne.s32.totalorder %s156_s30, %s5976_s0  ;;  %p5981_p4 = scmp.lt.s32.totalorder %s156_s30, %s156_s30 }
 0x144   :  { %p5982_p5 = scmp.lt.s32.totalorder %s5980_s15, %s5976_s0 }
 0x146   :  { %p5983_p6 = por %p5982_p5, %p5981_p4 }
 0x148   :  { %p5984_p7 = pnand %p5983_p6, %p5977_p3 }
 0x14a   :  { %5987 = shalt.err (!%p5984_p7)
}
 0x14b   :  { %s7296_s3 = sld [smem:[#allocation64_spill]] }
 0x14c   :  { %158 = dma.hbm_to_vmem [thread:$0]  %s6414_s14, 16, %s156_s30, [#allocation9]  }
 0x151   :  { %s5988_s20 = scalar_lea.hbm %s7296_s3, 16 }
 0x152   :  { %p5989_p8 = scmp.ne.s32.totalorder %s7296_s3, %s5988_s20  ;;  %p5992_p9 = scmp.lt.u32.totalorder %s5988_s20, %s7296_s3 }
 0x154   :  { %p5994_p10 = pnand %p5992_p9, %p5989_p8 }
 0x156   :  { %5997 = shalt.err (!%p5994_p10)
}
 0x157   :  { %s5998_s5 = scalar_lea.vmem %s176_s11, 16  ;;  %s6002_s16 = scalar_lea.vmem %s176_s11, 32 }
 0x158   :  { %p5999_p11 = scmp.ne.s32.totalorder %s176_s11, %s5998_s5  ;;  %p6003_p12 = scmp.lt.s32.totalorder %s176_s11, %s176_s11 }
 0x159   :  { %p6004_p13 = scmp.lt.s32.totalorder %s6002_s16, %s5998_s5 }
 0x15b   :  { %p6005_p0 = por %p6004_p13, %p6003_p12 }
 0x15d   :  { %p6006_p1 = pnand %p6005_p0, %p5999_p11 }
 0x15f   :  { %6009 = shalt.err (!%p6006_p1)
}
 0x160   :  { %s7297_s22 = sld [smem:[#allocation65_spill]]  ;;  %s6338_s8 = smov [#allocation16]  }
 0x161   :  { %178 = dma.hbm_to_vmem [thread:$0]  %s7296_s3, 16, %s176_s11, [#allocation12]  }
 0x162   :  { %s197_s14 = sshll.u32 %s6338_s8, 4  ;;  %s6339_s18 = smov [#allocation19]   ;;  %s198_s14 = int_to_ptr.vmem [resolvable:$true] %s197_s14 }
 0x163   :  { %s219_s27 = sshll.u32 %s6339_s18, 4  ;;  %s220_s27 = int_to_ptr.vmem [resolvable:$true] %s219_s27 }
 0x166   :  { %s6010_s19 = scalar_lea.hbm %s7297_s22, 16 }
 0x167   :  { %p6011_p2 = scmp.ne.s32.totalorder %s7297_s22, %s6010_s19  ;;  %p6014_p3 = scmp.lt.u32.totalorder %s6010_s19, %s7297_s22 }
 0x169   :  { %p6016_p4 = pnand %p6014_p3, %p6011_p2 }
 0x16b   :  { %6019 = shalt.err (!%p6016_p4)
}
 0x16c   :  { %s6020_s4 = scalar_lea.vmem %s198_s14, 16  ;;  %s6024_s23 = scalar_lea.vmem %s198_s14, 32 }
 0x16d   :  { %p6021_p5 = scmp.ne.s32.totalorder %s198_s14, %s6020_s4  ;;  %p6025_p6 = scmp.lt.s32.totalorder %s198_s14, %s198_s14 }
 0x16e   :  { %p6026_p7 = scmp.lt.s32.totalorder %s6024_s23, %s6020_s4 }
 0x170   :  { %p6027_p8 = por %p6026_p7, %p6025_p6 }
 0x172   :  { %p6028_p9 = pnand %p6027_p8, %p6021_p5 }
 0x174   :  { %6031 = shalt.err (!%p6028_p9)
}
 0x175   :  { %s7298_s6 = sld [smem:[#allocation67_spill]] }
 0x176   :  { %200 = dma.hbm_to_vmem [thread:$0]  %s7297_s22, 16, %s198_s14, [#allocation15]  }
 0x17b   :  { %s6032_s26 = scalar_lea.hbm %s7298_s6, 16 }
 0x17c   :  { %p6033_p10 = scmp.ne.s32.totalorder %s7298_s6, %s6032_s26  ;;  %p6036_p11 = scmp.lt.u32.totalorder %s6032_s26, %s7298_s6 }
 0x17e   :  { %p6038_p12 = pnand %p6036_p11, %p6033_p10 }
 0x180   :  { %6041 = shalt.err (!%p6038_p12)
}
 0x181   :  { %s6042_s28 = scalar_lea.vmem %s220_s27, 16  ;;  %s6046_s17 = scalar_lea.vmem %s220_s27, 32 }
 0x182   :  { %p6043_p13 = scmp.ne.s32.totalorder %s220_s27, %s6042_s28  ;;  %p6047_p0 = scmp.lt.s32.totalorder %s220_s27, %s220_s27 }
 0x183   :  { %p6048_p1 = scmp.lt.s32.totalorder %s6046_s17, %s6042_s28 }
 0x185   :  { %p6049_p2 = por %p6048_p1, %p6047_p0 }
 0x187   :  { %p6050_p3 = pnand %p6049_p2, %p6043_p13 }
 0x189   :  { %6053 = shalt.err (!%p6050_p3)
}
 0x18a   :  { %s7299_s1 = sld [smem:[#allocation70_spill]]  ;;  %s6340_s29 = smov [#allocation22]  }
 0x18b   :  { %222 = dma.hbm_to_vmem [thread:$0]  %s7298_s6, 16, %s220_s27, [#allocation18]  }
 0x18c   :  { %s242_s7 = sshll.u32 %s6340_s29, 4  ;;  %s6341_s10 = smov [#allocation25]   ;;  %s243_s7 = int_to_ptr.vmem [resolvable:$true] %s242_s7 }
 0x18d   :  { %s265_s30 = sshll.u32 %s6341_s10, 4  ;;  %s266_s30 = int_to_ptr.vmem [resolvable:$true] %s265_s30 }
 0x190   :  { %s6054_s21 = scalar_lea.hbm %s7299_s1, 512 }
 0x191   :  { %p6055_p4 = scmp.ne.s32.totalorder %s7299_s1, %s6054_s21  ;;  %p6058_p5 = scmp.lt.u32.totalorder %s6054_s21, %s7299_s1 }
 0x193   :  { %p6060_p6 = pnand %p6058_p5, %p6055_p4 }
 0x195   :  { %6063 = shalt.err (!%p6060_p6)
}
 0x196   :  { %s6064_s11 = scalar_lea.vmem %s243_s7, 512  ;;  %p6069_p8 = scmp.lt.s32.totalorder %s243_s7, %s243_s7 }
 0x197   :  { %p6065_p7 = scmp.ne.s32.totalorder %s243_s7, %s6064_s11  ;;  %p6070_p9 = scmp.lt.s32.totalorder %s6064_s11, %s6064_s11 }
 0x199   :  { %p6071_p10 = por %p6070_p9, %p6069_p8 }
 0x19b   :  { %p6072_p11 = pnand %p6071_p10, %p6065_p7 }
 0x19d   :  { %6075 = shalt.err (!%p6072_p11)
}
 0x19e   :  { %s7300_s9 = sld [smem:[#allocation71_spill]] }
 0x19f   :  { %248 = dma.hbm_to_vmem [thread:$0]  %s7299_s1, 512, %s243_s7, [#allocation21], %s6322_s2, %s6322_s2, %s6323_s25  }
 0x1a4   :  { %s6076_s0 = scalar_lea.hbm %s7300_s9, 16 }
 0x1a5   :  { %p6077_p12 = scmp.ne.s32.totalorder %s7300_s9, %s6076_s0  ;;  %p6080_p13 = scmp.lt.u32.totalorder %s6076_s0, %s7300_s9 }
 0x1a7   :  { %p6082_p0 = pnand %p6080_p13, %p6077_p12 }
 0x1a9   :  { %6085 = shalt.err (!%p6082_p0)
}
 0x1aa   :  { %s6086_s15 = scalar_lea.vmem %s266_s30, 16  ;;  %s6090_s3 = scalar_lea.vmem %s266_s30, 32 }
 0x1ab   :  { %p6087_p1 = scmp.ne.s32.totalorder %s266_s30, %s6086_s15  ;;  %p6091_p2 = scmp.lt.s32.totalorder %s266_s30, %s266_s30 }
 0x1ac   :  { %p6092_p3 = scmp.lt.s32.totalorder %s6090_s3, %s6086_s15 }
 0x1ae   :  { %p6093_p4 = por %p6092_p3, %p6091_p2 }
 0x1b0   :  { %p6094_p5 = pnand %p6093_p4, %p6087_p1 }
 0x1b2   :  { %6097 = shalt.err (!%p6094_p5)
}
 0x1b3   :  { %s7301_s20 = sld [smem:[#allocation72_spill]]  ;;  %s6342_s5 = smov [#allocation28]  }
 0x1b4   :  { %268 = dma.hbm_to_vmem [thread:$0]  %s7300_s9, 16, %s266_s30, [#allocation24]  }
 0x1b5   :  { %s284_s16 = sshll.u32 %s6342_s5, 4  ;;  %s6343_s22 = smov [#allocation31]   ;;  %s285_s16 = int_to_ptr.vmem [resolvable:$true] %s284_s16 }
 0x1b6   :  { %s309_s8 = sshll.u32 %s6343_s22, 4  ;;  %s310_s8 = int_to_ptr.vmem [resolvable:$true] %s309_s8 }
 0x1b9   :  { %s6098_s14 = scalar_lea.hbm %s7301_s20, 512 }
 0x1ba   :  { %p6099_p6 = scmp.ne.s32.totalorder %s7301_s20, %s6098_s14  ;;  %p6102_p7 = scmp.lt.u32.totalorder %s6098_s14, %s7301_s20 }
 0x1bc   :  { %p6104_p8 = pnand %p6102_p7, %p6099_p6 }
 0x1be   :  { %6107 = shalt.err (!%p6104_p8)
}
 0x1bf   :  { %s6108_s18 = scalar_lea.vmem %s285_s16, 512  ;;  %p6113_p10 = scmp.lt.s32.totalorder %s285_s16, %s285_s16 }
 0x1c0   :  { %p6109_p9 = scmp.ne.s32.totalorder %s285_s16, %s6108_s18  ;;  %p6114_p11 = scmp.lt.s32.totalorder %s6108_s18, %s6108_s18 }
 0x1c2   :  { %p6115_p12 = por %p6114_p11, %p6113_p10 }
 0x1c4   :  { %p6116_p13 = pnand %p6115_p12, %p6109_p9 }
 0x1c6   :  { %6119 = shalt.err (!%p6116_p13)
}
 0x1c7   :  { %s7302_s27 = sld [smem:[#allocation74_spill]] }
 0x1c8   :  { %290 = dma.hbm_to_vmem [thread:$0]  %s7301_s20, 512, %s285_s16, [#allocation27], %s6322_s2, %s6322_s2, %s6323_s25  }
 0x1cd   :  { %s6120_s19 = scalar_lea.hbm %s7302_s27, 16 }
 0x1ce   :  { %p6121_p0 = scmp.ne.s32.totalorder %s7302_s27, %s6120_s19  ;;  %p6124_p1 = scmp.lt.u32.totalorder %s6120_s19, %s7302_s27 }
 0x1d0   :  { %p6126_p2 = pnand %p6124_p1, %p6121_p0 }
 0x1d2   :  { %6129 = shalt.err (!%p6126_p2)
}
 0x1d3   :  { %s6130_s4 = scalar_lea.vmem %s310_s8, 16  ;;  %s6134_s23 = scalar_lea.vmem %s310_s8, 32 }
 0x1d4   :  { %p6131_p3 = scmp.ne.s32.totalorder %s310_s8, %s6130_s4  ;;  %p6135_p4 = scmp.lt.s32.totalorder %s310_s8, %s310_s8 }
 0x1d5   :  { %p6136_p5 = scmp.lt.s32.totalorder %s6134_s23, %s6130_s4 }
 0x1d7   :  { %p6137_p6 = por %p6136_p5, %p6135_p4 }
 0x1d9   :  { %p6138_p7 = pnand %p6137_p6, %p6131_p3 }
 0x1db   :  { %6141 = shalt.err (!%p6138_p7)
}
 0x1dc   :  { %s7303_s6 = sld [smem:[#allocation76_spill]]  ;;  %s6344_s26 = smov [#allocation34]  }
 0x1dd   :  { %312 = dma.hbm_to_vmem [thread:$0]  %s7302_s27, 16, %s310_s8, [#allocation30]  }
 0x1de   :  { %s330_s28 = sshll.u32 %s6344_s26, 4  ;;  %s6345_s17 = smov [#allocation37]   ;;  %s331_s28 = int_to_ptr.vmem [resolvable:$true] %s330_s28 }
 0x1df   :  { %s356_s1 = sshll.u32 %s6345_s17, 4  ;;  %s6675_s1 = int_to_ptr.vmem [resolvable:$true] %s356_s1 }
 0x1e2   :  { %s6142_s29 = scalar_lea.hbm %s7303_s6, 512 }
 0x1e3   :  { %p6143_p8 = scmp.ne.s32.totalorder %s7303_s6, %s6142_s29  ;;  %p6146_p9 = scmp.lt.u32.totalorder %s6142_s29, %s7303_s6 }
 0x1e5   :  { %p6148_p10 = pnand %p6146_p9, %p6143_p8 }
 0x1e7   :  { %6151 = shalt.err (!%p6148_p10)
}
 0x1e8   :  { %s6152_s7 = scalar_lea.vmem %s331_s28, 512  ;;  %p6157_p12 = scmp.lt.s32.totalorder %s331_s28, %s331_s28 }
 0x1e9   :  { %p6153_p11 = scmp.ne.s32.totalorder %s331_s28, %s6152_s7  ;;  %p6158_p13 = scmp.lt.s32.totalorder %s6152_s7, %s6152_s7 }
 0x1eb   :  { %p6159_p0 = por %p6158_p13, %p6157_p12 }
 0x1ed   :  { %p6160_p1 = pnand %p6159_p0, %p6153_p11 }
 0x1ef   :  { %6163 = shalt.err (!%p6160_p1)
}
 0x1f0   :  { %s7304_s10 = sld [smem:[#allocation79_spill]] }
 0x1f1   :  { %336 = dma.hbm_to_vmem [thread:$0]  %s7303_s6, 512, %s331_s28, [#allocation33], %s6322_s2, %s6322_s2, %s6323_s25  }
 0x1f6   :  { %s6164_s30 = scalar_lea.hbm %s7304_s10, 8192 }
 0x1f7   :  { %p6165_p2 = scmp.ne.s32.totalorder %s7304_s10, %s6164_s30  ;;  %p6168_p3 = scmp.lt.u32.totalorder %s6164_s30, %s7304_s10 }
 0x1f9   :  { %p6170_p4 = pnand %p6168_p3, %p6165_p2 }
 0x1fb   :  { %6173 = shalt.err (!%p6170_p4)
}
 0x1fc   :  { %s6174_s21 = scalar_lea.vmem %s6675_s1, 8192  ;;  %p6179_p6 = scmp.lt.s32.totalorder %s6675_s1, %s6675_s1 }
 0x1fd   :  { %p6175_p5 = scmp.ne.s32.totalorder %s6675_s1, %s6174_s21  ;;  %p6180_p7 = scmp.lt.s32.totalorder %s6174_s21, %s6174_s21 }
 0x1ff   :  { %p6181_p8 = por %p6180_p7, %p6179_p6 }
 0x201   :  { %p6182_p9 = pnand %p6181_p8, %p6175_p5 }
 0x203   :  { %6185 = shalt.err (!%p6182_p9)
}
 0x204   :  { %s6346_s11 = smov 128   ;;  %s6347_s9 = smov 8  }
 0x205   :  { %362 = dma.hbm_to_vmem [thread:$0]  %s7304_s10, 8192, %s6675_s1, [#allocation36], %s6346_s11, %s6346_s11, %s6347_s9  }
 0x206   :  { %s6348_s0 = smov [#allocation40]   ;;  %s6349_s3 = smov [#allocation41]  }
 0x207   :  { %s378_s15 = sshll.u32 %s6348_s0, 4  ;;  %s391_s20 = sshll.u32 %s6349_s3, 4  ;;  %s379_s15 = int_to_ptr.vmem [resolvable:$true] %s378_s15  ;;  %s392_s20 = int_to_ptr.vmem [resolvable:$true] %s391_s20 }
 0x208   :  { %s6186_s5 = scalar_lea.hbm %s6549_s13, 2048 }
 0x209   :  { %p6187_p10 = scmp.ne.s32.totalorder %s6549_s13, %s6186_s5  ;;  %p6190_p11 = scmp.lt.u32.totalorder %s6186_s5, %s6549_s13 }
 0x20b   :  { %p6192_p12 = pnand %p6190_p11, %p6187_p10 }
 0x20d   :  { %6195 = shalt.err (!%p6192_p12)
}
 0x20e   :  { %s6196_s16 = scalar_lea.vmem %s379_s15, 2048  ;;  %p6201_p0 = scmp.lt.s32.totalorder %s379_s15, %s379_s15 }
 0x20f   :  { %p6197_p13 = scmp.ne.s32.totalorder %s379_s15, %s6196_s16  ;;  %p6202_p1 = scmp.lt.s32.totalorder %s6196_s16, %s6196_s16 }
 0x211   :  { %p6203_p2 = por %p6202_p1, %p6201_p0 }
 0x213   :  { %p6204_p3 = pnand %p6203_p2, %p6197_p13 }
 0x215   :  { %6207 = shalt.err (!%p6204_p3)
}
 0x216   :  { %384 = dma.hbm_to_vmem [thread:$0]  %s6549_s13, 2048, %s379_s15, [#allocation39], %s6322_s2, %s6322_s2, %s6323_s25  }
 0x217   :  { %s6208_s22 = scalar_lea.hbm %s6554_s24, 16 }
 0x218   :  { %p6209_p4 = scmp.ne.s32.totalorder %s6554_s24, %s6208_s22  ;;  %p6212_p5 = scmp.lt.u32.totalorder %s6208_s22, %s6554_s24 }
 0x21a   :  { %p6214_p6 = pnand %p6212_p5, %p6209_p4 }
 0x21c   :  { %6217 = shalt.err (!%p6214_p6)
}
 0x21d   :  { %s6218_s8 = scalar_lea.vmem %s392_s20, 16  ;;  %s6222_s14 = scalar_lea.vmem %s392_s20, 32 }
 0x21e   :  { %p6219_p7 = scmp.ne.s32.totalorder %s392_s20, %s6218_s8  ;;  %p6223_p8 = scmp.lt.s32.totalorder %s392_s20, %s392_s20 }
 0x21f   :  { %p6224_p9 = scmp.lt.s32.totalorder %s6222_s14, %s6218_s8 }
 0x221   :  { %p6225_p10 = por %p6224_p9, %p6223_p8 }
 0x223   :  { %p6226_p11 = pnand %p6225_p10, %p6219_p7 }
 0x225   :  { %6229 = shalt.err (!%p6226_p11)
}
 0x226   :  { %394 = dma.hbm_to_vmem [thread:$0]  %s6554_s24, 16, %s392_s20, [#allocation42]  }
 0x227   :  { %6252 = dma.done.wait [#allocation3], 16  }
 0x228   :  { %6253 = vsyncadd [#allocation3], 4294967280 }
 0x229   :  { %6254 = dma.done.wait [#allocation6], 48  }
 0x22a   :  { %6255 = vsyncadd [#allocation6], 4294967248 }
 0x22b   :  { %6256 = dma.done.wait [#allocation9], 528  }
 0x22c   :  { %6257 = vsyncadd [#allocation9], 4294966768 }
 0x22d   :  { %6258 = dma.done.wait [#allocation12], 32  }
 0x22e   :  { %6259 = vsyncadd [#allocation12], 4294967264 }
 0x22f   :  { %6260 = dma.done.wait [#allocation15], 528  }
 0x230   :  { %6261 = vsyncadd [#allocation15], 4294966768 }
 0x231   :  { %6262 = dma.done.wait [#allocation18], 32  }
 0x232   :  { %6263 = vsyncadd [#allocation18], 4294967264 }
 0x233   :  { %6264 = dma.done.wait [#allocation21], 528  }
 0x234   :  { %6265 = vsyncadd [#allocation21], 4294966768 }
 0x235   :  { %6266 = dma.done.wait [#allocation24], 32  }
 0x236   :  { %6267 = vsyncadd [#allocation24], 4294967264 }
 0x237   :  { %6268 = dma.done.wait [#allocation27], 528  }
 0x238   :  { %6269 = vsyncadd [#allocation27], 4294966768 }
 0x239   :  { %6270 = dma.done.wait [#allocation30], 32  }
 0x23a   :  { %6271 = vsyncadd [#allocation30], 4294967264 }
 0x23b   :  { %6272 = dma.done.wait [#allocation33], 528  }
 0x23c   :  { %6273 = vsyncadd [#allocation33], 4294966768 }
 0x23d   :  { %6274 = dma.done.wait [#allocation36], 8256  }
 0x23e   :  { %6275 = vsyncadd [#allocation36], 4294959040 }
 0x23f   :  { %6276 = dma.done.wait [#allocation39], 2080  }
 0x240   :  { %6277 = vsyncadd [#allocation39], 4294965216 }
 0x241   :  { %6278 = dma.done.wait [#allocation42], 16  }
 0x242   :  { %6279 = vsyncadd [#allocation42], 4294967280  ;;  %s7305_s13 = sld [smem:[#allocation59_spill]]  ;;  %s7306_s24 = sld [smem:[#allocation61_spill]]  ;;  %v6350_v0 = vmov 0   ;;  %v6351_v9 = vmov 0.0   ;;  %v476_v16 = vlaneseq }
 0x243   :  { %5277 = vset.pattern.permute.xlu0 %v6350_v0  ;;  %4902 = vmatprep.subr.bf16.mxu1 %v6351_v9  ;;  %s7307_s25 = sld [smem:[#allocation62_spill]]  ;;  %vm498_vm0 = vcmask 523264   ;;  %s7308_s18 = sld [smem:[#allocation63_spill]]  ;;  %v4519_v55 = vld [vmem:[#allocation2] ss:$0 sm:$0xff]  ;;  %vm6354_vm3 = vmmov 0  }
 0x244   :  { %v477_v17 = vand.u32 127, %v476_v16  ;;  %v4520_v59 = vld [vmem:[#allocation5] ss:$0 sm:$0xff]  ;;  %s6352_s27 = smov 112   ;;  %s6353_s19 = smov 96   ;;  %4904 = vmatprep.mubr.msk.bf16.mxu1 %vm6354_vm3, %v6351_v9  ;;  %vm831_vm4 = vcmask 130048  }
 0x245   :  { %s6355_s4 = smov 80   ;;  %s7309_s23 = sld [smem:[#allocation60_spill]]  ;;  %vm1289_vm5 = vcmask 1043456   ;;  %vm1237_vm6 = vcmask 64512   ;;  %vm1681_vm7 = vcmask 261120   ;;  %vm1684_vm8 = vcmask 392192  }
 0x246   :  { %s6357_s6 = smov 16   ;;  %s6358_s26 = smov 32   ;;  %vm3508_vm9 = vcmask 1041409  }
 0x247   :  { %s6359_s28 = smov 48   ;;  %s7310_s17 = sld [smem:[#allocation66_spill]] }
 0x248   :  { %v474_v1 = vld [vmem:[%s7305_s13] sm:$0xff]  ;;  %v491_v3 = vld [vmem:[%s7306_s24 + $0x8] sm:$0xff]  ;;  %v492_v4 = vld [vmem:[%s7306_s24 + $0x10] sm:$0xff]  ;;  %s7311_s1 = sld [smem:[#allocation68_spill]]  ;;  %s7312_s29 = sld [smem:[#allocation69_spill]] }
 0x249   :  { %v490_v2 = vld [vmem:[%s7306_s24] sm:$0xff]  ;;  %479 = vperm.xlu0 %5277, %v474_v1   ;;  %v493_v5 = vld [vmem:[%s7306_s24 + $0x18] sm:$0xff]  ;;  %v475_v6 = vld [vmem:[%s7305_s13 + $0x8] sm:$0xff]  ;;  %v6744_v1 = vshrl.u32 %v476_v16, 7  ;;  %s7314_s7 = sld [smem:[#allocation75_spill]]  ;;  %s7315_s10 = sld [smem:[#allocation78_spill]] }
 0x24a   :  { %v5176_v7 = vpack.c.bf16 %v491_v3, %v490_v2  ;;  %v5180_v8 = vpack.c.bf16 %v493_v5, %v492_v4  ;;  %v494_v10 = vld [vmem:[%s7306_s24 + $0x20] sm:$0xff]  ;;  %v495_v11 = vld [vmem:[%s7306_s24 + $0x28] sm:$0xff]  ;;  %v496_v12 = vld [vmem:[%s7306_s24 + $0x30] sm:$0xff]  ;;  %s7316_s30 = sld [smem:[#allocation77_spill]]  ;;  %s6360_s21 = smov [#allocation43]  }
 0x24b   :  { %v497_v13 = vld [vmem:[%s7306_s24 + $0x38] sm:$0xff]  ;;  %v5184_v14 = vpack.c.bf16 %v495_v11, %v494_v10  ;;  %v580_v22 = vld [vmem:[%s7307_s25] sm:$0xff]  ;;  %v6747_v2 = vsub.s32 0, %v6744_v1  ;;  %v6750_v4 = vsub.s32 1, %v6744_v1  ;;  %s4455_s11 = sshll.u32 %s6360_s21, 4  ;;  %s4456_s11 = int_to_ptr.vmem [resolvable:$true] %s4455_s11 }
 0x24c   :  { %5177 = vmatprep.subr.bf16.mxu0 %v5176_v7  ;;  %v5188_v15 = vpack.c.bf16 %v497_v13, %v496_v12  ;;  %v5370_v39 = vld [vmem:[%s7308_s18 + $0x4] ss:$8 sps:$4 sm:$0xff]   ;;  %v5368_v40 = vld [vmem:[%s7308_s18] ss:$8 sps:$4 sm:$0xff]   ;;  %v5373_v41 = vld [vmem:[%s7308_s18 + $0x14] ss:$8 sps:$4 sm:$0xff]   ;;  %p6235_p13 = scmp.lt.s32.totalorder %s4456_s11, %s4456_s11 }
 0x24d   :  { %482 = vperm.xlu0 %5277, %v475_v6   ;;  %5179 = vmatpush3.bf16.msra.mxu0 %v5176_v7  ;;  %v5371_v42 = vld [vmem:[%s7308_s18 + $0x10] ss:$8 sps:$4 sm:$0xff]   ;;  %v5376_v43 = vld [vmem:[%s7308_s18 + $0x24] ss:$8 sps:$4 sm:$0xff]   ;;  %v5374_v44 = vld [vmem:[%s7308_s18 + $0x20] ss:$8 sps:$4 sm:$0xff]  }
 0x24e   :  { %5181 = vmatprep.subr.bf16.mxu0 %v5180_v8  ;;  %v5377_v45 = vld [vmem:[%s7308_s18 + $0x30] ss:$8 sps:$4 sm:$0xff]   ;;  %v5379_v46 = vld [vmem:[%s7308_s18 + $0x34] ss:$8 sps:$4 sm:$0xff]   ;;  %v674_v3 = vld [vmem:[#allocation7] sm:$0x3] }
 0x24f   :  { %v679_v5 = vrot.slane %v674_v3, %v6747_v2  ;;  %v683_v7 = vrot.slane %v674_v3, %v6750_v4  ;;  %s6230_s9 = scalar_lea.vmem %s4456_s11, 32 }
 0x250   :  { %p6231_p12 = scmp.ne.s32.totalorder %s4456_s11, %s6230_s9  ;;  %p6236_p0 = scmp.lt.s32.totalorder %s6230_s9, %s6230_s9 }
 0x251   :  { %5183 = vmatpush3.bf16.msra.mxu0 %v5180_v8 }
 0x252   :  { %5185 = vmatprep.subr.bf16.mxu0 %v5184_v14  ;;  %p6237_p1 = por %p6236_p0, %p6235_p13 }
 0x254   :  { %p6238_p2 = pnand %p6237_p1, %p6231_p12 }
 0x255   :  { %5187 = vmatpush3.bf16.msra.mxu0 %v5184_v14 }
 0x256   :  { %5189 = vmatprep.subr.bf16.mxu0 %v5188_v15 }
 0x259   :  { %5191 = vmatpush3.bf16.msra.mxu0 %v5188_v15 }
 0x25a   :  { %729 = vmatprep.subr.bf16.mxu0 %v5370_v39 }
 0x2c8   :  { %v480_v18 = vpop.permute.xlu0 %479 }
 0x2c9   :  { %vm484_vm1 = vcmp.eq.s32.totalorder %v477_v17, %v480_v18 }
 0x2ca   :  { %v4515_v19 = vsel %vm484_vm1, 1.0, %v6351_v9 }
 0x2cb   :  { %4881 = vmatprep.mubr.msk.f32.mxu0 %vm498_vm0, %v4515_v19 }
 0x2cc   :  { %v483_v20 = vpop.permute.xlu0 %482 }
 0x2cd   :  { %vm485_vm2 = vcmp.eq.s32.totalorder %v477_v17, %v483_v20 }
 0x2ce   :  { %v4516_v21 = vsel %vm485_vm2, 1.0, %v6351_v9 }
 0x2cf   :  { %4882 = vmatmul.mubr.msk.f32.vlgmr.msra.gmra.mrb[0].mxu0 %vm498_vm0, %v4516_v21 }
 0x2d0   :  { %761 = vmatprep.mubr.bf16.mxu0 %v6350_v0  ;;  %730 = vmatpush1.bf16.msra.mxu0 %v5368_v40 }
 0x2d1   :  { %731 = vmatprep.subr.bf16.mxu0 %v5373_v41 }
 0x2d4   :  { %732 = vmatpush1.bf16.msra.mxu0 %v5371_v42 }
 0x2d5   :  { %733 = vmatprep.subr.bf16.mxu0 %v5376_v43 }
 0x2d8   :  { %734 = vmatpush1.bf16.msra.mxu0 %v5374_v44 }
 0x2d9   :  { %735 = vmatprep.subr.bf16.mxu0 %v5379_v46 }
 0x2dc   :  { %736 = vmatpush1.bf16.msra.mxu0 %v5377_v45 }
 0x2dd   :  { %4884 = vmatprep.subr.bf16.mxu0 %v6351_v9 }
 0x3a2   :  { %v4883_v23 = vpop.f32.mrb[0].mxu0 }
 0x3a3   :  { %v571_v24 = vpop.f32.mrb[1].mxu0  ;;  %v582_v26 = vadd.f32 %v4883_v23, %v580_v22 }
 0x3a4   :  { %v581_v25 = vadd.f32 %v580_v22, %v571_v24 }
 0x3a5   :  { %v588_v28 = vsel %vm498_vm0, %v582_v26, 0.0 }
 0x3a6   :  { %v585_v27 = vsel %vm498_vm0, %v581_v25, 0.0 }
 0x3a7   :  { %586 = vadd.xlane.f32.xlu1 %v585_v27 }
 0x3ab   :  { %589 = vadd.xlane.f32.xlu1 %v588_v28 }
 0x434   :  { %v587_v29 = vpop.xlane.xlu1 %586 }
 0x435   :  { %v592_v30 = vmul.f32 0.015625, %v587_v29 }
 0x437   :  { %v594_v31 = vsub.f32 %v581_v25, %v592_v30 }
 0x438   :  { %v590_v32 = vpop.xlane.xlu1 %589 }
 0x439   :  { %v593_v33 = vmul.f32 0.015625, %v590_v32  ;;  %v596_v34 = vmul.f32 %v594_v31, %v594_v31 }
 0x43b   :  { %v595_v35 = vsub.f32 %v582_v26, %v593_v33  ;;  %v598_v36 = vsel %vm498_vm0, %v596_v34, 0.0 }
 0x43c   :  { %599 = vadd.xlane.f32.xlu0 %v598_v36 }
 0x43d   :  { %v597_v37 = vmul.f32 %v595_v35, %v595_v35 }
 0x43f   :  { %v601_v38 = vsel %vm498_vm0, %v597_v37, 0.0 }
 0x440   :  { %602 = vadd.xlane.f32.xlu1 %v601_v38 }
 0x4c9   :  { %v600_v47 = vpop.xlane.xlu0 %599 }
 0x4ca   :  { %v604_v48 = vmul.f32 0.015625, %v600_v47 }
 0x4cc   :  { %v606_v49 = vadd.f32 1e-12, %v604_v48 }
 0x4cd   :  { %v603_v50 = vpop.xlane.xlu1 %602 }
 0x4ce   :  { %5564 = vrsqrt.f32 %v606_v49  ;;  %v605_v51 = vmul.f32 0.015625, %v603_v50 }
 0x4d0   :  { %v607_v52 = vadd.f32 1e-12, %v605_v51 }
 0x4d2   :  { %5566 = vrsqrt.f32 %v607_v52 }
 0x4d8   :  { %v5565_v53 = vpop.eup %5564 }
 0x4d9   :  { %v610_v54 = vmul.f32 %v5565_v53, %v594_v31 }
 0x4db   :  { %v618_v57 = vmul.f32 %v4519_v55, %v610_v54 }
 0x4dc   :  { %v5567_v56 = vpop.eup %5566 }
 0x4dd   :  { %v611_v58 = vmul.f32 %v5567_v56, %v595_v35  ;;  %v6736_v61 = vadd.f32 %v4520_v59, %v618_v57  ;;  %v6356_v57 = vmov 1966171168  }
 0x4df   :  { %v619_v60 = vmul.f32 %v4519_v55, %v611_v58  ;;  %v628_v55 = vld [vmem:[%s7309_s23] sm:$0x3]  ;;  %v634_v58 = vunpack.c.l.s4 %v6356_v57 }
 0x4e0   :  { %v629_v56 = vsub.s32 1, %v628_v55 }
 0x4e1   :  { %v6738_v62 = vadd.f32 %v4520_v59, %v619_v60  ;;  %v635_v60 = vunpack.c.0.s8 %v634_v58 }
 0x4e2   :  { %v630_v59 = vcvt.s32.f32 %v629_v56 }
 0x4e3   :  { %v665_v63 = vpack.c.bf16 %v6738_v62, %v6736_v61  ;;  %v638_v3 = vsub.s32 %v635_v60, %v6744_v1 }
 0x4e5   :  { %4529 = vmatmul.mubr.msk.bf16.vlgmr.msra.gmra.mrb[4].mxu0 %vm498_vm0, %v665_v63  ;;  %v631_v63 = vmul.f32 -10000.0, %v630_v59 }
 0x4e6   :  { %4886 = vmatprep.mubr.msk.bf16.mxu0 %vm6354_vm3, %v6351_v9 }
 0x5b8   :  { %v763_v6 = vpop.f32.mrb[4].mxu0 }
 0x5b9   :  { %v765_v8 = vpop.f32.mrb[5].mxu0  ;;  %v764_v11 = vadd.f32 %v763_v6, %v679_v5 }
 0x5ba   :  { %v767_v10 = vpop.f32.mrb[6].mxu0  ;;  %v6754_v14 = vadd.f32 %v765_v8, %v683_v7 }
 0x5bb   :  { %v768_v12 = vadd.f32 %v767_v10, %v679_v5  ;;  %v769_v13 = vpop.f32.mrb[7].mxu0  ;;  %v792_v19 = vpack.c.bf16 %v764_v11, %v764_v11  ;;  %v639_v5 = vrot.slane %v631_v63, %v638_v3 }
 0x5bc   :  { %v6756_v15 = vadd.f32 %v769_v13, %v683_v7  ;;  %v820_v51 = vpack.c.bf16 %v6754_v14, %v6754_v14 }
 0x5bd   :  { %v793_v16 = vpack.c.bf16 %v768_v12, %v768_v12  ;;  %v5278_v17 = vpack.i.bf16 %v768_v12, %v764_v11  ;;  %v647_v6 = vrot.slane %v639_v5, %v638_v3  ;;  %v640_v7 = vcombine.high %v639_v5, %v639_v5 }
 0x5be   :  { %v6760_v18 = vpack.i.bf16 %v6756_v15, %v6754_v14  ;;  %v1291_v52 = vsel %vm1289_vm5, %v820_v51, 0  ;;  %v821_v53 = vpack.c.bf16 %v6756_v15, %v6756_v15 }
 0x5bf   :  { %879 = vrot.lane.b32.xlu0 %v793_v16, %s6322_s2  ;;  %5279 = vrot.lane.b32.xlu1 %v5278_v17, %s6352_s27  ;;  %v6828_v8 = vrot.slane %v647_v6, %v6747_v2  ;;  %v654_v11 = vrot.slane %v640_v7, %v638_v3 }
 0x5c0   :  { %v1337_v54 = vsel %vm1289_vm5, %v821_v53, 0 }
 0x5c3   :  { %5284 = vrot.lane.b32.xlu1 %v5278_v17, %s6353_s19 }
 0x5c7   :  { %5289 = vrot.lane.b32.xlu1 %v5278_v17, %s6355_s4  ;;  %v6832_v17 = vrot.slane %v654_v11, %v6747_v2 }
 0x5cb   :  { %829 = vrot.lane.b32.xlu1 %v792_v19, %s6322_s2 }
 0x631   :  { %v5280_v20 = vpop.permute.xlu1 %5279  ;;  %v880_v36 = vpop.permute.xlu0 %879 }
 0x632   :  { %v5281_v21 = vunpack.i.l.bf16 %v5280_v20  ;;  %v5282_v22 = vunpack.i.h.bf16 %v5280_v20  ;;  %v885_v38 = vsel %vm831_vm4, %v880_v36, 0 }
 0x634   :  { %v794_v23 = vpack.c.bf16 %v5281_v21, %v5281_v21  ;;  %v795_v26 = vpack.c.bf16 %v5282_v22, %v5282_v22 }
 0x635   :  { %v5285_v24 = vpop.permute.xlu1 %5284 }
 0x636   :  { %928 = vrot.lane.b32.xlu1 %v794_v23, %s6322_s2  ;;  %v5286_v25 = vunpack.i.l.bf16 %v5285_v24  ;;  %v5287_v29 = vunpack.i.h.bf16 %v5285_v24 }
 0x638   :  { %v796_v31 = vpack.c.bf16 %v5286_v25, %v5286_v25  ;;  %v797_v35 = vpack.c.bf16 %v5287_v29, %v5287_v29 }
 0x639   :  { %v5290_v27 = vpop.permute.xlu1 %5289 }
 0x63a   :  { %v5292_v28 = vunpack.i.h.bf16 %v5290_v27  ;;  %977 = vrot.lane.b32.xlu1 %v795_v26, %s6322_s2  ;;  %v5291_v34 = vunpack.i.l.bf16 %v5290_v27 }
 0x63c   :  { %v799_v30 = vpack.c.bf16 %v5292_v28, %v5292_v28  ;;  %v798_v37 = vpack.c.bf16 %v5291_v34, %v5291_v34 }
 0x63d   :  { %v830_v32 = vpop.permute.xlu1 %829 }
 0x63e   :  { %v836_v33 = vsel %vm831_vm4, %v830_v32, 0  ;;  %1173 = vrot.lane.b32.xlu0 %v799_v30, %s6322_s2  ;;  %1026 = vrot.lane.b32.xlu1 %v796_v31, %s6322_s2 }
 0x63f   :  { %4885 = vmatpush3.bf16.xpose.msra.mxu0 %v836_v33 }
 0x640   :  { %4890 = vmatprep.subr.bf16.mxu0 %v6351_v9 }
 0x642   :  { %1075 = vrot.lane.b32.xlu1 %v797_v35, %s6322_s2 }
 0x646   :  { %1124 = vrot.lane.b32.xlu1 %v798_v37, %s6322_s2  ;;  %4887 = vmatmul.mubr.msk.bf16.vlgmr.msra.gmra.mrb[8].mxu0 %vm831_vm4, %v792_v19 }
 0x647   :  { %4891 = vmatpush3.bf16.xpose.msra.mxu0 %v885_v38  ;;  %4892 = vmatprep.mubr.msk.bf16.mxu0 %vm6354_vm3, %v6351_v9 }
 0x648   :  { %4896 = vmatprep.subr.bf16.mxu0 %v6351_v9 }
 0x64e   :  { %4893 = vmatmul.mubr.msk.bf16.vlgmr.msra.gmra.mrb[12].mxu0 %vm831_vm4, %v793_v16 }
 0x64f   :  { %4898 = vmatprep.mubr.msk.bf16.mxu0 %vm6354_vm3, %v6351_v9 }
 0x6a8   :  { %v929_v39 = vpop.permute.xlu1 %928 }
 0x6a9   :  { %v934_v40 = vsel %vm831_vm4, %v929_v39, 0 }
 0x6aa   :  { %4897 = vmatpush3.bf16.xpose.msra.mxu0 %v934_v40 }
 0x6ab   :  { %4908 = vmatprep.subr.bf16.mxu0 %v6351_v9 }
 0x6ac   :  { %v978_v41 = vpop.permute.xlu1 %977 }
 0x6ad   :  { %v983_v42 = vsel %vm831_vm4, %v978_v41, 0 }
 0x6ae   :  { %4903 = vmatpush3.bf16.xpose.msra.mxu1 %v983_v42 }
 0x6af   :  { %4914 = vmatprep.subr.bf16.mxu1 %v6351_v9 }
 0x6b0   :  { %v1027_v43 = vpop.permute.xlu1 %1026  ;;  %v1174_v49 = vpop.permute.xlu0 %1173 }
 0x6b1   :  { %v1032_v44 = vsel %vm831_vm4, %v1027_v43, 0  ;;  %4899 = vmatmul.mubr.msk.bf16.vlgmr.msra.gmra.mrb[16].mxu0 %vm831_vm4, %v794_v23  ;;  %v1179_v50 = vsel %vm831_vm4, %v1174_v49, 0 }
 0x6b2   :  { %4909 = vmatpush3.bf16.xpose.msra.mxu0 %v1032_v44  ;;  %4910 = vmatprep.mubr.msk.bf16.mxu0 %vm6354_vm3, %v6351_v9 }
 0x6b3   :  { %4920 = vmatprep.subr.bf16.mxu0 %v6351_v9 }
 0x6b4   :  { %v1076_v45 = vpop.permute.xlu1 %1075 }
 0x6b5   :  { %v1081_v46 = vsel %vm831_vm4, %v1076_v45, 0  ;;  %4905 = vmatmul.mubr.msk.bf16.vlgmr.msra.gmra.mrb[0].mxu1 %vm831_vm4, %v795_v26 }
 0x6b6   :  { %4915 = vmatpush3.bf16.xpose.msra.mxu1 %v1081_v46  ;;  %4916 = vmatprep.mubr.msk.bf16.mxu1 %vm6354_vm3, %v6351_v9 }
 0x6b7   :  { %4926 = vmatprep.subr.bf16.mxu1 %v6351_v9 }
 0x6b8   :  { %v1125_v47 = vpop.permute.xlu1 %1124 }
 0x6b9   :  { %v1130_v48 = vsel %vm831_vm4, %v1125_v47, 0  ;;  %4911 = vmatmul.mubr.msk.bf16.vlgmr.msra.gmra.mrb[20].mxu0 %vm831_vm4, %v796_v31 }
 0x6ba   :  { %4921 = vmatpush3.bf16.xpose.msra.mxu0 %v1130_v48  ;;  %4922 = vmatprep.mubr.msk.bf16.mxu0 %vm6354_vm3, %v6351_v9 }
 0x6bb   :  { %4932 = vmatprep.subr.bf16.mxu0 %v6351_v9 }
 0x6bd   :  { %4917 = vmatmul.mubr.msk.bf16.vlgmr.msra.gmra.mrb[4].mxu1 %vm831_vm4, %v797_v35 }
 0x6be   :  { %4927 = vmatpush3.bf16.xpose.msra.mxu1 %v1179_v50  ;;  %4928 = vmatprep.mubr.msk.bf16.mxu1 %vm6354_vm3, %v6351_v9 }
 0x6bf   :  { %4938 = vmatprep.subr.bf16.mxu1 %v6351_v9 }
 0x6c1   :  { %4923 = vmatmul.mubr.msk.bf16.vlgmr.msra.gmra.mrb[24].mxu0 %vm831_vm4, %v798_v37 }
 0x6c2   :  { %4933 = vmatpush3.bf16.msra.mxu0 %v1291_v52  ;;  %4934 = vmatprep.mubr.msk.bf16.mxu0 %vm6354_vm3, %v6351_v9 }
 0x6c3   :  { %4944 = vmatprep.subr.bf16.mxu0 %v6351_v9 }
 0x6c5   :  { %4929 = vmatmul.mubr.msk.bf16.vlgmr.msra.gmra.mrb[8].mxu1 %vm831_vm4, %v799_v30 }
 0x6c6   :  { %4939 = vmatpush3.bf16.msra.mxu1 %v1337_v54  ;;  %4940 = vmatprep.mubr.msk.bf16.mxu1 %vm6354_vm3, %v6351_v9 }
 0x6c7   :  { %4950 = vmatprep.subr.bf16.mxu1 %v6351_v9 }
 0x719   :  { %v872_v10 = vpop.f32.mrb[8].mxu0 }
 0x71a   :  { %v873_v12 = vadd.f32 %v872_v10, %v6828_v8  ;;  %v4888_v13 = vpop.f32.mrb[9].mxu0 }
 0x71b   :  { %v875_v14 = vpop.f32.mrb[10].mxu0 }
 0x71c   :  { %v1221_v15 = vmul.f32 1.442695, %v873_v12  ;;  %v4889_v16 = vpop.f32.mrb[11].mxu0 }
 0x71e   :  { %5568 = vpow2.f32 %v1221_v15 }
 0x721   :  { %v921_v19 = vpop.f32.mrb[12].mxu0 }
 0x722   :  { %v922_v20 = vadd.f32 %v921_v19, %v6832_v17  ;;  %v4894_v21 = vpop.f32.mrb[13].mxu0 }
 0x723   :  { %v924_v22 = vpop.f32.mrb[14].mxu0 }
 0x724   :  { %v1223_v23 = vmul.f32 1.442695, %v922_v20  ;;  %v4895_v24 = vpop.f32.mrb[15].mxu0 }
 0x726   :  { %5570 = vpow2.f32 %v1223_v23 }
 0x728   :  { %v6835_v25 = vpop.eup %5568 }
 0x729   :  { %v1238_v26 = vsel %vm1237_vm6, %v6835_v25, 0.0 }
 0x72a   :  { %1239 = vadd.xlane.f32.xlu1 %v1238_v26 }
 0x730   :  { %v6839_v27 = vpop.eup %5570 }
 0x731   :  { %v1241_v28 = vsel %vm1237_vm6, %v6839_v27, 0.0 }
 0x732   :  { %1242 = vadd.xlane.f32.xlu0 %v1241_v28 }
 0x784   :  { %v970_v29 = vpop.f32.mrb[16].mxu0 }
 0x785   :  { %v971_v30 = vadd.f32 %v970_v29, %v6828_v8  ;;  %v4900_v31 = vpop.f32.mrb[17].mxu0 }
 0x786   :  { %v973_v32 = vpop.f32.mrb[18].mxu0 }
 0x787   :  { %v1225_v33 = vmul.f32 1.442695, %v971_v30  ;;  %v4901_v34 = vpop.f32.mrb[19].mxu0 }
 0x788   :  { %v1019_v35 = vpop.f32.mrb[0].mxu1 }
 0x789   :  { %5572 = vpow2.f32 %v1225_v33  ;;  %v1020_v36 = vadd.f32 %v1019_v35, %v6832_v17  ;;  %v4906_v37 = vpop.f32.mrb[1].mxu1 }
 0x78a   :  { %v1022_v38 = vpop.f32.mrb[2].mxu1 }
 0x78b   :  { %v1227_v39 = vmul.f32 1.442695, %v1020_v36  ;;  %v4907_v40 = vpop.f32.mrb[3].mxu1 }
 0x78c   :  { %v1068_v41 = vpop.f32.mrb[20].mxu0 }
 0x78d   :  { %5574 = vpow2.f32 %v1227_v39  ;;  %v1069_v42 = vadd.f32 %v1068_v41, %v6828_v8  ;;  %v4912_v43 = vpop.f32.mrb[21].mxu0 }
 0x78e   :  { %v1071_v44 = vpop.f32.mrb[22].mxu0 }
 0x78f   :  { %v1229_v45 = vmul.f32 1.442695, %v1069_v42  ;;  %v4913_v46 = vpop.f32.mrb[23].mxu0 }
 0x790   :  { %v1117_v47 = vpop.f32.mrb[4].mxu1 }
 0x791   :  { %5576 = vpow2.f32 %v1229_v45  ;;  %v1118_v48 = vadd.f32 %v1117_v47, %v6832_v17  ;;  %v4918_v49 = vpop.f32.mrb[5].mxu1 }
 0x792   :  { %v1120_v50 = vpop.f32.mrb[6].mxu1 }
 0x793   :  { %v6847_v51 = vpop.eup %5572  ;;  %v1231_v52 = vmul.f32 1.442695, %v1118_v48  ;;  %v4919_v53 = vpop.f32.mrb[7].mxu1 }
 0x794   :  { %v1166_v54 = vpop.f32.mrb[24].mxu0  ;;  %v1244_v55 = vsel %vm1237_vm6, %v6847_v51, 0.0 }
 0x795   :  { %5578 = vpow2.f32 %v1231_v52  ;;  %v1167_v56 = vadd.f32 %v1166_v54, %v6828_v8  ;;  %1245 = vadd.xlane.f32.xlu0 %v1244_v55  ;;  %v4924_v57 = vpop.f32.mrb[25].mxu0 }
 0x796   :  { %v1169_v58 = vpop.f32.mrb[26].mxu0 }
 0x797   :  { %v5575_v59 = vpop.eup %5574  ;;  %v1233_v60 = vmul.f32 1.442695, %v1167_v56  ;;  %v4925_v63 = vpop.f32.mrb[27].mxu0 }
 0x798   :  { %v1215_v3 = vpop.f32.mrb[8].mxu1  ;;  %v1247_v5 = vsel %vm1237_vm6, %v5575_v59, 0.0 }
 0x799   :  { %5580 = vpow2.f32 %v1233_v60  ;;  %1248 = vadd.xlane.f32.xlu1 %v1247_v5  ;;  %v4930_v6 = vpop.f32.mrb[9].mxu1  ;;  %v1216_v21 = vadd.f32 %v1215_v3, %v6832_v17 }
 0x79a   :  { %v1218_v7 = vpop.f32.mrb[10].mxu1 }
 0x79b   :  { %v6853_v10 = vpop.eup %5576  ;;  %v4931_v11 = vpop.f32.mrb[11].mxu1  ;;  %v1235_v24 = vmul.f32 1.442695, %v1216_v21 }
 0x79c   :  { %v1250_v12 = vsel %vm1237_vm6, %v6853_v10, 0.0 }
 0x79d   :  { %1251 = vadd.xlane.f32.xlu0 %v1250_v12 }
 0x79f   :  { %v6857_v13 = vpop.eup %5578 }
 0x7a0   :  { %v1253_v14 = vsel %vm1237_vm6, %v6857_v13, 0.0 }
 0x7a1   :  { %1254 = vadd.xlane.f32.xlu1 %v1253_v14 }
 0x7a3   :  { %v6861_v15 = vpop.eup %5580 }
 0x7a4   :  { %v1256_v16 = vsel %vm1237_vm6, %v6861_v15, 0.0 }
 0x7a5   :  { %1257 = vadd.xlane.f32.xlu0 %v1256_v16 }
 0x7b2   :  { %5299 = vrot.lane.b32.xlu1 %v6760_v18, %s6353_s19 }
 0x7b7   :  { %v1240_v19 = vpop.xlane.xlu1 %1239 }
 0x7b8   :  { %5582 = vrcp.f32 %v1240_v19 }
 0x7bb   :  { %5294 = vrot.lane.b32.xlu0 %v6760_v18, %s6352_s27 }
 0x7bf   :  { %v1243_v20 = vpop.xlane.xlu0 %1242 }
 0x7c0   :  { %5584 = vrcp.f32 %v1243_v20 }
 0x7c1   :  { %5586 = vpow2.f32 %v1235_v24 }
 0x7c2   :  { %v5583_v22 = vpop.eup %5582 }
 0x7c3   :  { %v1270_v23 = vmul.f32 %v5583_v22, %v6835_v25 }
 0x7c5   :  { %v1278_v26 = vpack.c.bf16 %v1270_v23, %v1270_v23 }
 0x7c7   :  { %4935 = vmatmul.mubr.msk.bf16.vlgmr.msra.gmra.mrb[28].mxu0 %vm1237_vm6, %v1278_v26 }
 0x7c8   :  { %4946 = vmatprep.mubr.msk.bf16.mxu0 %vm6354_vm3, %v6351_v9 }
 0x7ca   :  { %v5585_v28 = vpop.eup %5584 }
 0x7cb   :  { %v1271_v29 = vmul.f32 %v5585_v28, %v6839_v27  ;;  %v6878_v31 = vpop.eup %5586 }
 0x7cc   :  { %v1259_v25 = vsel %vm1237_vm6, %v6878_v31, 0.0 }
 0x7cd   :  { %v1279_v30 = vpack.c.bf16 %v1271_v29, %v1271_v29 }
 0x7cf   :  { %4941 = vmatmul.mubr.msk.bf16.vlgmr.msra.gmra.mrb[12].mxu1 %vm1237_vm6, %v1279_v30 }
 0x7d0   :  { %4952 = vmatprep.mubr.msk.bf16.mxu1 %vm6354_vm3, %v6351_v9 }
 0x7d6   :  { %1260 = vadd.xlane.f32.xlu1 %v1259_v25 }
 0x7e7   :  { %5304 = vrot.lane.b32.xlu1 %v6760_v18, %s6355_s4 }
 0x822   :  { %v1246_v32 = vpop.xlane.xlu0 %1245 }
 0x823   :  { %5588 = vrcp.f32 %v1246_v32  ;;  %v5380_v32 = vld [vmem:[#allocation8] sm:$0xff]  }
 0x826   :  { %v1249_v33 = vpop.xlane.xlu1 %1248 }
 0x827   :  { %5590 = vrcp.f32 %v1249_v33 }
 0x82a   :  { %v1252_v27 = vpop.xlane.xlu0 %1251 }
 0x82b   :  { %5592 = vrcp.f32 %v1252_v27 }
 0x82d   :  { %v5589_v37 = vpop.eup %5588 }
 0x82e   :  { %v1255_v34 = vpop.xlane.xlu1 %1254  ;;  %v1272_v44 = vmul.f32 %v5589_v37, %v6847_v51  ;;  %v5381_v37 = vld [vmem:[#allocation8 + $0x8] sm:$0xff]  }
 0x82f   :  { %5594 = vrcp.f32 %v1255_v34 }
 0x830   :  { %v1280_v53 = vpack.c.bf16 %v1272_v44, %v1272_v44 }
 0x831   :  { %v5591_v38 = vpop.eup %5590 }
 0x832   :  { %v1258_v35 = vpop.xlane.xlu0 %1257  ;;  %v5300_v36 = vpop.permute.xlu1 %5299  ;;  %v1273_v18 = vmul.f32 %v5591_v38, %v5575_v59 }
 0x833   :  { %v5302_v40 = vunpack.i.h.bf16 %v5300_v36  ;;  %v5301_v41 = vunpack.i.l.bf16 %v5300_v36  ;;  %5596 = vrcp.f32 %v1258_v35 }
 0x834   :  { %v1281_v54 = vpack.c.bf16 %v1273_v18, %v1273_v18 }
 0x835   :  { %v825_v47 = vpack.c.bf16 %v5302_v40, %v5302_v40  ;;  %v824_v48 = vpack.c.bf16 %v5301_v41, %v5301_v41  ;;  %v5593_v52 = vpop.eup %5592  ;;  %v5382_v40 = vld [vmem:[#allocation8 + $0x10] sm:$0xff]  }
 0x836   :  { %v5295_v39 = vpop.permute.xlu0 %5294  ;;  %v1274_v57 = vmul.f32 %v5593_v52, %v6853_v10 }
 0x837   :  { %v5297_v42 = vunpack.i.h.bf16 %v5295_v39  ;;  %v5296_v43 = vunpack.i.l.bf16 %v5295_v39  ;;  %v1475_v51 = vsel %vm1289_vm5, %v824_v48, 0  ;;  %v1521_v56 = vsel %vm1289_vm5, %v825_v47, 0 }
 0x838   :  { %v1282_v59 = vpack.c.bf16 %v1274_v57, %v1274_v57 }
 0x839   :  { %v823_v45 = vpack.c.bf16 %v5297_v42, %v5297_v42  ;;  %v822_v46 = vpack.c.bf16 %v5296_v43, %v5296_v43  ;;  %v5595_v55 = vpop.eup %5594 }
 0x83a   :  { %v1275_v58 = vmul.f32 %v5595_v55, %v6857_v13 }
 0x83b   :  { %v1383_v49 = vsel %vm1289_vm5, %v822_v46, 0  ;;  %v1429_v50 = vsel %vm1289_vm5, %v823_v45, 0 }
 0x83c   :  { %4945 = vmatpush3.bf16.msra.mxu0 %v1383_v49  ;;  %4951 = vmatpush3.bf16.msra.mxu1 %v1429_v50  ;;  %v1283_v60 = vpack.c.bf16 %v1275_v58, %v1275_v58  ;;  %v5383_v49 = vld [vmem:[#allocation8 + $0x18] sm:$0xff]  }
 0x83d   :  { %4956 = vmatprep.subr.bf16.mxu0 %v6351_v9  ;;  %4962 = vmatprep.subr.bf16.mxu1 %v6351_v9  ;;  %v5597_v3 = vpop.eup %5596 }
 0x83e   :  { %v1276_v10 = vmul.f32 %v5597_v3, %v6861_v15 }
 0x83f   :  { %4947 = vmatmul.mubr.msk.bf16.vlgmr.msra.gmra.mrb[32].mxu0 %vm1237_vm6, %v1280_v53  ;;  %4953 = vmatmul.mubr.msk.bf16.vlgmr.msra.gmra.mrb[16].mxu1 %vm1237_vm6, %v1281_v54 }
 0x840   :  { %4957 = vmatpush3.bf16.msra.mxu0 %v1475_v51  ;;  %4963 = vmatpush3.bf16.msra.mxu1 %v1521_v56  ;;  %v1284_v19 = vpack.c.bf16 %v1276_v10, %v1276_v10 }
 0x841   :  { %4958 = vmatprep.mubr.msk.bf16.mxu0 %vm6354_vm3, %v6351_v9  ;;  %4964 = vmatprep.mubr.msk.bf16.mxu1 %vm6354_vm3, %v6351_v9 }
 0x842   :  { %4968 = vmatprep.subr.bf16.mxu0 %v6351_v9  ;;  %4974 = vmatprep.subr.bf16.mxu1 %v6351_v9 }
 0x847   :  { %4959 = vmatmul.mubr.msk.bf16.vlgmr.msra.gmra.mrb[36].mxu0 %vm1237_vm6, %v1282_v59  ;;  %4965 = vmatmul.mubr.msk.bf16.vlgmr.msra.gmra.mrb[20].mxu1 %vm1237_vm6, %v1283_v60 }
 0x848   :  { %4970 = vmatprep.mubr.msk.bf16.mxu0 %vm6354_vm3, %v6351_v9  ;;  %4976 = vmatprep.mubr.msk.bf16.mxu1 %vm6354_vm3, %v6351_v9 }
 0x863   :  { %v1261_v63 = vpop.xlane.xlu1 %1260 }
 0x864   :  { %5598 = vrcp.f32 %v1261_v63 }
 0x867   :  { %v5305_v5 = vpop.permute.xlu1 %5304 }
 0x868   :  { %v5307_v6 = vunpack.i.h.bf16 %v5305_v5  ;;  %v5306_v7 = vunpack.i.l.bf16 %v5305_v5 }
 0x86a   :  { %v827_v11 = vpack.c.bf16 %v5307_v6, %v5307_v6  ;;  %v826_v12 = vpack.c.bf16 %v5306_v7, %v5306_v7 }
 0x86c   :  { %v1567_v13 = vsel %vm1289_vm5, %v826_v12, 0  ;;  %v1613_v14 = vsel %vm1289_vm5, %v827_v11, 0 }
 0x86d   :  { %4969 = vmatpush3.bf16.msra.mxu0 %v1567_v13  ;;  %4975 = vmatpush3.bf16.msra.mxu1 %v1613_v14 }
 0x86e   :  { %v5599_v16 = vpop.eup %5598  ;;  %4980 = vmatprep.subr.bf16.mxu0 %v6351_v9 }
 0x86f   :  { %v1277_v20 = vmul.f32 %v5599_v16, %v6878_v31 }
 0x870   :  { %4971 = vmatmul.mubr.msk.bf16.vlgmr.msra.gmra.mrb[40].mxu0 %vm1237_vm6, %v1284_v19 }
 0x871   :  { %v1285_v21 = vpack.c.bf16 %v1277_v20, %v1277_v20  ;;  %4988 = vmatprep.mubr.msk.bf16.mxu0 %vm6354_vm3, %v6351_v9  ;;  %4981 = vmatpush3.bf16.msra.mxu0 %v5380_v32 }
 0x872   :  { %4982 = vmatprep.subr.bf16.mxu0 %v6351_v9 }
 0x873   :  { %4977 = vmatmul.mubr.msk.bf16.vlgmr.msra.gmra.mrb[24].mxu1 %vm1237_vm6, %v1285_v21 }
 0x874   :  { %2174 = vmatprep.mubr.bf16.mxu1 %v6350_v0 }
 0x875   :  { %4983 = vmatpush3.bf16.msra.mxu0 %v5381_v37 }
 0x876   :  { %4984 = vmatprep.subr.bf16.mxu0 %v6351_v9 }
 0x879   :  { %4985 = vmatpush3.bf16.msra.mxu0 %v5382_v40 }
 0x87a   :  { %4986 = vmatprep.subr.bf16.mxu0 %v6351_v9 }
 0x87d   :  { %4987 = vmatpush3.bf16.msra.mxu0 %v5383_v49 }
 0x87e   :  { %4992 = vmatprep.subr.bf16.mxu0 %v6351_v9 }
 0x89a   :  { %v6917_v15 = vpop.f32.mrb[28].mxu0 }
 0x89b   :  { %v4936_v22 = vpop.f32.mrb[29].mxu0 }
 0x89c   :  { %v1330_v23 = vpop.f32.mrb[30].mxu0  ;;  %v4546_v22 = vld [vmem:[#allocation10] ss:$0 sm:$0xff] }
 0x89d   :  { %v4937_v24 = vpop.f32.mrb[31].mxu0 }
 0x8a2   :  { %v1373_v26 = vpop.f32.mrb[12].mxu1 }
 0x8a3   :  { %v4942_v28 = vpop.f32.mrb[13].mxu1 }
 0x8a4   :  { %v1376_v29 = vpop.f32.mrb[14].mxu1 }
 0x8a5   :  { %v4943_v30 = vpop.f32.mrb[15].mxu1 }
 0x912   :  { %v1419_v31 = vpop.f32.mrb[32].mxu0  ;;  %v1465_v25 = vpop.f32.mrb[16].mxu1 }
 0x913   :  { %v5308_v33 = vpack.i.bf16 %v1465_v25, %v1419_v31  ;;  %v4948_v27 = vpop.f32.mrb[33].mxu0  ;;  %v4954_v34 = vpop.f32.mrb[17].mxu1 }
 0x914   :  { %v1422_v35 = vpop.f32.mrb[34].mxu0  ;;  %v1468_v36 = vpop.f32.mrb[18].mxu1 }
 0x915   :  { %v4949_v38 = vpop.f32.mrb[35].mxu0  ;;  %5309 = vrot.lane.b32.xlu0 %v5308_v33, %s6357_s6  ;;  %v4955_v39 = vpop.f32.mrb[19].mxu1 }
 0x91a   :  { %v1511_v41 = vpop.f32.mrb[36].mxu0  ;;  %v1557_v42 = vpop.f32.mrb[20].mxu1 }
 0x91b   :  { %v5313_v43 = vpack.i.bf16 %v1557_v42, %v1511_v41  ;;  %v4960_v44 = vpop.f32.mrb[37].mxu0  ;;  %v4966_v18 = vpop.f32.mrb[21].mxu1  ;;  %v5384_v41 = vld [vmem:[#allocation14] sm:$0xff]   ;;  %v5386_v42 = vld [vmem:[#allocation14 + $0x10] sm:$0xff]  }
 0x91c   :  { %v1514_v45 = vpop.f32.mrb[38].mxu0  ;;  %v1560_v46 = vpop.f32.mrb[22].mxu1 }
 0x91d   :  { %v4967_v47 = vpop.f32.mrb[23].mxu1  ;;  %5314 = vrot.lane.b32.xlu1 %v5313_v43, %s6358_s26  ;;  %v4961_v48 = vpop.f32.mrb[39].mxu0  ;;  %v5387_v43 = vld [vmem:[#allocation14 + $0x18] sm:$0xff]  }
 0x943   :  { %v1603_v50 = vpop.f32.mrb[40].mxu0 }
 0x944   :  { %v4972_v52 = vpop.f32.mrb[41].mxu0 }
 0x945   :  { %v1606_v53 = vpop.f32.mrb[42].mxu0 }
 0x946   :  { %v4973_v54 = vpop.f32.mrb[43].mxu0  ;;  %v1649_v55 = vpop.f32.mrb[24].mxu1 }
 0x947   :  { %v5318_v51 = vpack.i.bf16 %v1649_v55, %v1603_v50  ;;  %v4978_v56 = vpop.f32.mrb[25].mxu1  ;;  %v4552_v50 = vld [vmem:[#allocation11] ss:$0 sm:$0xff] }
 0x948   :  { %v1652_v57 = vpop.f32.mrb[26].mxu1 }
 0x949   :  { %v4979_v58 = vpop.f32.mrb[27].mxu1  ;;  %5319 = vrot.lane.b32.xlu0 %v5318_v51, %s6359_s28  ;;  %v4553_v51 = vld [vmem:[#allocation13] ss:$0 sm:$0xff] }
 0x987   :  { %v5310_v59 = vpop.permute.xlu0 %5309 }
 0x988   :  { %v5312_v63 = vunpack.i.h.bf16 %v5310_v59  ;;  %v5311_v3 = vunpack.i.l.bf16 %v5310_v59 }
 0x98a   :  { %v1680_v10 = vsel %vm831_vm4, %v1373_v26, %v5312_v63  ;;  %v1679_v11 = vsel %vm831_vm4, %v6917_v15, %v5311_v3  ;;  %v5389_v63 = vld [vmem:[%s7310_s17 + $0x8] sm:$0xff]   ;;  %v5390_v3 = vld [vmem:[%s7310_s17 + $0x10] sm:$0xff]  }
 0x98f   :  { %v5315_v60 = vpop.permute.xlu1 %5314 }
 0x990   :  { %v5317_v5 = vunpack.i.h.bf16 %v5315_v60  ;;  %v5316_v6 = vunpack.i.l.bf16 %v5315_v60  ;;  %v5388_v60 = vld [vmem:[%s7310_s17] sm:$0xff]  }
 0x992   :  { %v1683_v14 = vsel %vm1681_vm7, %v1680_v10, %v5317_v5  ;;  %v1682_v16 = vsel %vm1681_vm7, %v1679_v11, %v5316_v6  ;;  %v5391_v5 = vld [vmem:[%s7310_s17 + $0x18] sm:$0xff]   ;;  %v5392_v6 = vld [vmem:[%s7310_s17 + $0x20] sm:$0xff]   ;;  %v5394_v10 = vld [vmem:[%s7310_s17 + $0x30] sm:$0xff]  }
 0x993   :  { %v5395_v11 = vld [vmem:[%s7310_s17 + $0x38] sm:$0xff]  }
 0x9bb   :  { %v5320_v7 = vpop.permute.xlu0 %5319 }
 0x9bc   :  { %v5322_v12 = vunpack.i.h.bf16 %v5320_v7  ;;  %v5321_v13 = vunpack.i.l.bf16 %v5320_v7  ;;  %v5393_v7 = vld [vmem:[%s7310_s17 + $0x28] sm:$0xff]  }
 0x9be   :  { %v1686_v19 = vsel %vm1684_vm8, %v1683_v14, %v5322_v12  ;;  %v1685_v20 = vsel %vm1684_vm8, %v1682_v16, %v5321_v13  ;;  %v4554_v12 = vld [vmem:[#allocation16] ss:$0 sm:$0xff] }
 0x9bf   :  { %v1687_v21 = vpack.c.bf16 %v1686_v19, %v1685_v20 }
 0x9c1   :  { %4989 = vmatmul.mubr.msk.bf16.vlgmr.msra.gmra.mrb[44].mxu0 %vm498_vm0, %v1687_v21 }
 0x9c2   :  { %5000 = vmatprep.mubr.msk.bf16.mxu0 %vm6354_vm3, %v6351_v9  ;;  %4993 = vmatpush3.bf16.msra.mxu0 %v5384_v41 }
 0x9c3   :  { %4994 = vmatprep.subr.bf16.mxu0 %v6351_v9 }
 0xa94   :  { %v1764_v23 = vpop.f32.mrb[44].mxu0 }
 0xa95   :  { %v1765_v24 = vadd.f32 %v4546_v22, %v1764_v23  ;;  %v4990_v15 = vpop.f32.mrb[45].mxu0 }
 0xa96   :  { %v1767_v26 = vpop.f32.mrb[46].mxu0 }
 0xa97   :  { %v1768_v28 = vadd.f32 %v4546_v22, %v1767_v26  ;;  %v4991_v29 = vpop.f32.mrb[47].mxu0  ;;  %v1771_v30 = vadd.f32 %v1765_v24, %v6736_v61 }
 0xa99   :  { %v1775_v31 = vsel %vm498_vm0, %v1771_v30, 0.0  ;;  %v1772_v25 = vadd.f32 %v1768_v28, %v6738_v62  ;;  %v5385_v62 = vld [vmem:[#allocation14 + $0x8] sm:$0xff]  }
 0xa9a   :  { %1776 = vadd.xlane.f32.xlu1 %v1775_v31  ;;  %4995 = vmatpush3.bf16.msra.mxu0 %v5385_v62 }
 0xa9b   :  { %v1778_v32 = vsel %vm498_vm0, %v1772_v25, 0.0  ;;  %4996 = vmatprep.subr.bf16.mxu0 %v6351_v9 }
 0xa9c   :  { %1779 = vadd.xlane.f32.xlu0 %v1778_v32 }
 0xa9e   :  { %4997 = vmatpush3.bf16.msra.mxu0 %v5386_v42 }
 0xa9f   :  { %4998 = vmatprep.subr.bf16.mxu0 %v6351_v9 }
 0xaa2   :  { %4999 = vmatpush3.bf16.msra.mxu0 %v5387_v43 }
 0xaa3   :  { %5004 = vmatprep.subr.bf16.mxu0 %v6351_v9 }
 0xb27   :  { %v1777_v33 = vpop.xlane.xlu1 %1776 }
 0xb28   :  { %v1781_v27 = vmul.f32 0.015625, %v1777_v33 }
 0xb29   :  { %v1780_v34 = vpop.xlane.xlu0 %1779 }
 0xb2a   :  { %v1783_v35 = vsub.f32 %v1771_v30, %v1781_v27  ;;  %v1782_v36 = vmul.f32 0.015625, %v1780_v34 }
 0xb2c   :  { %v1784_v37 = vsub.f32 %v1772_v25, %v1782_v36  ;;  %v1785_v38 = vmul.f32 %v1783_v35, %v1783_v35 }
 0xb2e   :  { %v1787_v39 = vsel %vm498_vm0, %v1785_v38, 0.0  ;;  %v1786_v40 = vmul.f32 %v1784_v37, %v1784_v37 }
 0xb2f   :  { %1788 = vadd.xlane.f32.xlu0 %v1787_v39 }
 0xb30   :  { %v1790_v61 = vsel %vm498_vm0, %v1786_v40, 0.0  ;;  %v4560_v40 = vld [vmem:[#allocation17] ss:$0 sm:$0xff] }
 0xb31   :  { %1791 = vadd.xlane.f32.xlu1 %v1790_v61 }
 0xbbc   :  { %v1789_v44 = vpop.xlane.xlu0 %1788 }
 0xbbd   :  { %v1793_v18 = vmul.f32 0.015625, %v1789_v44 }
 0xbbe   :  { %v1792_v45 = vpop.xlane.xlu1 %1791 }
 0xbbf   :  { %v1795_v46 = vadd.f32 1e-12, %v1793_v18  ;;  %v1794_v47 = vmul.f32 0.015625, %v1792_v45 }
 0xbc1   :  { %5600 = vrsqrt.f32 %v1795_v46  ;;  %v1796_v48 = vadd.f32 1e-12, %v1794_v47 }
 0xbc3   :  { %5602 = vrsqrt.f32 %v1796_v48 }
 0xbcb   :  { %v5601_v49 = vpop.eup %5600 }
 0xbcc   :  { %v1799_v52 = vmul.f32 %v5601_v49, %v1783_v35 }
 0xbcd   :  { %v5603_v53 = vpop.eup %5602 }
 0xbce   :  { %v1807_v54 = vmul.f32 %v4552_v50, %v1799_v52  ;;  %v1800_v55 = vmul.f32 %v5603_v53, %v1784_v37 }
 0xbd0   :  { %v1808_v56 = vmul.f32 %v4552_v50, %v1800_v55  ;;  %v6946_v57 = vadd.f32 %v4553_v51, %v1807_v54 }
 0xbd2   :  { %v6948_v58 = vadd.f32 %v4553_v51, %v1808_v56 }
 0xbd4   :  { %v1817_v59 = vpack.c.bf16 %v6948_v58, %v6946_v57 }
 0xbd6   :  { %5001 = vmatmul.mubr.msk.bf16.vlgmr.msra.gmra.mrb[48].mxu0 %vm498_vm0, %v1817_v59  ;;  %v5396_v59 = vld [vmem:[%s7311_s1] ss:$8 sps:$4 sm:$0xff]  }
 0xbd7   :  { %5020 = vmatprep.mubr.msk.bf16.mxu0 %vm6354_vm3, %v6351_v9  ;;  %5005 = vmatpush3.bf16.msra.mxu0 %v5388_v60  ;;  %v5401_v60 = vld [vmem:[%s7311_s1 + $0x14] ss:$8 sps:$4 sm:$0xff]  }
 0xbd8   :  { %5006 = vmatprep.subr.bf16.mxu0 %v6351_v9 }
 0xbdb   :  { %5007 = vmatpush3.bf16.msra.mxu0 %v5389_v63  ;;  %v5399_v63 = vld [vmem:[%s7311_s1 + $0x10] ss:$8 sps:$4 sm:$0xff]  }
 0xbdc   :  { %5008 = vmatprep.subr.bf16.mxu0 %v6351_v9 }
 0xbdf   :  { %5009 = vmatpush3.bf16.msra.mxu0 %v5390_v3  ;;  %v5404_v3 = vld [vmem:[%s7311_s1 + $0x24] ss:$8 sps:$4 sm:$0xff]  }
 0xbe0   :  { %5010 = vmatprep.subr.bf16.mxu0 %v6351_v9 }
 0xbe3   :  { %5011 = vmatpush3.bf16.msra.mxu0 %v5391_v5  ;;  %v5402_v5 = vld [vmem:[%s7311_s1 + $0x20] ss:$8 sps:$4 sm:$0xff]  }
 0xbe4   :  { %5012 = vmatprep.subr.bf16.mxu0 %v6351_v9 }
 0xbe7   :  { %5013 = vmatpush3.bf16.msra.mxu0 %v5392_v6  ;;  %v5405_v6 = vld [vmem:[%s7311_s1 + $0x30] ss:$8 sps:$4 sm:$0xff]  }
 0xbe8   :  { %5014 = vmatprep.subr.bf16.mxu0 %v6351_v9 }
 0xbeb   :  { %5015 = vmatpush3.bf16.msra.mxu0 %v5393_v7  ;;  %v5407_v7 = vld [vmem:[%s7311_s1 + $0x34] ss:$8 sps:$4 sm:$0xff]  }
 0xbec   :  { %5016 = vmatprep.subr.bf16.mxu0 %v6351_v9 }
 0xbef   :  { %5017 = vmatpush3.bf16.msra.mxu0 %v5394_v10 }
 0xbf0   :  { %5018 = vmatprep.subr.bf16.mxu0 %v6351_v9 }
 0xbf3   :  { %5019 = vmatpush3.bf16.msra.mxu0 %v5395_v11 }
 0xbf4   :  { %5036 = vmatprep.subr.bf16.mxu0 %v6351_v9 }
 0xca9   :  { %v1894_v13 = vpop.f32.mrb[48].mxu0 }
 0xcaa   :  { %v1895_v14 = vadd.f32 %v4554_v12, %v1894_v13  ;;  %v5002_v16 = vpop.f32.mrb[49].mxu0 }
 0xcab   :  { %v1897_v19 = vpop.f32.mrb[50].mxu0 }
 0xcac   :  { %v1901_v20 = vmul.f32 %v1895_v14, %v1895_v14  ;;  %v1898_v21 = vadd.f32 %v4554_v12, %v1897_v19  ;;  %v5003_v22 = vpop.f32.mrb[51].mxu0 }
 0xcae   :  { %v1903_v23 = vmul.f32 %v1901_v20, %v1895_v14  ;;  %v1902_v24 = vmul.f32 %v1898_v21, %v1898_v21  ;;  %v4569_v20 = vld [vmem:[#allocation19] ss:$0 sm:$0xff] }
 0xcb0   :  { %v1905_v15 = vmul.f32 0.044715, %v1903_v23  ;;  %v1904_v26 = vmul.f32 %v1902_v24, %v1898_v21 }
 0xcb2   :  { %v1907_v28 = vadd.f32 %v1905_v15, %v1895_v14  ;;  %v1906_v29 = vmul.f32 0.044715, %v1904_v26  ;;  %v4570_v15 = vld [vmem:[#allocation20] ss:$0 sm:$0xff] }
 0xcb4   :  { %v1909_v30 = vmul.f32 0.7978846, %v1907_v28  ;;  %v1908_v31 = vadd.f32 %v1906_v29, %v1898_v21 }
 0xcb6   :  { %5604 = vtanh.f32 %v1909_v30  ;;  %v1910_v25 = vmul.f32 0.7978846, %v1908_v31  ;;  %v2087_v31 = vld [vmem:[%s7312_s29] sm:$0x3] }
 0xcb8   :  { %5606 = vtanh.f32 %v1910_v25  ;;  %v2092_v25 = vrot.slane %v2087_v31, %v6747_v2 }
 0xcc0   :  { %v5605_v32 = vpop.eup %5604 }
 0xcc1   :  { %v1913_v33 = vadd.f32 1.0, %v5605_v32 }
 0xcc2   :  { %v5607_v27 = vpop.eup %5606 }
 0xcc3   :  { %v1915_v34 = vmul.f32 0.5, %v1913_v33  ;;  %v1914_v35 = vadd.f32 1.0, %v5607_v27  ;;  %v2096_v33 = vrot.slane %v2087_v31, %v6750_v4 }
 0xcc5   :  { %v1916_v36 = vmul.f32 0.5, %v1914_v35  ;;  %v1917_v37 = vmul.f32 %v1915_v34, %v1895_v14 }
 0xcc7   :  { %v1918_v38 = vmul.f32 %v1916_v36, %v1898_v21 }
 0xcc9   :  { %v1919_v39 = vpack.c.bf16 %v1918_v38, %v1917_v37 }
 0xccb   :  { %5021 = vmatmul.mubr.bf16.vlgmr.msra.gmra.mrb[52].mxu0 %v1919_v39 }
 0xccc   :  { %5038 = vmatprep.mubr.msk.bf16.mxu0 %vm6354_vm3, %v6351_v9 }
 0xd9e   :  { %v2025_v61 = vpop.f32.mrb[52].mxu0 }
 0xd9f   :  { %v2026_v41 = vadd.f32 %v4560_v40, %v2025_v61  ;;  %v5022_v62 = vpop.f32.mrb[53].mxu0 }
 0xda0   :  { %v2028_v42 = vpop.f32.mrb[54].mxu0 }
 0xda1   :  { %v2029_v43 = vadd.f32 %v4560_v40, %v2028_v42  ;;  %v5023_v44 = vpop.f32.mrb[55].mxu0  ;;  %v2032_v18 = vadd.f32 %v2026_v41, %v6946_v57 }
 0xda3   :  { %v2036_v45 = vsel %vm498_vm0, %v2032_v18, 0.0  ;;  %v2033_v46 = vadd.f32 %v2029_v43, %v6948_v58  ;;  %v5398_v58 = vld [vmem:[%s7311_s1 + $0x4] ss:$8 sps:$4 sm:$0xff]  }
 0xda4   :  { %2037 = vadd.xlane.f32.xlu0 %v2036_v45  ;;  %2142 = vmatprep.subr.bf16.mxu1 %v5398_v58 }
 0xda5   :  { %v2039_v47 = vsel %vm498_vm0, %v2033_v46, 0.0  ;;  %2143 = vmatpush1.bf16.msra.mxu1 %v5396_v59 }
 0xda6   :  { %2040 = vadd.xlane.f32.xlu1 %v2039_v47  ;;  %2144 = vmatprep.subr.bf16.mxu1 %v5401_v60 }
 0xda9   :  { %2145 = vmatpush1.bf16.msra.mxu1 %v5399_v63 }
 0xdaa   :  { %2146 = vmatprep.subr.bf16.mxu1 %v5404_v3 }
 0xdad   :  { %2147 = vmatpush1.bf16.msra.mxu1 %v5402_v5 }
 0xdae   :  { %2148 = vmatprep.subr.bf16.mxu1 %v5407_v7 }
 0xdb1   :  { %2149 = vmatpush1.bf16.msra.mxu1 %v5405_v6 }
 0xdb2   :  { %5024 = vmatprep.subr.bf16.mxu1 %v6351_v9 }
 0xe31   :  { %v2038_v48 = vpop.xlane.xlu0 %2037 }
 0xe32   :  { %v2042_v49 = vmul.f32 0.015625, %v2038_v48 }
 0xe33   :  { %v2041_v50 = vpop.xlane.xlu1 %2040 }
 0xe34   :  { %v2044_v52 = vsub.f32 %v2032_v18, %v2042_v49  ;;  %v2043_v53 = vmul.f32 0.015625, %v2041_v50 }
 0xe36   :  { %v2045_v54 = vsub.f32 %v2033_v46, %v2043_v53  ;;  %v2046_v55 = vmul.f32 %v2044_v52, %v2044_v52 }
 0xe38   :  { %v2048_v51 = vsel %vm498_vm0, %v2046_v55, 0.0  ;;  %v2047_v56 = vmul.f32 %v2045_v54, %v2045_v54 }
 0xe39   :  { %2049 = vadd.xlane.f32.xlu0 %v2048_v51 }
 0xe3a   :  { %v2051_v57 = vsel %vm498_vm0, %v2047_v56, 0.0 }
 0xe3b   :  { %2052 = vadd.xlane.f32.xlu1 %v2051_v57 }
 0xec6   :  { %v2050_v10 = vpop.xlane.xlu0 %2049 }
 0xec7   :  { %v2054_v11 = vmul.f32 0.015625, %v2050_v10 }
 0xec8   :  { %v2053_v12 = vpop.xlane.xlu1 %2052 }
 0xec9   :  { %v2056_v13 = vadd.f32 1e-12, %v2054_v11  ;;  %v2055_v14 = vmul.f32 0.015625, %v2053_v12 }
 0xecb   :  { %5608 = vrsqrt.f32 %v2056_v13  ;;  %v2057_v16 = vadd.f32 1e-12, %v2055_v14 }
 0xecd   :  { %5610 = vrsqrt.f32 %v2057_v16 }
 0xed5   :  { %v5609_v19 = vpop.eup %5608 }
 0xed6   :  { %v2060_v21 = vmul.f32 %v5609_v19, %v2044_v52 }
 0xed7   :  { %v5611_v22 = vpop.eup %5610 }
 0xed8   :  { %v2068_v23 = vmul.f32 %v4569_v20, %v2060_v21  ;;  %v2061_v24 = vmul.f32 %v5611_v22, %v2045_v54 }
 0xeda   :  { %v2069_v26 = vmul.f32 %v4569_v20, %v2061_v24  ;;  %v6988_v28 = vadd.f32 %v4570_v15, %v2068_v23 }
 0xedc   :  { %v6990_v29 = vadd.f32 %v4570_v15, %v2069_v26 }
 0xede   :  { %v2078_v30 = vpack.c.bf16 %v6990_v29, %v6988_v28 }
 0xee0   :  { %4579 = vmatmul.mubr.msk.bf16.vlgmr.msra.gmra.mrb[28].mxu1 %vm498_vm0, %v2078_v30 }
 0xee1   :  { %5026 = vmatprep.mubr.msk.bf16.mxu1 %vm6354_vm3, %v6351_v9 }
 0xfb3   :  { %v2176_v32 = vpop.f32.mrb[28].mxu1 }
 0xfb4   :  { %v2178_v27 = vpop.f32.mrb[29].mxu1  ;;  %v2177_v35 = vadd.f32 %v2176_v32, %v2092_v25 }
 0xfb5   :  { %v2180_v34 = vpop.f32.mrb[30].mxu1  ;;  %v7000_v38 = vadd.f32 %v2178_v27, %v2096_v33 }
 0xfb6   :  { %v2181_v36 = vadd.f32 %v2180_v34, %v2092_v25  ;;  %v2182_v37 = vpop.f32.mrb[31].mxu1  ;;  %v2205_v41 = vpack.c.bf16 %v2177_v35, %v2177_v35 }
 0xfb7   :  { %v7002_v39 = vadd.f32 %v2182_v37, %v2096_v33  ;;  %v2233_v19 = vpack.c.bf16 %v7000_v38, %v7000_v38 }
 0xfb8   :  { %v5328_v40 = vpack.i.bf16 %v2181_v36, %v2177_v35  ;;  %v2206_v62 = vpack.c.bf16 %v2181_v36, %v2181_v36 }
 0xfb9   :  { %v7006_v61 = vpack.i.bf16 %v7002_v39, %v7000_v38  ;;  %v2234_v20 = vpack.c.bf16 %v7002_v39, %v7002_v39  ;;  %v2701_v21 = vsel %vm1289_vm5, %v2233_v19, 0 }
 0xfba   :  { %5329 = vrot.lane.b32.xlu1 %v5328_v40, %s6353_s19  ;;  %5324 = vrot.lane.b32.xlu0 %v5328_v40, %s6352_s27 }
 0xfbb   :  { %v2747_v22 = vsel %vm1289_vm5, %v2234_v20, 0 }
 0xfbe   :  { %5334 = vrot.lane.b32.xlu1 %v5328_v40, %s6355_s4  ;;  %2242 = vrot.lane.b32.xlu0 %v2205_v41, %s6322_s2 }
 0xfc2   :  { %2291 = vrot.lane.b32.xlu1 %v2206_v62, %s6322_s2 }
0x102c   :  { %v5330_v42 = vpop.permute.xlu1 %5329  ;;  %v5325_v43 = vpop.permute.xlu0 %5324 }
0x102d   :  { %v5327_v44 = vunpack.i.h.bf16 %v5325_v43  ;;  %v5326_v18 = vunpack.i.l.bf16 %v5325_v43  ;;  %v5332_v45 = vunpack.i.h.bf16 %v5330_v42  ;;  %v5331_v46 = vunpack.i.l.bf16 %v5330_v42 }
0x102f   :  { %v2208_v47 = vpack.c.bf16 %v5327_v44, %v5327_v44  ;;  %v2207_v48 = vpack.c.bf16 %v5326_v18, %v5326_v18  ;;  %v2210_v55 = vpack.c.bf16 %v5332_v45, %v5332_v45  ;;  %v2209_v51 = vpack.c.bf16 %v5331_v46, %v5331_v46 }
0x1030   :  { %v5335_v49 = vpop.permute.xlu1 %5334  ;;  %v2243_v50 = vpop.permute.xlu0 %2242 }
0x1031   :  { %v2248_v52 = vsel %vm831_vm4, %v2243_v50, 0  ;;  %2389 = vrot.lane.b32.xlu1 %v2208_v47, %s6322_s2  ;;  %2340 = vrot.lane.b32.xlu0 %v2207_v48, %s6322_s2  ;;  %v5337_v53 = vunpack.i.h.bf16 %v5335_v49  ;;  %v5336_v54 = vunpack.i.l.bf16 %v5335_v49 }
0x1032   :  { %5025 = vmatpush3.bf16.xpose.msra.mxu1 %v2248_v52 }
0x1033   :  { %5030 = vmatprep.subr.bf16.mxu1 %v6351_v9  ;;  %v2212_v57 = vpack.c.bf16 %v5337_v53, %v5337_v53  ;;  %v2211_v58 = vpack.c.bf16 %v5336_v54, %v5336_v54 }
0x1034   :  { %v2292_v56 = vpop.permute.xlu1 %2291 }
0x1035   :  { %2487 = vrot.lane.b32.xlu1 %v2210_v55, %s6322_s2  ;;  %2438 = vrot.lane.b32.xlu0 %v2209_v51, %s6322_s2  ;;  %v2297_v59 = vsel %vm831_vm4, %v2292_v56, 0 }
0x1039   :  { %2585 = vrot.lane.b32.xlu1 %v2212_v57, %s6322_s2  ;;  %2536 = vrot.lane.b32.xlu0 %v2211_v58, %s6322_s2  ;;  %s7313_s2 = sld [smem:[#allocation73_spill]] }
0x103a   :  { %5027 = vmatmul.mubr.msk.bf16.vlgmr.msra.gmra.mrb[32].mxu1 %vm831_vm4, %v2205_v41 }
0x103b   :  { %5031 = vmatpush3.bf16.xpose.msra.mxu1 %v2297_v59  ;;  %5032 = vmatprep.mubr.msk.bf16.mxu1 %vm6354_vm3, %v6351_v9 }
0x103c   :  { %5042 = vmatprep.subr.bf16.mxu1 %v6351_v9 }
0x1042   :  { %5033 = vmatmul.mubr.msk.bf16.vlgmr.msra.gmra.mrb[36].mxu1 %vm831_vm4, %v2206_v62 }
0x1043   :  { %5044 = vmatprep.mubr.msk.bf16.mxu1 %vm6354_vm3, %v6351_v9 }
0x10a3   :  { %v2390_v60 = vpop.permute.xlu1 %2389  ;;  %v2341_v63 = vpop.permute.xlu0 %2340 }
0x10a4   :  { %v2395_v3 = vsel %vm831_vm4, %v2390_v60, 0  ;;  %v2346_v5 = vsel %vm831_vm4, %v2341_v63, 0 }
0x10a5   :  { %5037 = vmatpush3.bf16.xpose.msra.mxu0 %v2346_v5  ;;  %5043 = vmatpush3.bf16.xpose.msra.mxu1 %v2395_v3 }
0x10a6   :  { %5048 = vmatprep.subr.bf16.mxu0 %v6351_v9  ;;  %5054 = vmatprep.subr.bf16.mxu1 %v6351_v9 }
0x10a7   :  { %v2488_v6 = vpop.permute.xlu1 %2487  ;;  %v2439_v7 = vpop.permute.xlu0 %2438 }
0x10a8   :  { %v2493_v10 = vsel %vm831_vm4, %v2488_v6, 0  ;;  %v2444_v11 = vsel %vm831_vm4, %v2439_v7, 0 }
0x10ab   :  { %v2586_v12 = vpop.permute.xlu1 %2585  ;;  %v2537_v13 = vpop.permute.xlu0 %2536 }
0x10ac   :  { %5039 = vmatmul.mubr.msk.bf16.vlgmr.msra.gmra.mrb[56].mxu0 %vm831_vm4, %v2207_v48  ;;  %5045 = vmatmul.mubr.msk.bf16.vlgmr.msra.gmra.mrb[40].mxu1 %vm831_vm4, %v2208_v47  ;;  %v2591_v14 = vsel %vm831_vm4, %v2586_v12, 0  ;;  %v2542_v16 = vsel %vm831_vm4, %v2537_v13, 0 }
0x10ad   :  { %5049 = vmatpush3.bf16.xpose.msra.mxu0 %v2444_v11  ;;  %5055 = vmatpush3.bf16.xpose.msra.mxu1 %v2493_v10 }
0x10ae   :  { %5050 = vmatprep.mubr.msk.bf16.mxu0 %vm6354_vm3, %v6351_v9  ;;  %5056 = vmatprep.mubr.msk.bf16.mxu1 %vm6354_vm3, %v6351_v9 }
0x10af   :  { %5060 = vmatprep.subr.bf16.mxu0 %v6351_v9  ;;  %5066 = vmatprep.subr.bf16.mxu1 %v6351_v9 }
0x10b4   :  { %5051 = vmatmul.mubr.msk.bf16.vlgmr.msra.gmra.mrb[60].mxu0 %vm831_vm4, %v2209_v51  ;;  %5057 = vmatmul.mubr.msk.bf16.vlgmr.msra.gmra.mrb[44].mxu1 %vm831_vm4, %v2210_v55 }
0x10b5   :  { %5061 = vmatpush3.bf16.xpose.msra.mxu0 %v2542_v16  ;;  %5067 = vmatpush3.bf16.xpose.msra.mxu1 %v2591_v14 }
0x10b6   :  { %5062 = vmatprep.mubr.msk.bf16.mxu0 %vm6354_vm3, %v6351_v9  ;;  %5068 = vmatprep.mubr.msk.bf16.mxu1 %vm6354_vm3, %v6351_v9 }
0x10b7   :  { %5072 = vmatprep.subr.bf16.mxu0 %v6351_v9  ;;  %5078 = vmatprep.subr.bf16.mxu1 %v6351_v9 }
0x10bc   :  { %5063 = vmatmul.mubr.msk.bf16.vlgmr.msra.gmra.mrb[64].mxu0 %vm831_vm4, %v2211_v58  ;;  %5069 = vmatmul.mubr.msk.bf16.vlgmr.msra.gmra.mrb[48].mxu1 %vm831_vm4, %v2212_v57 }
0x10bd   :  { %5073 = vmatpush3.bf16.msra.mxu0 %v2701_v21  ;;  %5079 = vmatpush3.bf16.msra.mxu1 %v2747_v22 }
0x10be   :  { %5074 = vmatprep.mubr.msk.bf16.mxu0 %vm6354_vm3, %v6351_v9  ;;  %5084 = vmatprep.subr.bf16.mxu0 %v6351_v9 }
0x10bf   :  { %5080 = vmatprep.mubr.msk.bf16.mxu1 %vm6354_vm3, %v6351_v9  ;;  %5090 = vmatprep.subr.bf16.mxu1 %v6351_v9 }
0x110d   :  { %v2284_v23 = vpop.f32.mrb[32].mxu1 }
0x110e   :  { %v2285_v24 = vadd.f32 %v2284_v23, %v6828_v8  ;;  %v5028_v15 = vpop.f32.mrb[33].mxu1 }
0x110f   :  { %v2287_v26 = vpop.f32.mrb[34].mxu1 }
0x1110   :  { %v2633_v30 = vmul.f32 1.442695, %v2285_v24  ;;  %v5029_v31 = vpop.f32.mrb[35].mxu1 }
0x1112   :  { %5612 = vpow2.f32 %v2633_v30 }
0x1115   :  { %v2333_v25 = vpop.f32.mrb[36].mxu1 }
0x1116   :  { %v2334_v32 = vadd.f32 %v2333_v25, %v6832_v17  ;;  %v5034_v33 = vpop.f32.mrb[37].mxu1 }
0x1117   :  { %v2336_v27 = vpop.f32.mrb[38].mxu1 }
0x1118   :  { %v2635_v34 = vmul.f32 1.442695, %v2334_v32  ;;  %v5035_v35 = vpop.f32.mrb[39].mxu1 }
0x111a   :  { %5614 = vpow2.f32 %v2635_v34 }
0x111c   :  { %v7069_v36 = vpop.eup %5612 }
0x111d   :  { %v2649_v37 = vsel %vm1237_vm6, %v7069_v36, 0.0 }
0x111e   :  { %2650 = vadd.xlane.f32.xlu0 %v2649_v37 }
0x1124   :  { %v7073_v38 = vpop.eup %5614 }
0x1125   :  { %v2652_v39 = vsel %vm1237_vm6, %v7073_v38, 0.0 }
0x1126   :  { %2653 = vadd.xlane.f32.xlu1 %v2652_v39 }
0x1137   :  { %5339 = vrot.lane.b32.xlu1 %v7006_v61, %s6352_s27 }
0x117f   :  { %v2382_v40 = vpop.f32.mrb[56].mxu0  ;;  %v2431_v41 = vpop.f32.mrb[40].mxu1 }
0x1180   :  { %v2383_v62 = vadd.f32 %v2382_v40, %v6828_v8  ;;  %v2432_v42 = vadd.f32 %v2431_v41, %v6832_v17  ;;  %v5040_v43 = vpop.f32.mrb[57].mxu0  ;;  %v5046_v44 = vpop.f32.mrb[41].mxu1 }
0x1181   :  { %v2385_v18 = vpop.f32.mrb[58].mxu0  ;;  %v2434_v45 = vpop.f32.mrb[42].mxu1 }
0x1182   :  { %v2637_v46 = vmul.f32 1.442695, %v2383_v62  ;;  %v2639_v47 = vmul.f32 1.442695, %v2432_v42  ;;  %v5041_v48 = vpop.f32.mrb[59].mxu0  ;;  %v5047_v49 = vpop.f32.mrb[43].mxu1 }
0x1184   :  { %5616 = vpow2.f32 %v2637_v46 }
0x1185   :  { %5618 = vpow2.f32 %v2639_v47 }
0x1187   :  { %v2480_v50 = vpop.f32.mrb[60].mxu0  ;;  %v2529_v52 = vpop.f32.mrb[44].mxu1 }
0x1188   :  { %v2481_v53 = vadd.f32 %v2480_v50, %v6828_v8  ;;  %v2530_v54 = vadd.f32 %v2529_v52, %v6832_v17  ;;  %v5052_v55 = vpop.f32.mrb[61].mxu0  ;;  %v5058_v51 = vpop.f32.mrb[45].mxu1 }
0x1189   :  { %v2483_v56 = vpop.f32.mrb[62].mxu0  ;;  %v2532_v57 = vpop.f32.mrb[46].mxu1 }
0x118a   :  { %v2641_v58 = vmul.f32 1.442695, %v2481_v53  ;;  %v2643_v59 = vmul.f32 1.442695, %v2530_v54  ;;  %v5053_v60 = vpop.f32.mrb[63].mxu0  ;;  %v5059_v63 = vpop.f32.mrb[47].mxu1 }
0x118c   :  { %5620 = vpow2.f32 %v2641_v58 }
0x118d   :  { %5622 = vpow2.f32 %v2643_v59 }
0x118e   :  { %v7083_v3 = vpop.eup %5616 }
0x118f   :  { %v2578_v5 = vpop.f32.mrb[64].mxu0  ;;  %v2627_v6 = vpop.f32.mrb[48].mxu1  ;;  %v2655_v7 = vsel %vm1237_vm6, %v7083_v3, 0.0 }
0x1190   :  { %v7087_v10 = vpop.eup %5618  ;;  %v2579_v11 = vadd.f32 %v2578_v5, %v6828_v8  ;;  %v2628_v12 = vadd.f32 %v2627_v6, %v6832_v17  ;;  %v5070_v13 = vpop.f32.mrb[49].mxu1  ;;  %2656 = vadd.xlane.f32.xlu0 %v2655_v7 }
0x1191   :  { %v5064_v14 = vpop.f32.mrb[65].mxu0  ;;  %v2630_v19 = vpop.f32.mrb[50].mxu1  ;;  %v2658_v24 = vsel %vm1237_vm6, %v7087_v10, 0.0 }
0x1192   :  { %v2581_v16 = vpop.f32.mrb[66].mxu0  ;;  %v2645_v20 = vmul.f32 1.442695, %v2579_v11  ;;  %v2647_v21 = vmul.f32 1.442695, %v2628_v12  ;;  %v5071_v23 = vpop.f32.mrb[51].mxu1 }
0x1193   :  { %v5065_v22 = vpop.f32.mrb[67].mxu0 }
0x1194   :  { %5624 = vpow2.f32 %v2645_v20  ;;  %2659 = vadd.xlane.f32.xlu0 %v2658_v24 }
0x1195   :  { %5626 = vpow2.f32 %v2647_v21 }
0x1196   :  { %v7093_v15 = vpop.eup %5620 }
0x1197   :  { %v7095_v8 = vpop.eup %5622  ;;  %v2661_v17 = vsel %vm1237_vm6, %v7093_v15, 0.0 }
0x1198   :  { %v2664_v26 = vsel %vm1237_vm6, %v7095_v8, 0.0  ;;  %2662 = vadd.xlane.f32.xlu1 %v2661_v17 }
0x1199   :  { %2665 = vadd.xlane.f32.xlu0 %v2664_v26 }
0x119e   :  { %v7101_v30 = vpop.eup %5624 }
0x119f   :  { %v7103_v31 = vpop.eup %5626  ;;  %v2667_v25 = vsel %vm1237_vm6, %v7101_v30, 0.0 }
0x11a0   :  { %v2670_v32 = vsel %vm1237_vm6, %v7103_v31, 0.0  ;;  %2668 = vadd.xlane.f32.xlu1 %v2667_v25 }
0x11a1   :  { %2671 = vadd.xlane.f32.xlu0 %v2670_v32 }
0x11ab   :  { %v2651_v33 = vpop.xlane.xlu0 %2650 }
0x11ac   :  { %5628 = vrcp.f32 %v2651_v33 }
0x11b1   :  { %5349 = vrot.lane.b32.xlu1 %v7006_v61, %s6355_s4 }
0x11b3   :  { %v2654_v27 = vpop.xlane.xlu1 %2653 }
0x11b4   :  { %5630 = vrcp.f32 %v2654_v27 }
0x11b6   :  { %v5629_v34 = vpop.eup %5628 }
0x11b7   :  { %v2681_v35 = vmul.f32 %v5629_v34, %v7069_v36  ;;  %v5340_v37 = vpop.permute.xlu1 %5339  ;;  %5344 = vrot.lane.b32.xlu0 %v7006_v61, %s6353_s19 }
0x11b8   :  { %v5341_v39 = vunpack.i.l.bf16 %v5340_v37  ;;  %v5342_v62 = vunpack.i.h.bf16 %v5340_v37  ;;  %v5408_v37 = vld [vmem:[#allocation22] sm:$0xff]  }
0x11b9   :  { %v2689_v40 = vpack.c.bf16 %v2681_v35, %v2681_v35 }
0x11ba   :  { %v2235_v41 = vpack.c.bf16 %v5341_v39, %v5341_v39  ;;  %v2236_v44 = vpack.c.bf16 %v5342_v62, %v5342_v62 }
0x11bb   :  { %5075 = vmatmul.mubr.msk.bf16.vlgmr.msra.gmra.mrb[68].mxu0 %vm1237_vm6, %v2689_v40 }
0x11bc   :  { %v2793_v42 = vsel %vm1289_vm5, %v2235_v41, 0  ;;  %5086 = vmatprep.mubr.msk.bf16.mxu0 %vm6354_vm3, %v6351_v9  ;;  %v2839_v61 = vsel %vm1289_vm5, %v2236_v44, 0  ;;  %v5409_v44 = vld [vmem:[#allocation22 + $0x8] sm:$0xff]  }
0x11bd   :  { %5085 = vmatpush3.bf16.msra.mxu0 %v2793_v42 }
0x11be   :  { %v5631_v43 = vpop.eup %5630  ;;  %5096 = vmatprep.subr.bf16.mxu0 %v6351_v9 }
0x11bf   :  { %v2682_v36 = vmul.f32 %v5631_v43, %v7073_v38 }
0x11c1   :  { %v2690_v18 = vpack.c.bf16 %v2682_v36, %v2682_v36 }
0x11c3   :  { %5081 = vmatmul.mubr.msk.bf16.vlgmr.msra.gmra.mrb[52].mxu1 %vm1237_vm6, %v2690_v18 }
0x11c4   :  { %5091 = vmatpush3.bf16.msra.mxu1 %v2839_v61  ;;  %5092 = vmatprep.mubr.msk.bf16.mxu1 %vm6354_vm3, %v6351_v9 }
0x11c5   :  { %5102 = vmatprep.subr.bf16.mxu1 %v6351_v9 }
0x121d   :  { %v2657_v45 = vpop.xlane.xlu0 %2656 }
0x121e   :  { %5632 = vrcp.f32 %v2657_v45  ;;  %v5410_v45 = vld [vmem:[#allocation22 + $0x10] sm:$0xff]  }
0x1221   :  { %v2660_v46 = vpop.xlane.xlu0 %2659 }
0x1222   :  { %5634 = vrcp.f32 %v2660_v46  ;;  %v5411_v46 = vld [vmem:[#allocation22 + $0x18] sm:$0xff]  }
0x1225   :  { %v2663_v47 = vpop.xlane.xlu1 %2662 }
0x1226   :  { %v2666_v48 = vpop.xlane.xlu0 %2665  ;;  %5636 = vrcp.f32 %v2663_v47 }
0x1227   :  { %5638 = vrcp.f32 %v2666_v48 }
0x1228   :  { %v5633_v38 = vpop.eup %5632 }
0x1229   :  { %v2683_v49 = vmul.f32 %v5633_v38, %v7083_v3 }
0x122b   :  { %v2691_v50 = vpack.c.bf16 %v2683_v49, %v2683_v49 }
0x122c   :  { %v5635_v52 = vpop.eup %5634 }
0x122d   :  { %v2684_v53 = vmul.f32 %v5635_v52, %v7087_v10  ;;  %5087 = vmatmul.mubr.msk.bf16.vlgmr.msra.gmra.mrb[72].mxu0 %vm1237_vm6, %v2691_v50  ;;  %v2669_v54 = vpop.xlane.xlu1 %2668 }
0x122e   :  { %v2672_v55 = vpop.xlane.xlu0 %2671  ;;  %5098 = vmatprep.mubr.msk.bf16.mxu0 %vm6354_vm3, %v6351_v9  ;;  %5640 = vrcp.f32 %v2669_v54 }
0x122f   :  { %v2692_v51 = vpack.c.bf16 %v2684_v53, %v2684_v53  ;;  %5642 = vrcp.f32 %v2672_v55 }
0x1230   :  { %v5637_v56 = vpop.eup %5636 }
0x1231   :  { %5093 = vmatmul.mubr.msk.bf16.vlgmr.msra.gmra.mrb[56].mxu1 %vm1237_vm6, %v2692_v51  ;;  %v5350_v57 = vpop.permute.xlu1 %5349  ;;  %v5639_v58 = vpop.eup %5638  ;;  %v2685_v7 = vmul.f32 %v5637_v56, %v7093_v15 }
0x1232   :  { %v5345_v59 = vpop.permute.xlu0 %5344  ;;  %5104 = vmatprep.mubr.msk.bf16.mxu1 %vm6354_vm3, %v6351_v9  ;;  %v5352_v3 = vunpack.i.h.bf16 %v5350_v57  ;;  %v5351_v5 = vunpack.i.l.bf16 %v5350_v57  ;;  %v2686_v6 = vmul.f32 %v5639_v58, %v7095_v8 }
0x1233   :  { %v5347_v60 = vunpack.i.h.bf16 %v5345_v59  ;;  %v5346_v63 = vunpack.i.l.bf16 %v5345_v59  ;;  %v2693_v20 = vpack.c.bf16 %v2685_v7, %v2685_v7 }
0x1234   :  { %v2240_v12 = vpack.c.bf16 %v5352_v3, %v5352_v3  ;;  %v2239_v13 = vpack.c.bf16 %v5351_v5, %v5351_v5  ;;  %v2694_v21 = vpack.c.bf16 %v2686_v6, %v2686_v6 }
0x1235   :  { %v2238_v10 = vpack.c.bf16 %v5347_v60, %v5347_v60  ;;  %v2237_v11 = vpack.c.bf16 %v5346_v63, %v5346_v63 }
0x1236   :  { %v2977_v23 = vsel %vm1289_vm5, %v2239_v13, 0  ;;  %v3023_v24 = vsel %vm1289_vm5, %v2240_v12, 0 }
0x1237   :  { %v2885_v14 = vsel %vm1289_vm5, %v2237_v11, 0  ;;  %v2931_v16 = vsel %vm1289_vm5, %v2238_v10, 0 }
0x1238   :  { %5097 = vmatpush3.bf16.msra.mxu0 %v2885_v14  ;;  %5103 = vmatpush3.bf16.msra.mxu1 %v2931_v16  ;;  %v5641_v19 = vpop.eup %5640 }
0x1239   :  { %5108 = vmatprep.subr.bf16.mxu0 %v6351_v9  ;;  %5114 = vmatprep.subr.bf16.mxu1 %v6351_v9  ;;  %v5643_v22 = vpop.eup %5642  ;;  %v2687_v8 = vmul.f32 %v5641_v19, %v7101_v30 }
0x123a   :  { %v2688_v15 = vmul.f32 %v5643_v22, %v7103_v31 }
0x123b   :  { %5099 = vmatmul.mubr.msk.bf16.vlgmr.msra.gmra.mrb[76].mxu0 %vm1237_vm6, %v2693_v20  ;;  %5105 = vmatmul.mubr.msk.bf16.vlgmr.msra.gmra.mrb[60].mxu1 %vm1237_vm6, %v2694_v21  ;;  %v2695_v17 = vpack.c.bf16 %v2687_v8, %v2687_v8 }
0x123c   :  { %5109 = vmatpush3.bf16.msra.mxu0 %v2977_v23  ;;  %5115 = vmatpush3.bf16.msra.mxu1 %v3023_v24  ;;  %v2696_v26 = vpack.c.bf16 %v2688_v15, %v2688_v15 }
0x123d   :  { %5110 = vmatprep.mubr.msk.bf16.mxu0 %vm6354_vm3, %v6351_v9  ;;  %5116 = vmatprep.mubr.msk.bf16.mxu1 %vm6354_vm3, %v6351_v9 }
0x123e   :  { %5120 = vmatprep.subr.bf16.mxu0 %v6351_v9  ;;  %5132 = vmatprep.subr.bf16.mxu1 %v6351_v9 }
0x1243   :  { %5111 = vmatmul.mubr.msk.bf16.vlgmr.msra.gmra.mrb[80].mxu0 %vm1237_vm6, %v2695_v17  ;;  %5117 = vmatmul.mubr.msk.bf16.vlgmr.msra.gmra.mrb[64].mxu1 %vm1237_vm6, %v2696_v26  ;;  %v4596_v17 = vld [vmem:[#allocation23] ss:$0 sm:$0xff] }
0x1244   :  { %5128 = vmatprep.mubr.msk.bf16.mxu0 %vm6354_vm3, %v6351_v9  ;;  %5140 = vmatprep.mubr.msk.bf16.mxu1 %vm6354_vm3, %v6351_v9 }
0x1245   :  { %5121 = vmatpush3.bf16.msra.mxu0 %v5408_v37 }
0x1246   :  { %5122 = vmatprep.subr.bf16.mxu0 %v6351_v9 }
0x1249   :  { %5123 = vmatpush3.bf16.msra.mxu0 %v5409_v44 }
0x124a   :  { %5124 = vmatprep.subr.bf16.mxu0 %v6351_v9 }
0x124d   :  { %5125 = vmatpush3.bf16.msra.mxu0 %v5410_v45  ;;  %v5414_v45 = vld [vmem:[#allocation28 + $0x10] sm:$0xff]  }
0x124e   :  { %5126 = vmatprep.subr.bf16.mxu0 %v6351_v9 }
0x1251   :  { %5127 = vmatpush3.bf16.msra.mxu0 %v5411_v46  ;;  %v5415_v46 = vld [vmem:[#allocation28 + $0x18] sm:$0xff]  }
0x1252   :  { %5144 = vmatprep.subr.bf16.mxu0 %v6351_v9 }
0x128e   :  { %v2737_v30 = vpop.f32.mrb[68].mxu0 }
0x128f   :  { %v5076_v31 = vpop.f32.mrb[69].mxu0 }
0x1290   :  { %v2740_v25 = vpop.f32.mrb[70].mxu0 }
0x1291   :  { %v5077_v32 = vpop.f32.mrb[71].mxu0 }
0x1296   :  { %v2783_v33 = vpop.f32.mrb[52].mxu1 }
0x1297   :  { %v5082_v27 = vpop.f32.mrb[53].mxu1 }
0x1298   :  { %v2786_v34 = vpop.f32.mrb[54].mxu1 }
0x1299   :  { %v5083_v35 = vpop.f32.mrb[55].mxu1 }
0x1300   :  { %v2829_v39 = vpop.f32.mrb[72].mxu0 }
0x1301   :  { %v5088_v40 = vpop.f32.mrb[73].mxu0 }
0x1302   :  { %v2832_v41 = vpop.f32.mrb[74].mxu0 }
0x1303   :  { %v5089_v62 = vpop.f32.mrb[75].mxu0 }
0x1304   :  { %v2875_v42 = vpop.f32.mrb[56].mxu1 }
0x1305   :  { %v5353_v43 = vpack.i.bf16 %v2875_v42, %v2829_v39  ;;  %v5094_v36 = vpop.f32.mrb[57].mxu1 }
0x1306   :  { %v2878_v18 = vpop.f32.mrb[58].mxu1 }
0x1307   :  { %v5095_v61 = vpop.f32.mrb[59].mxu1  ;;  %5354 = vrot.lane.b32.xlu1 %v5353_v43, %s6357_s6 }
0x1308   :  { %v5412_v61 = vld [vmem:[#allocation28] sm:$0xff]  }
0x1309   :  { %5133 = vmatpush3.bf16.msra.mxu1 %v5412_v61 }
0x130a   :  { %5134 = vmatprep.subr.bf16.mxu1 %v6351_v9 }
0x130e   :  { %v2921_v47 = vpop.f32.mrb[76].mxu0  ;;  %v2967_v48 = vpop.f32.mrb[60].mxu1 }
0x130f   :  { %v5358_v38 = vpack.i.bf16 %v2967_v48, %v2921_v47  ;;  %v5100_v49 = vpop.f32.mrb[77].mxu0  ;;  %v5106_v50 = vpop.f32.mrb[61].mxu1 }
0x1310   :  { %v2924_v52 = vpop.f32.mrb[78].mxu0  ;;  %v2970_v53 = vpop.f32.mrb[62].mxu1 }
0x1311   :  { %v5107_v54 = vpop.f32.mrb[63].mxu1  ;;  %5359 = vrot.lane.b32.xlu0 %v5358_v38, %s6358_s26  ;;  %v5101_v55 = vpop.f32.mrb[79].mxu0 }
0x1312   :  { %v4602_v55 = vld [vmem:[#allocation25] ss:$0 sm:$0xff] }
0x1316   :  { %v3013_v51 = vpop.f32.mrb[80].mxu0  ;;  %v3059_v56 = vpop.f32.mrb[64].mxu1 }
0x1317   :  { %v5363_v57 = vpack.i.bf16 %v3059_v56, %v3013_v51  ;;  %v5112_v58 = vpop.f32.mrb[81].mxu0  ;;  %v5118_v59 = vpop.f32.mrb[65].mxu1 }
0x1318   :  { %v3016_v60 = vpop.f32.mrb[82].mxu0  ;;  %v3062_v63 = vpop.f32.mrb[66].mxu1  ;;  %v4603_v58 = vld [vmem:[#allocation26] ss:$0 sm:$0xff] }
0x1319   :  { %v5119_v3 = vpop.f32.mrb[67].mxu1  ;;  %5364 = vrot.lane.b32.xlu1 %v5363_v57, %s6359_s28  ;;  %v5113_v5 = vpop.f32.mrb[83].mxu0 }
0x131a   :  { %v5416_v5 = vld [vmem:[%s7313_s2] sm:$0xff]  }
0x1379   :  { %v5355_v6 = vpop.permute.xlu1 %5354 }
0x137a   :  { %v5357_v10 = vunpack.i.h.bf16 %v5355_v6  ;;  %v5356_v11 = vunpack.i.l.bf16 %v5355_v6  ;;  %v5417_v6 = vld [vmem:[%s7313_s2 + $0x8] sm:$0xff]  }
0x137c   :  { %v3090_v16 = vsel %vm831_vm4, %v2783_v33, %v5357_v10  ;;  %v3089_v19 = vsel %vm831_vm4, %v2737_v30, %v5356_v11  ;;  %v5419_v10 = vld [vmem:[%s7313_s2 + $0x18] sm:$0xff]   ;;  %v5420_v11 = vld [vmem:[%s7313_s2 + $0x20] sm:$0xff]  }
0x1383   :  { %v5360_v7 = vpop.permute.xlu0 %5359 }
0x1384   :  { %v5362_v12 = vunpack.i.h.bf16 %v5360_v7  ;;  %v5361_v13 = vunpack.i.l.bf16 %v5360_v7  ;;  %v5418_v7 = vld [vmem:[%s7313_s2 + $0x10] sm:$0xff]  }
0x1386   :  { %v3092_v22 = vsel %vm1681_vm7, %v3090_v16, %v5362_v12  ;;  %v3091_v23 = vsel %vm1681_vm7, %v3089_v19, %v5361_v13  ;;  %v5421_v12 = vld [vmem:[%s7313_s2 + $0x28] sm:$0xff]   ;;  %v5422_v13 = vld [vmem:[%s7313_s2 + $0x30] sm:$0xff]   ;;  %v4604_v16 = vld [vmem:[#allocation29] ss:$0 sm:$0xff] }
0x138b   :  { %v5365_v14 = vpop.permute.xlu1 %5364 }
0x138c   :  { %v5367_v20 = vunpack.i.h.bf16 %v5365_v14  ;;  %v5366_v21 = vunpack.i.l.bf16 %v5365_v14  ;;  %v5423_v14 = vld [vmem:[%s7313_s2 + $0x38] sm:$0xff]  }
0x138e   :  { %v3094_v24 = vsel %vm1684_vm8, %v3092_v22, %v5367_v20  ;;  %v3093_v15 = vsel %vm1684_vm8, %v3091_v23, %v5366_v21 }
0x138f   :  { %v3095_v8 = vpack.c.bf16 %v3094_v24, %v3093_v15 }
0x1391   :  { %5129 = vmatmul.mubr.msk.bf16.vlgmr.msra.gmra.mrb[84].mxu0 %vm498_vm0, %v3095_v8 }
0x1392   :  { %5160 = vmatprep.mubr.msk.bf16.mxu0 %vm6354_vm3, %v6351_v9  ;;  %5145 = vmatpush3.bf16.msra.mxu0 %v5416_v5 }
0x1393   :  { %5146 = vmatprep.subr.bf16.mxu0 %v6351_v9 }
0x1396   :  { %5147 = vmatpush3.bf16.msra.mxu0 %v5417_v6 }
0x1397   :  { %5148 = vmatprep.subr.bf16.mxu0 %v6351_v9 }
0x139a   :  { %5149 = vmatpush3.bf16.msra.mxu0 %v5418_v7 }
0x139b   :  { %5150 = vmatprep.subr.bf16.mxu0 %v6351_v9 }
0x139e   :  { %5151 = vmatpush3.bf16.msra.mxu0 %v5419_v10 }
0x139f   :  { %5152 = vmatprep.subr.bf16.mxu0 %v6351_v9 }
0x13a2   :  { %5153 = vmatpush3.bf16.msra.mxu0 %v5420_v11 }
0x13a3   :  { %5154 = vmatprep.subr.bf16.mxu0 %v6351_v9 }
0x13a6   :  { %5155 = vmatpush3.bf16.msra.mxu0 %v5421_v12 }
0x13a7   :  { %5156 = vmatprep.subr.bf16.mxu0 %v6351_v9 }
0x13aa   :  { %5157 = vmatpush3.bf16.msra.mxu0 %v5422_v13 }
0x13ab   :  { %5158 = vmatprep.subr.bf16.mxu0 %v6351_v9 }
0x13ae   :  { %5159 = vmatpush3.bf16.msra.mxu0 %v5423_v14  ;;  %v4619_v14 = vld [vmem:[%s7314_s7] ss:$0 sm:$0xff] }
0x1464   :  { %v3172_v26 = vpop.f32.mrb[84].mxu0 }
0x1465   :  { %v3173_v31 = vadd.f32 %v4596_v17, %v3172_v26  ;;  %v5130_v30 = vpop.f32.mrb[85].mxu0 }
0x1466   :  { %v3175_v25 = vpop.f32.mrb[86].mxu0 }
0x1467   :  { %v3176_v32 = vadd.f32 %v4596_v17, %v3175_v25  ;;  %v5131_v33 = vpop.f32.mrb[87].mxu0  ;;  %v3179_v27 = vadd.f32 %v3173_v31, %v6988_v28 }
0x1469   :  { %v3183_v34 = vsel %vm498_vm0, %v3179_v27, 0.0  ;;  %v3180_v35 = vadd.f32 %v3176_v32, %v6990_v29  ;;  %v5413_v29 = vld [vmem:[#allocation28 + $0x8] sm:$0xff]  }
0x146a   :  { %3184 = vadd.xlane.f32.xlu0 %v3183_v34  ;;  %5135 = vmatpush3.bf16.msra.mxu1 %v5413_v29 }
0x146b   :  { %v3186_v37 = vsel %vm498_vm0, %v3180_v35, 0.0  ;;  %5136 = vmatprep.subr.bf16.mxu1 %v6351_v9 }
0x146c   :  { %3187 = vadd.xlane.f32.xlu1 %v3186_v37 }
0x146e   :  { %5137 = vmatpush3.bf16.msra.mxu1 %v5414_v45 }
0x146f   :  { %5138 = vmatprep.subr.bf16.mxu1 %v6351_v9 }
0x1472   :  { %5139 = vmatpush3.bf16.msra.mxu1 %v5415_v46 }
0x1473   :  { %5164 = vmatprep.subr.bf16.mxu1 %v6351_v9 }
0x14f7   :  { %v3185_v39 = vpop.xlane.xlu0 %3184 }
0x14f8   :  { %v3189_v40 = vmul.f32 0.015625, %v3185_v39 }
0x14f9   :  { %v3188_v41 = vpop.xlane.xlu1 %3187 }
0x14fa   :  { %v3191_v62 = vsub.f32 %v3179_v27, %v3189_v40  ;;  %v3190_v42 = vmul.f32 0.015625, %v3188_v41 }
0x14fc   :  { %v3192_v43 = vsub.f32 %v3180_v35, %v3190_v42  ;;  %v3193_v36 = vmul.f32 %v3191_v62, %v3191_v62 }
0x14fe   :  { %v3195_v44 = vsel %vm498_vm0, %v3193_v36, 0.0  ;;  %v3194_v18 = vmul.f32 %v3192_v43, %v3192_v43  ;;  %v4610_v36 = vld [vmem:[#allocation31] ss:$0 sm:$0xff] }
0x14ff   :  { %3196 = vadd.xlane.f32.xlu0 %v3195_v44 }
0x1500   :  { %v3198_v28 = vsel %vm498_vm0, %v3194_v18, 0.0 }
0x1503   :  { %3199 = vadd.xlane.f32.xlu0 %v3198_v28 }
0x158c   :  { %v3197_v47 = vpop.xlane.xlu0 %3196 }
0x158d   :  { %v3201_v48 = vmul.f32 0.015625, %v3197_v47 }
0x158f   :  { %v3203_v38 = vadd.f32 1e-12, %v3201_v48 }
0x1590   :  { %v3200_v49 = vpop.xlane.xlu0 %3199 }
0x1591   :  { %5644 = vrsqrt.f32 %v3203_v38  ;;  %v3202_v50 = vmul.f32 0.015625, %v3200_v49 }
0x1593   :  { %v3204_v52 = vadd.f32 1e-12, %v3202_v50 }
0x1595   :  { %5646 = vrsqrt.f32 %v3204_v52 }
0x159b   :  { %v5645_v53 = vpop.eup %5644 }
0x159c   :  { %v3207_v54 = vmul.f32 %v5645_v53, %v3191_v62 }
0x159e   :  { %v3215_v56 = vmul.f32 %v4602_v55, %v3207_v54 }
0x159f   :  { %v5647_v51 = vpop.eup %5646 }
0x15a0   :  { %v3208_v57 = vmul.f32 %v5647_v51, %v3192_v43  ;;  %v7183_v60 = vadd.f32 %v4603_v58, %v3215_v56 }
0x15a2   :  { %v3216_v59 = vmul.f32 %v4602_v55, %v3208_v57 }
0x15a4   :  { %v7185_v63 = vadd.f32 %v4603_v58, %v3216_v59  ;;  %v5424_v59 = vld [vmem:[#allocation34] sm:$0xff]  }
0x15a6   :  { %v3225_v3 = vpack.c.bf16 %v7185_v63, %v7183_v60 }
0x15a8   :  { %5141 = vmatmul.mubr.msk.bf16.vlgmr.msra.gmra.mrb[68].mxu1 %vm498_vm0, %v3225_v3  ;;  %v5427_v3 = vld [vmem:[#allocation34 + $0x18] sm:$0xff]  }
0x15a9   :  { %5172 = vmatprep.mubr.msk.bf16.mxu1 %vm6354_vm3, %v6351_v9  ;;  %5165 = vmatpush3.bf16.msra.mxu1 %v5424_v59  ;;  %v5469_v59 = vld [vmem:[#allocation37 + $0x54] ss:$8 sps:$4 sm:$0xff]  }
0x15aa   :  { %5166 = vmatprep.subr.bf16.mxu1 %v6351_v9 }
0x167b   :  { %v3302_v19 = vpop.f32.mrb[68].mxu1 }
0x167c   :  { %v3303_v20 = vadd.f32 %v4604_v16, %v3302_v19  ;;  %v5142_v21 = vpop.f32.mrb[69].mxu1 }
0x167d   :  { %v3305_v22 = vpop.f32.mrb[70].mxu1 }
0x167e   :  { %v3309_v23 = vmul.f32 %v3303_v20, %v3303_v20  ;;  %v3306_v24 = vadd.f32 %v4604_v16, %v3305_v22  ;;  %v5143_v15 = vpop.f32.mrb[71].mxu1 }
0x1680   :  { %v3311_v8 = vmul.f32 %v3309_v23, %v3303_v20  ;;  %v3310_v17 = vmul.f32 %v3306_v24, %v3306_v24 }
0x1682   :  { %v3313_v26 = vmul.f32 0.044715, %v3311_v8  ;;  %v3312_v31 = vmul.f32 %v3310_v17, %v3306_v24 }
0x1684   :  { %v3315_v30 = vadd.f32 %v3313_v26, %v3303_v20  ;;  %v3314_v25 = vmul.f32 0.044715, %v3312_v31 }
0x1686   :  { %v3317_v32 = vmul.f32 0.7978846, %v3315_v30  ;;  %v3316_v33 = vadd.f32 %v3314_v25, %v3306_v24 }
0x1688   :  { %5648 = vtanh.f32 %v3317_v32  ;;  %v3318_v27 = vmul.f32 0.7978846, %v3316_v33  ;;  %v5430_v32 = vld [vmem:[%s7315_s10 + $0x4] ss:$16 sps:$4 sm:$0xff]   ;;  %v5433_v33 = vld [vmem:[%s7315_s10 + $0xc] ss:$16 sps:$4 sm:$0xff]  }
0x1689   :  { %3742 = vmatprep.subr.bf16.mxu0 %v5433_v33  ;;  %v5553_v33 = vld [vmem:[#allocation40 + $0x10] sm:$0xff]  }
0x168a   :  { %5650 = vtanh.f32 %v3318_v27  ;;  %v5428_v27 = vld [vmem:[%s7315_s10] ss:$16 sps:$4 sm:$0xff]  }
0x1692   :  { %v5649_v34 = vpop.eup %5648 }
0x1693   :  { %v3321_v35 = vadd.f32 1.0, %v5649_v34  ;;  %v5431_v34 = vld [vmem:[%s7315_s10 + $0x8] ss:$16 sps:$4 sm:$0xff]  }
0x1694   :  { %v5651_v37 = vpop.eup %5650 }
0x1695   :  { %v3323_v39 = vmul.f32 0.5, %v3321_v35  ;;  %v3322_v40 = vadd.f32 1.0, %v5651_v37  ;;  %v5436_v35 = vld [vmem:[%s7315_s10 + $0x24] ss:$16 sps:$4 sm:$0xff]   ;;  %v5439_v37 = vld [vmem:[%s7315_s10 + $0x2c] ss:$16 sps:$4 sm:$0xff]  }
0x1697   :  { %v3324_v41 = vmul.f32 0.5, %v3322_v40  ;;  %v3325_v62 = vmul.f32 %v3323_v39, %v3303_v20  ;;  %v4620_v20 = vld [vmem:[#allocation32] ss:$0 sm:$0xff]  ;;  %v5434_v39 = vld [vmem:[%s7315_s10 + $0x20] ss:$16 sps:$4 sm:$0xff]  }
0x1698   :  { %v5437_v40 = vld [vmem:[%s7315_s10 + $0x28] ss:$16 sps:$4 sm:$0xff]  }
0x1699   :  { %v3326_v42 = vmul.f32 %v3324_v41, %v3306_v24  ;;  %v5445_v41 = vld [vmem:[%s7315_s10 + $0x4c] ss:$16 sps:$4 sm:$0xff]  }
0x169b   :  { %v3327_v43 = vpack.c.bf16 %v3326_v42, %v3325_v62  ;;  %v5440_v62 = vld [vmem:[%s7315_s10 + $0x40] ss:$16 sps:$4 sm:$0xff]   ;;  %v5443_v42 = vld [vmem:[%s7315_s10 + $0x48] ss:$16 sps:$4 sm:$0xff]  }
0x169d   :  { %5161 = vmatmul.mubr.bf16.vlgmr.msra.gmra.mrb[88].mxu0 %v3327_v43  ;;  %v5448_v43 = vld [vmem:[%s7315_s10 + $0x64] ss:$16 sps:$4 sm:$0xff]  }
0x169e   :  { %3774 = vmatprep.mubr.bf16.mxu0 %v6350_v0  ;;  %3743 = vmatpush1.bf16.msra.mxu0 %v5431_v34  ;;  %v5555_v34 = vld [vmem:[#allocation40 + $0x18] sm:$0xff]  }
0x169f   :  { %3744 = vmatprep.subr.bf16.mxu0 %v5439_v37  ;;  %v5557_v37 = vld [vmem:[#allocation40 + $0x20] sm:$0xff]  }
0x16a2   :  { %3745 = vmatpush1.bf16.msra.mxu0 %v5437_v40  ;;  %v5559_v40 = vld [vmem:[#allocation40 + $0x28] sm:$0xff]  }
0x16a3   :  { %3746 = vmatprep.subr.bf16.mxu0 %v5445_v41  ;;  %v3612_v41 = vsub.s32 3, %v6744_v1 }
0x16a6   :  { %3747 = vmatpush1.bf16.msra.mxu0 %v5443_v42 }
0x1770   :  { %v3433_v44 = vpop.f32.mrb[88].mxu0 }
0x1771   :  { %v3434_v18 = vadd.f32 %v4610_v36, %v3433_v44  ;;  %v5162_v28 = vpop.f32.mrb[89].mxu0  ;;  %v5446_v44 = vld [vmem:[%s7315_s10 + $0x60] ss:$16 sps:$4 sm:$0xff]  }
0x1772   :  { %v3436_v61 = vpop.f32.mrb[90].mxu0  ;;  %v5454_v28 = vld [vmem:[#allocation37 + $0x4] ss:$8 sps:$4 sm:$0xff]  }
0x1773   :  { %v3437_v29 = vadd.f32 %v4610_v36, %v3436_v61  ;;  %v5163_v45 = vpop.f32.mrb[91].mxu0  ;;  %v3440_v46 = vadd.f32 %v3434_v18, %v7183_v60  ;;  %v5425_v60 = vld [vmem:[#allocation34 + $0x8] sm:$0xff]   ;;  %v4621_v61 = vld [vmem:[%s7316_s30] ss:$0 sm:$0xff] }
0x1774   :  { %5167 = vmatpush3.bf16.msra.mxu1 %v5425_v60  ;;  %v5451_v36 = vld [vmem:[%s7315_s10 + $0x6c] ss:$16 sps:$4 sm:$0xff]   ;;  %v5449_v18 = vld [vmem:[%s7315_s10 + $0x68] ss:$16 sps:$4 sm:$0xff]  }
0x1775   :  { %v3444_v47 = vsel %vm498_vm0, %v3440_v46, 0.0  ;;  %v3441_v48 = vadd.f32 %v3437_v29, %v7185_v63  ;;  %5168 = vmatprep.subr.bf16.mxu1 %v6351_v9  ;;  %v5426_v63 = vld [vmem:[#allocation34 + $0x10] sm:$0xff]   ;;  %3748 = vmatprep.subr.bf16.mxu0 %v5451_v36 }
0x1776   :  { %3445 = vadd.xlane.f32.xlu0 %v3444_v47  ;;  %3749 = vmatpush1.bf16.msra.mxu0 %v5449_v18  ;;  %v5467_v60 = vld [vmem:[#allocation37 + $0x50] ss:$8 sps:$4 sm:$0xff]  }
0x1777   :  { %v3447_v38 = vsel %vm498_vm0, %v3441_v48, 0.0 }
0x1778   :  { %3448 = vadd.xlane.f32.xlu1 %v3447_v38  ;;  %5169 = vmatpush3.bf16.msra.mxu1 %v5426_v63  ;;  %v5472_v63 = vld [vmem:[#allocation37 + $0x64] ss:$8 sps:$4 sm:$0xff]  }
0x1779   :  { %5170 = vmatprep.subr.bf16.mxu1 %v6351_v9 }
0x177c   :  { %5171 = vmatpush3.bf16.msra.mxu1 %v5427_v3  ;;  %v5470_v3 = vld [vmem:[#allocation37 + $0x60] ss:$8 sps:$4 sm:$0xff]  }
0x177d   :  { %3701 = vmatprep.subr.bf16.mxu1 %v5430_v32  ;;  %v5552_v32 = vld [vmem:[#allocation40 + $0x50] sm:$0xff]  }
0x1803   :  { %v3446_v49 = vpop.xlane.xlu0 %3445 }
0x1804   :  { %v3450_v50 = vmul.f32 0.015625, %v3446_v49  ;;  %v5452_v49 = vld [vmem:[#allocation37] ss:$8 sps:$4 sm:$0xff]  }
0x1805   :  { %v3449_v52 = vpop.xlane.xlu1 %3448 }
0x1806   :  { %v3452_v53 = vsub.f32 %v3440_v46, %v3450_v50  ;;  %v3451_v54 = vmul.f32 0.015625, %v3449_v52  ;;  %v5457_v52 = vld [vmem:[#allocation37 + $0x14] ss:$8 sps:$4 sm:$0xff]  }
0x1808   :  { %v3453_v55 = vsub.f32 %v3441_v48, %v3451_v54  ;;  %v3454_v51 = vmul.f32 %v3452_v53, %v3452_v53  ;;  %v5460_v54 = vld [vmem:[#allocation37 + $0x24] ss:$8 sps:$4 sm:$0xff]  }
0x180a   :  { %v3456_v56 = vsel %vm498_vm0, %v3454_v51, 0.0  ;;  %v3455_v57 = vmul.f32 %v3453_v55, %v3453_v55  ;;  %v5463_v51 = vld [vmem:[#allocation37 + $0x34] ss:$8 sps:$4 sm:$0xff]  }
0x180b   :  { %3457 = vadd.xlane.f32.xlu0 %v3456_v56  ;;  %v5461_v56 = vld [vmem:[#allocation37 + $0x30] ss:$8 sps:$4 sm:$0xff]  }
0x180c   :  { %v3459_v58 = vsel %vm498_vm0, %v3455_v57, 0.0  ;;  %v5466_v57 = vld [vmem:[#allocation37 + $0x44] ss:$8 sps:$4 sm:$0xff]  }
0x180d   :  { %3460 = vadd.xlane.f32.xlu1 %v3459_v58  ;;  %v5464_v58 = vld [vmem:[#allocation37 + $0x40] ss:$8 sps:$4 sm:$0xff]  }
0x1898   :  { %v3458_v5 = vpop.xlane.xlu0 %3457 }
0x1899   :  { %v3462_v6 = vmul.f32 0.015625, %v3458_v5  ;;  %v5475_v5 = vld [vmem:[#allocation37 + $0x74] ss:$8 sps:$4 sm:$0xff]  }
0x189a   :  { %v3461_v7 = vpop.xlane.xlu1 %3460 }
0x189b   :  { %v3464_v10 = vadd.f32 1e-12, %v3462_v6  ;;  %v3463_v11 = vmul.f32 0.015625, %v3461_v7  ;;  %v5473_v6 = vld [vmem:[#allocation37 + $0x70] ss:$8 sps:$4 sm:$0xff]  }
0x189c   :  { %v5478_v7 = vld [vmem:[#allocation37 + $0x84] ss:$8 sps:$4 sm:$0xff]  }
0x189d   :  { %5652 = vrsqrt.f32 %v3464_v10  ;;  %v3465_v12 = vadd.f32 1e-12, %v3463_v11  ;;  %v5476_v10 = vld [vmem:[#allocation37 + $0x80] ss:$8 sps:$4 sm:$0xff]   ;;  %v5481_v11 = vld [vmem:[#allocation37 + $0x94] ss:$8 sps:$4 sm:$0xff]  }
0x189f   :  { %5654 = vrsqrt.f32 %v3465_v12  ;;  %v5479_v12 = vld [vmem:[#allocation37 + $0x90] ss:$8 sps:$4 sm:$0xff]  }
0x18a7   :  { %v5653_v13 = vpop.eup %5652 }
0x18a8   :  { %v3468_v16 = vmul.f32 %v5653_v13, %v3452_v53  ;;  %v5455_v53 = vld [vmem:[#allocation37 + $0x10] ss:$8 sps:$4 sm:$0xff]   ;;  %v5484_v13 = vld [vmem:[#allocation37 + $0xa4] ss:$8 sps:$4 sm:$0xff]  }
0x18a9   :  { %v5655_v19 = vpop.eup %5654 }
0x18aa   :  { %v3476_v21 = vmul.f32 %v4619_v14, %v3468_v16  ;;  %v3469_v22 = vmul.f32 %v5655_v19, %v3453_v55  ;;  %v5458_v55 = vld [vmem:[#allocation37 + $0x20] ss:$8 sps:$4 sm:$0xff]   ;;  %v5487_v16 = vld [vmem:[#allocation37 + $0xb4] ss:$8 sps:$4 sm:$0xff]   ;;  %v5485_v19 = vld [vmem:[#allocation37 + $0xb0] ss:$8 sps:$4 sm:$0xff]  }
0x18ac   :  { %v3484_v9 = vadd.f32 %v4620_v20, %v3476_v21  ;;  %v3477_v23 = vmul.f32 %v4619_v14, %v3469_v22  ;;  %v5482_v14 = vld [vmem:[#allocation37 + $0xa0] ss:$8 sps:$4 sm:$0xff]   ;;  %v5493_v22 = vld [vmem:[#allocation37 + $0xd4] ss:$8 sps:$4 sm:$0xff]  }
0x18ad   :  { %v5488_v21 = vld [vmem:[#allocation37 + $0xc0] ss:$8 sps:$4 sm:$0xff]  }
0x18ae   :  { %v3485_v24 = vadd.f32 %v4620_v20, %v3477_v23  ;;  %v3486_v15 = vpack.c.bf16 %v3484_v9, %v3484_v9  ;;  %v5490_v20 = vld [vmem:[#allocation37 + $0xc4] ss:$8 sps:$4 sm:$0xff]   ;;  %v5491_v9 = vld [vmem:[#allocation37 + $0xd0] ss:$8 sps:$4 sm:$0xff]  }
0x18af   :  { %v5496_v23 = vld [vmem:[#allocation37 + $0xe4] ss:$8 sps:$4 sm:$0xff]  }
0x18b0   :  { %v3487_v8 = vpack.c.bf16 %v3485_v24, %v3485_v24  ;;  %v3505_v26 = vunpack.c.l.b16 %v3486_v15  ;;  %v5494_v24 = vld [vmem:[#allocation37 + $0xe0] ss:$8 sps:$4 sm:$0xff]   ;;  %v5499_v15 = vld [vmem:[#allocation37 + $0xf4] ss:$8 sps:$4 sm:$0xff]  }
0x18b2   :  { %v3506_v17 = vunpack.c.l.b16 %v3487_v8  ;;  %v5497_v8 = vld [vmem:[#allocation37 + $0xf0] ss:$8 sps:$4 sm:$0xff]  }
0x18b4   :  { %v3507_v31 = vrot.slane %v3506_v17, 7  ;;  %v5502_v17 = vld [vmem:[#allocation37 + $0x104] ss:$8 sps:$4 sm:$0xff]  }
0x18b6   :  { %v3509_v30 = vsel %vm3508_vm9, %v3507_v31, %v3505_v26  ;;  %v5548_v26 = vld [vmem:[#allocation40 + $0x40] sm:$0xff]  }
0x18b7   :  { %v3510_v25 = vpack.c.b16 %v3509_v30, %v3509_v30  ;;  %v5549_v31 = vld [vmem:[#allocation40] sm:$0xff]   ;;  %v5550_v30 = vld [vmem:[#allocation40 + $0x48] sm:$0xff]   ;;  %4843 = vmatprep.subr.bf16.mxu0 %v5548_v26 }
0x18b8   :  { %v5539_v26 = vld [vmem:[#allocation37 + $0x1d0] ss:$8 sps:$4 sm:$0xff]  }
0x18b9   :  { %5173 = vmatmul.mubr.msk.bf16.vlgmr.msra.gmra.mrb[72].mxu1 %vm498_vm0, %v3510_v25  ;;  %v5551_v25 = vld [vmem:[#allocation40 + $0x8] sm:$0xff]  }
0x18ba   :  { %3733 = vmatprep.mubr.bf16.mxu1 %v6350_v0  ;;  %3702 = vmatpush1.bf16.msra.mxu1 %v5428_v27  ;;  %v5442_v0 = vld [vmem:[%s7315_s10 + $0x44] ss:$16 sps:$4 sm:$0xff]  }
0x18bb   :  { %3703 = vmatprep.subr.bf16.mxu1 %v5436_v35  ;;  %v5554_v27 = vld [vmem:[#allocation40 + $0x58] sm:$0xff]   ;;  %v5556_v35 = vld [vmem:[#allocation40 + $0x60] sm:$0xff]  }
0x18be   :  { %3704 = vmatpush1.bf16.msra.mxu1 %v5434_v39  ;;  %v5558_v39 = vld [vmem:[#allocation40 + $0x68] sm:$0xff]  }
0x18bf   :  { %3705 = vmatprep.subr.bf16.mxu1 %v5442_v0  ;;  %v7239_v0 = vld [vmem:[#allocation35] sm:$0xf] }
0x18c0   :  { %v3605_v42 = vrot.slane %v7239_v0, %v6750_v4 }
0x18c2   :  { %3706 = vmatpush1.bf16.msra.mxu1 %v5440_v62  ;;  %v3601_v62 = vrot.slane %v7239_v0, %v6747_v2 }
0x18c3   :  { %3707 = vmatprep.subr.bf16.mxu1 %v5448_v43  ;;  %v3613_v43 = vrot.slane %v7239_v0, %v3612_v41 }
0x18c6   :  { %3708 = vmatpush1.bf16.msra.mxu1 %v5446_v44 }
0x18c7   :  { %4187 = vmatprep.subr.bf16.mxu1 %v5454_v28 }
0x198c   :  { %v3572_v29 = vpop.f32.mrb[72].mxu1 }
0x198d   :  { %v3573_v45 = vadd.f32 %v4621_v61, %v3572_v29  ;;  %v5174_v46 = vpop.f32.mrb[73].mxu1 }
0x198e   :  { %v3575_v47 = vpop.f32.mrb[74].mxu1 }
0x198f   :  { %5656 = vtanh.f32 %v3573_v45  ;;  %v5175_v48 = vpop.f32.mrb[75].mxu1 }
0x1999   :  { %v5657_v38 = vpop.eup %5656 }
0x199a   :  { %v3579_v50 = vpack.c.bf16 %v5657_v38, %v5657_v38 }
0x199c   :  { %4643 = vmatmul.mubr.msk.bf16.vlgmr.msra.gmra.mrb[76].mxu1 %vm498_vm0, %v3579_v50  ;;  %4644 = vmatmul.mubr.msk.bf16.vlgmr.msra.gmra.mrb[92].mxu0 %vm498_vm0, %v3579_v50 }
0x199d   :  { %4188 = vmatpush1.bf16.msra.mxu1 %v5452_v49  ;;  %4844 = vmatpush3.bf16.msra.mxu0 %v5549_v31 }
0x199e   :  { %4189 = vmatprep.subr.bf16.mxu1 %v5457_v52  ;;  %4845 = vmatprep.subr.bf16.mxu0 %v5550_v30  ;;  %v5544_v30 = vld [vmem:[#allocation37 + $0x1e4] ss:$8 sps:$4 sm:$0xff]  }
0x19a1   :  { %4190 = vmatpush1.bf16.msra.mxu1 %v5455_v53  ;;  %4846 = vmatpush3.bf16.msra.mxu0 %v5551_v25  ;;  %v5542_v25 = vld [vmem:[#allocation37 + $0x1e0] ss:$8 sps:$4 sm:$0xff]  }
0x19a2   :  { %4191 = vmatprep.subr.bf16.mxu1 %v5460_v54  ;;  %4847 = vmatprep.subr.bf16.mxu0 %v5552_v32  ;;  %v5500_v54 = vld [vmem:[#allocation37 + $0x100] ss:$8 sps:$4 sm:$0xff]  }
0x19a5   :  { %4192 = vmatpush1.bf16.msra.mxu1 %v5458_v55  ;;  %4848 = vmatpush3.bf16.msra.mxu0 %v5553_v33  ;;  %v5547_v33 = vld [vmem:[#allocation37 + $0x1f4] ss:$8 sps:$4 sm:$0xff]  }
0x19a6   :  { %4193 = vmatprep.subr.bf16.mxu1 %v5463_v51  ;;  %4849 = vmatprep.subr.bf16.mxu0 %v5554_v27  ;;  %v5505_v51 = vld [vmem:[#allocation37 + $0x114] ss:$8 sps:$4 sm:$0xff]   ;;  %v5545_v27 = vld [vmem:[#allocation37 + $0x1f0] ss:$8 sps:$4 sm:$0xff]  }
0x19a9   :  { %4194 = vmatpush1.bf16.msra.mxu1 %v5461_v56  ;;  %4850 = vmatpush3.bf16.msra.mxu0 %v5555_v34 }
0x19aa   :  { %4195 = vmatprep.subr.bf16.mxu1 %v5466_v57  ;;  %4851 = vmatprep.subr.bf16.mxu0 %v5556_v35  ;;  %v5503_v57 = vld [vmem:[#allocation37 + $0x110] ss:$8 sps:$4 sm:$0xff]  }
0x19ab   :  { %v5560_v35 = vld [vmem:[#allocation40 + $0x70] sm:$0xff]  }
0x19ad   :  { %4196 = vmatpush1.bf16.msra.mxu1 %v5464_v58  ;;  %4852 = vmatpush3.bf16.msra.mxu0 %v5557_v37  ;;  %v5508_v58 = vld [vmem:[#allocation37 + $0x124] ss:$8 sps:$4 sm:$0xff]   ;;  %v5561_v37 = vld [vmem:[#allocation40 + $0x30] sm:$0xff]  }
0x19ae   :  { %4197 = vmatprep.subr.bf16.mxu1 %v5469_v59  ;;  %4853 = vmatprep.subr.bf16.mxu0 %v5558_v39  ;;  %v5506_v59 = vld [vmem:[#allocation37 + $0x120] ss:$8 sps:$4 sm:$0xff]  }
0x19af   :  { %v5562_v39 = vld [vmem:[#allocation40 + $0x78] sm:$0xff]  }
0x19b1   :  { %4198 = vmatpush1.bf16.msra.mxu1 %v5467_v60  ;;  %4854 = vmatpush3.bf16.msra.mxu0 %v5559_v40  ;;  %v5511_v60 = vld [vmem:[#allocation37 + $0x134] ss:$8 sps:$4 sm:$0xff]  }
0x19b2   :  { %4199 = vmatprep.subr.bf16.mxu1 %v5472_v63  ;;  %v5509_v63 = vld [vmem:[#allocation37 + $0x130] ss:$8 sps:$4 sm:$0xff]   ;;  %4855 = vmatprep.subr.bf16.mxu0 %v5560_v35 }
0x19b3   :  { %v5563_v40 = vld [vmem:[#allocation40 + $0x38] sm:$0xff]  }
0x19b5   :  { %4200 = vmatpush1.bf16.msra.mxu1 %v5470_v3  ;;  %v5514_v3 = vld [vmem:[#allocation37 + $0x144] ss:$8 sps:$4 sm:$0xff]   ;;  %4856 = vmatpush3.bf16.msra.mxu0 %v5561_v37 }
0x19b6   :  { %4201 = vmatprep.subr.bf16.mxu1 %v5475_v5  ;;  %v5512_v5 = vld [vmem:[#allocation37 + $0x140] ss:$8 sps:$4 sm:$0xff]   ;;  %4857 = vmatprep.subr.bf16.mxu0 %v5562_v39 }
0x19b9   :  { %4202 = vmatpush1.bf16.msra.mxu1 %v5473_v6  ;;  %v5517_v6 = vld [vmem:[#allocation37 + $0x154] ss:$8 sps:$4 sm:$0xff]   ;;  %4858 = vmatpush3.bf16.msra.mxu0 %v5563_v40 }
0x19ba   :  { %4203 = vmatprep.subr.bf16.mxu1 %v5478_v7  ;;  %v5515_v7 = vld [vmem:[#allocation37 + $0x150] ss:$8 sps:$4 sm:$0xff]  }
0x19bd   :  { %4204 = vmatpush1.bf16.msra.mxu1 %v5476_v10  ;;  %v5520_v10 = vld [vmem:[#allocation37 + $0x164] ss:$8 sps:$4 sm:$0xff]  }
0x19be   :  { %4205 = vmatprep.subr.bf16.mxu1 %v5481_v11  ;;  %v5518_v11 = vld [vmem:[#allocation37 + $0x160] ss:$8 sps:$4 sm:$0xff]  }
0x19c1   :  { %4206 = vmatpush1.bf16.msra.mxu1 %v5479_v12  ;;  %v5523_v12 = vld [vmem:[#allocation37 + $0x174] ss:$8 sps:$4 sm:$0xff]  }
0x19c2   :  { %4207 = vmatprep.subr.bf16.mxu1 %v5484_v13  ;;  %v5521_v13 = vld [vmem:[#allocation37 + $0x170] ss:$8 sps:$4 sm:$0xff]  }
0x19c5   :  { %4208 = vmatpush1.bf16.msra.mxu1 %v5482_v14  ;;  %v5526_v14 = vld [vmem:[#allocation37 + $0x184] ss:$8 sps:$4 sm:$0xff]  }
0x19c6   :  { %4209 = vmatprep.subr.bf16.mxu1 %v5487_v16  ;;  %v5524_v16 = vld [vmem:[#allocation37 + $0x180] ss:$8 sps:$4 sm:$0xff]  }
0x19c9   :  { %4210 = vmatpush1.bf16.msra.mxu1 %v5485_v19  ;;  %v5529_v19 = vld [vmem:[#allocation37 + $0x194] ss:$8 sps:$4 sm:$0xff]  }
0x19ca   :  { %4211 = vmatprep.subr.bf16.mxu1 %v5490_v20  ;;  %v5527_v20 = vld [vmem:[#allocation37 + $0x190] ss:$8 sps:$4 sm:$0xff]  }
0x19cd   :  { %4212 = vmatpush1.bf16.msra.mxu1 %v5488_v21  ;;  %v5532_v21 = vld [vmem:[#allocation37 + $0x1a4] ss:$8 sps:$4 sm:$0xff]  }
0x19ce   :  { %4213 = vmatprep.subr.bf16.mxu1 %v5493_v22  ;;  %v5530_v22 = vld [vmem:[#allocation37 + $0x1a0] ss:$8 sps:$4 sm:$0xff]  }
0x19d1   :  { %4214 = vmatpush1.bf16.msra.mxu1 %v5491_v9  ;;  %v5535_v9 = vld [vmem:[#allocation37 + $0x1b4] ss:$8 sps:$4 sm:$0xff]  }
0x19d2   :  { %4215 = vmatprep.subr.bf16.mxu1 %v5496_v23  ;;  %v5533_v23 = vld [vmem:[#allocation37 + $0x1b0] ss:$8 sps:$4 sm:$0xff]  }
0x19d5   :  { %4216 = vmatpush1.bf16.msra.mxu1 %v5494_v24  ;;  %v5538_v24 = vld [vmem:[#allocation37 + $0x1c4] ss:$8 sps:$4 sm:$0xff]  }
0x19d6   :  { %4217 = vmatprep.subr.bf16.mxu1 %v5499_v15  ;;  %v5536_v15 = vld [vmem:[#allocation37 + $0x1c0] ss:$8 sps:$4 sm:$0xff]  }
0x19d9   :  { %4218 = vmatpush1.bf16.msra.mxu1 %v5497_v8  ;;  %v3608_v8 = vsub.s32 2, %v6744_v1 }
0x19da   :  { %4228 = vmatprep.subr.bf16.mxu1 %v5502_v17  ;;  %v5541_v17 = vld [vmem:[#allocation37 + $0x1d4] ss:$8 sps:$4 sm:$0xff]  }
0x19db   :  { %v3609_v31 = vrot.slane %v7239_v0, %v3608_v8  ;;  %v3855_v0 = vld [vmem:[#allocation38] sm:$0x3] }
0x19dc   :  { %v3860_v41 = vrot.slane %v3855_v0, %v6747_v2 }
0x1a6f   :  { %v3735_v36 = vpop.f32.mrb[76].mxu1  ;;  %v7247_v44 = vpop.f32.mrb[92].mxu0 }
0x1a70   :  { %v3736_v18 = vadd.f32 %v3735_v36, %v3601_v62  ;;  %v3737_v28 = vpop.f32.mrb[77].mxu1  ;;  %v3778_v61 = vpop.f32.mrb[93].mxu0  ;;  %v3777_v32 = vadd.f32 %v7247_v44, %v3609_v31  ;;  %v3864_v62 = vrot.slane %v3855_v0, %v6750_v4 }
0x1a71   :  { %v3738_v29 = vadd.f32 %v3737_v28, %v3605_v42  ;;  %v3779_v45 = vadd.f32 %v3778_v61, %v3613_v43  ;;  %v3739_v46 = vpop.f32.mrb[78].mxu1  ;;  %v3780_v47 = vpop.f32.mrb[94].mxu0 }
0x1a72   :  { %v3783_v48 = vmax.f32 %v3736_v18, 0.0  ;;  %v3740_v38 = vpop.f32.mrb[79].mxu1  ;;  %v3781_v49 = vpop.f32.mrb[95].mxu0  ;;  %v3785_v34 = vmax.f32 %v3777_v32, 0.0 }
0x1a73   :  { %v3784_v50 = vmax.f32 %v3738_v29, 0.0  ;;  %v3786_v52 = vmax.f32 %v3779_v45, 0.0 }
0x1a74   :  { %v3787_v55 = vpack.c.bf16 %v3783_v48, %v3783_v48  ;;  %v3789_v1 = vpack.c.bf16 %v3785_v34, %v3785_v34  ;;  %v4709_v48 = vld [vmem:[#allocation41] ss:$0 sm:$0xff] }
0x1a75   :  { %v3788_v53 = vpack.c.bf16 %v3784_v50, %v3784_v50  ;;  %v3790_v56 = vpack.c.bf16 %v3786_v52, %v3786_v52 }
0x1a77   :  { %4219 = vmatprep.mubr.bf16.mxu1 %v3788_v53 }
0x1a78   :  { %4220 = vmatmul.mubr.bf16.vlgmr.msra.gmra.mrb[80].mxu1 %v3787_v55 }
0x1a79   :  { %4229 = vmatpush1.bf16.msra.mxu1 %v5500_v54  ;;  %4260 = vmatprep.mubr.bf16.mxu1 %v3790_v56 }
0x1a7a   :  { %4230 = vmatprep.subr.bf16.mxu1 %v5505_v51 }
0x1a7d   :  { %4231 = vmatpush1.bf16.msra.mxu1 %v5503_v57 }
0x1a7e   :  { %4232 = vmatprep.subr.bf16.mxu1 %v5508_v58 }
0x1a81   :  { %4233 = vmatpush1.bf16.msra.mxu1 %v5506_v59 }
0x1a82   :  { %4234 = vmatprep.subr.bf16.mxu1 %v5511_v60 }
0x1a85   :  { %4235 = vmatpush1.bf16.msra.mxu1 %v5509_v63 }
0x1a86   :  { %4236 = vmatprep.subr.bf16.mxu1 %v5514_v3 }
0x1a89   :  { %4237 = vmatpush1.bf16.msra.mxu1 %v5512_v5 }
0x1a8a   :  { %4238 = vmatprep.subr.bf16.mxu1 %v5517_v6 }
0x1a8d   :  { %4239 = vmatpush1.bf16.msra.mxu1 %v5515_v7 }
0x1a8e   :  { %4240 = vmatprep.subr.bf16.mxu1 %v5520_v10 }
0x1a91   :  { %4241 = vmatpush1.bf16.msra.mxu1 %v5518_v11 }
0x1a92   :  { %4242 = vmatprep.subr.bf16.mxu1 %v5523_v12 }
0x1a95   :  { %4243 = vmatpush1.bf16.msra.mxu1 %v5521_v13 }
0x1a96   :  { %4244 = vmatprep.subr.bf16.mxu1 %v5526_v14 }
0x1a99   :  { %4245 = vmatpush1.bf16.msra.mxu1 %v5524_v16 }
0x1a9a   :  { %4246 = vmatprep.subr.bf16.mxu1 %v5529_v19 }
0x1a9d   :  { %4247 = vmatpush1.bf16.msra.mxu1 %v5527_v20 }
0x1a9e   :  { %4248 = vmatprep.subr.bf16.mxu1 %v5532_v21 }
0x1aa1   :  { %4249 = vmatpush1.bf16.msra.mxu1 %v5530_v22 }
0x1aa2   :  { %4250 = vmatprep.subr.bf16.mxu1 %v5535_v9 }
0x1aa5   :  { %4251 = vmatpush1.bf16.msra.mxu1 %v5533_v23 }
0x1aa6   :  { %4252 = vmatprep.subr.bf16.mxu1 %v5538_v24 }
0x1aa9   :  { %4253 = vmatpush1.bf16.msra.mxu1 %v5536_v15 }
0x1aaa   :  { %4254 = vmatprep.subr.bf16.mxu1 %v5541_v17 }
0x1aad   :  { %4255 = vmatpush1.bf16.msra.mxu1 %v5539_v26 }
0x1aae   :  { %4256 = vmatprep.subr.bf16.mxu1 %v5544_v30 }
0x1ab1   :  { %4257 = vmatpush1.bf16.msra.mxu1 %v5542_v25 }
0x1ab2   :  { %4258 = vmatprep.subr.bf16.mxu1 %v5547_v33 }
0x1ab5   :  { %4259 = vmatpush1.bf16.msra.mxu1 %v5545_v27 }
0x1ab8   :  { %4261 = vmatmul.mubr.bf16.vlgmr.msra.gmra.mrb[80].mxu1 %v3789_v1 }
0x1b8b   :  { %v4262_v42 = vpop.f32.mrb[80].mxu1 }
0x1b8c   :  { %v5192_v43 = vadd.f32 %v4262_v42, %v3860_v41  ;;  %v4264_v36 = vpop.f32.mrb[81].mxu1 }
0x1b8d   :  { %v5193_v44 = vadd.f32 %v4264_v36, %v3864_v62  ;;  %v4266_v18 = vpop.f32.mrb[82].mxu1 }
0x1b8e   :  { %v4269_v28 = vmax.f32 %v5192_v43, 0.0  ;;  %v4267_v61 = vpop.f32.mrb[83].mxu1 }
0x1b8f   :  { %v4270_v29 = vmax.f32 %v5193_v44, 0.0 }
0x1b90   :  { %v4271_v46 = vpack.c.bf16 %v4269_v28, %v4269_v28 }
0x1b91   :  { %v4272_v45 = vpack.c.bf16 %v4270_v29, %v4270_v29 }
0x1b93   :  { %4440 = vmatprep.mubr.bf16.mxu0 %v4272_v45 }
0x1b94   :  { %4441 = vmatmul.mubr.bf16.vlgmr.msra.gmra.mrb[96].mxu0 %v4271_v46 }
0x1c67   :  { %v4859_v47 = vpop.f32.mrb[96].mxu0 }
0x1c68   :  { %v4860_v38 = vpop.f32.mrb[97].mxu0 }
0x1c69   :  { %v4861_v2 = vadd.f32 %v4860_v38, %v4859_v47  ;;  %v4862_v49 = vpop.f32.mrb[98].mxu0 }
0x1c6a   :  { %v4863_v4 = vpop.f32.mrb[99].mxu0 }
0x1c6b   :  { %v4443_v50 = vadd.f32 %v4861_v2, %v4709_v48 }
0x1c6d   :  { %4448 = vst [vmem:[#allocation43] sm:$0x3] %v4443_v50 }
0x1c6e   :  { %6241 = shalt.err (!%p6238_p2)
}
0x1c6f   :  { %s6242_s0 = scalar_lea.hbm %s6559_s12, 32 }
0x1c70   :  { %p6243_p3 = scmp.ne.s32.totalorder %s6559_s12, %s6242_s0  ;;  %p6246_p4 = scmp.lt.u32.totalorder %s6242_s0, %s6559_s12 }
0x1c72   :  { %p6248_p5 = pnand %p6246_p4, %p6243_p3 }
0x1c74   :  { %6251 = shalt.err (!%p6248_p5)
}
0x1c75   :  { %4458 = dma.vmem_to_hbm [thread:$0]  %s4456_s11, 32, %s6559_s12, [#allocation4]  }
0x1c76   :  { %6280 = dma.done.wait [#allocation4], 32  }
0x1c77   :  { %6281 = vsyncadd [#allocation4], 4294967264 }
0x1c78   :  { %4462 = vsyncpa [#allocation3], 1 }
0x1c79   :  { %4463 = vsyncpa [#allocation6], 1 }
0x1c7a   :  { %4464 = vsyncpa [#allocation9], 1 }
0x1c7b   :  { %4465 = vsyncpa [#allocation12], 1 }
0x1c7c   :  { %4466 = vsyncpa [#allocation15], 1 }
0x1c7d   :  { %4467 = vsyncpa [#allocation18], 1 }
0x1c7e   :  { %4468 = vsyncpa [#allocation21], 1 }
0x1c7f   :  { %4469 = vsyncpa [#allocation24], 1 }
0x1c80   :  { %4470 = vsyncpa [#allocation27], 1 }
0x1c81   :  { %4471 = vsyncpa [#allocation30], 1 }
0x1c82   :  { %4472 = vsyncpa [#allocation33], 1 }
0x1c83   :  { %4473 = vsyncpa [#allocation36], 1 }
0x1c84   :  { %4474 = vsyncpa [#allocation39], 1 }
0x1c85   :  { %4475 = vsyncpa [#allocation42], 1 }
0x1c86   :  { %4476 = vsyncpa [#allocation4], 1 }

</bundles_post_ra>
